<compile_context>
chip_gen: v6e
topology: v6e:2x2x1
jax: 0.10.0
libtpu: 0.0.40
codegen_flags: <defaults>
</compile_context>

<pallas_src>
import functools

import jax
import jax.numpy as jnp
from jax.experimental import pallas as pl
from jax.experimental.pallas import tpu as pltpu

SELU_ALPHA = 1.6732632423543772
SELU_SCALE = 1.0507009873554805


def _selu(x):
    # SELU(x) = scale * (max(0, x) + min(0, alpha * (exp(x) - 1)))
    return SELU_SCALE * jnp.where(x > 0.0, x, SELU_ALPHA * (jnp.exp(x) - 1.0))


def _round_up(x, m):
    return pl.cdiv(x, m) * m


def dan_kernel(ids_ref, embed_ref, w_ref, b_ref, out_ref, cnt_ref, *, inv_seq_len):
    """grid = (batch tiles ["parallel"], sequence tiles ["arbitrary" reduction]).

    ids_ref   : (Bt, St)    int32  token ids (0 == pad; embed row 0 zeroed host-side)
    embed_ref : (Vp, Dp)    f32    padded embedding table (resident across grid)
    w_ref     : (L, Dp, Dp) f32    dense weights, (in, out) layout (resident)
    b_ref     : (L, 1, Dp)  f32    dense biases (resident)
    out_ref   : (Bt, Dp)    f32    output block (written on last sequence step)
    cnt_ref   : (Bt, Vp)    int32  scratch: lane-dense per-vocab counts accumulator
    """
    s_step = pl.program_id(1)

    @pl.when(s_step == 0)
    def _init():
        cnt_ref[...] = jnp.zeros_like(cnt_ref)

    ids = ids_ref[...]                                   # (Bt, St) int32
    bt, st = ids.shape
    vp = cnt_ref.shape[1]

    # One-hot with the vocab on the lane axis.  Reducing over the sequence
    # (axis 1, sublane-tiled) is VPU vreg adds + one small sublane reduce —
    # no lane-wide XLU reductions.  Pad tokens hit the zeroed embed row 0,
    # so no explicit mask is needed.
    vocab = jax.lax.broadcasted_iota(jnp.int32, (bt, st, vp), 2)   # (Bt, St, Vp)
    hits = (ids[:, :, None] == vocab).astype(jnp.int32)            # (Bt, St, Vp)
    cnt_ref[...] += jnp.sum(hits, axis=1)                          # (Bt, Vp) int32

    @pl.when(s_step == pl.num_programs(1) - 1)
    def _finalize():
        # pooled[b, d] = (1/S) * sum_v counts[b, v] * embed[v, d]  (MXU, no transpose)
        pooled = jnp.dot(cnt_ref[...].astype(jnp.float32), embed_ref[...],
                         preferred_element_type=jnp.float32) * inv_seq_len  # (Bt, Dp)
        x = pooled
        for layer in range(w_ref.shape[0]):                         # static unroll
            x = _selu(
                jnp.dot(x, w_ref[layer], preferred_element_type=jnp.float32)
                + b_ref[layer])
        out_ref[...] = x.astype(out_ref.dtype)


def dan_forward(token_ids, embed_matrix, weights, biases, *, b_tile=None, s_tile=None):
    """token_ids: (B, S) int; embed_matrix: (V, D); weights: (L, D, D) stored
    (in_dim, out_dim); biases: (L, 1, D).  Returns (B, D) float32."""
    B, S = token_ids.shape
    V, D = embed_matrix.shape
    L = weights.shape[0]

    Vp = _round_up(V, 128)          # contraction dim, lane-aligned
    Dp = _round_up(D, 128)          # lane-dense features / output / MXU K & N

    # --- tile sizing ---------------------------------------------------------
    if b_tile is None:
        Bp8 = _round_up(B, 8)
        # keep >=2 batch tiles when the batch allows (v7x dual TensorCores)
        b_tile = min(128, max(8, _round_up(max(Bp8 // 2, 1), 8)))
    Bp = _round_up(B, b_tile)
    if s_tile is None:
        # bound the (Bt, St, Vp) int32 one-hot intermediate to ~4 MiB
        hist_budget_elems = (4 * 1024 * 1024) // 4
        s_cap = max(128, ((hist_budget_elems // (b_tile * Vp)) // 128) * 128)
        s_tile = min(_round_up(S, 128), s_cap, 512)
    Sp = _round_up(S, s_tile)

    # --- pad inputs/params; zero padding keeps extra rows/cols inert (SELU(0)=0)
    ids_p = jnp.zeros((Bp, Sp), jnp.int32).at[:B, :S].set(token_ids.astype(jnp.int32))
    embed_p = jnp.zeros((Vp, Dp), jnp.float32).at[:V, :D].set(
        embed_matrix.astype(jnp.float32))
    embed_p = embed_p.at[0].set(0.0)        # pad token (id 0) contributes nothing
    w_p = jnp.zeros((L, Dp, Dp), jnp.float32).at[:, :D, :D].set(
        weights.astype(jnp.float32))
    b_p = jnp.zeros((L, 1, Dp), jnp.float32).at[:, :, :D].set(
        biases.astype(jnp.float32))

    grid = (Bp // b_tile, Sp // s_tile)
    kernel = functools.partial(dan_kernel, inv_seq_len=1.0 / float(S))

    out_p = pl.pallas_call(
        kernel,
        out_shape=jax.ShapeDtypeStruct((Bp, Dp), jnp.float32),
        grid_spec=pltpu.PrefetchScalarGridSpec(
            num_scalar_prefetch=0,
            grid=grid,
            in_specs=[
                pl.BlockSpec((b_tile, s_tile), lambda i, j: (i, j)),   # ids tile
                pl.BlockSpec((Vp, Dp), lambda i, j: (0, 0)),           # embed (resident)
                pl.BlockSpec((L, Dp, Dp), lambda i, j: (0, 0, 0)),     # weights (resident)
                pl.BlockSpec((L, 1, Dp), lambda i, j: (0, 0, 0)),      # biases (resident)
            ],
            out_specs=pl.BlockSpec((b_tile, Dp), lambda i, j: (i, 0)),  # written at last j
            scratch_shapes=[pltpu.VMEM((b_tile, Vp), jnp.int32)],       # counts accumulator
        ),
        compiler_params=pltpu.CompilerParams(
            dimension_semantics=("parallel", "arbitrary"),
            vmem_limit_bytes=32 * 1024 * 1024,
        ),
    )(ids_p, embed_p, w_p, b_p)

    return out_p[:B, :D]


def _reference(token_ids, embed_matrix, weights, biases):
    emb = jnp.take(embed_matrix, token_ids, axis=0).astype(jnp.float32)   # (B, S, D)
    mask = (token_ids != 0).astype(jnp.float32)[..., None]
    x = jnp.mean(emb * mask, axis=-2)
    for l in range(weights.shape[0]):
        x = _selu(x @ weights[l] + biases[l])
    return x


if __name__ == "__main__":
    # Small, deterministic setup.  With these sizes the grid is (2, 1):
    # 2 batch tiles of 8 ("parallel", keeps both v7x TCs busy) x 1 sequence tile.
    vocab_size, embedding_dim, n_layers = 50, 32, 3
    batch, seq = 16, 384

    key = jax.random.PRNGKey(0)
    k_embed, k_ids, k_w, k_b = jax.random.split(key, 4)

    # nn.Embedding default init: N(0, 1)
    embed_matrix = jax.random.normal(k_embed, (vocab_size, embedding_dim),
                                     dtype=jnp.float32)
    # nn.Linear default init: U(-1/sqrt(in), 1/sqrt(in))
    bound = 1.0 / (embedding_dim ** 0.5)
    weights = jax.random.uniform(k_w, (n_layers, embedding_dim, embedding_dim),
                                 minval=-bound, maxval=bound, dtype=jnp.float32)
    biases = jax.random.uniform(k_b, (n_layers, 1, embedding_dim),
                                minval=-bound, maxval=bound, dtype=jnp.float32)

    # Token ids in [0, vocab); include explicit trailing padding (id 0).
    token_ids = jax.random.randint(k_ids, (batch, seq), 0, vocab_size,
                                   dtype=jnp.int32)
    token_ids = token_ids.at[0, -20:].set(0).at[1, -64:].set(0)

    out = dan_forward(token_ids, embed_matrix, weights, biases)
    out = jax.block_until_ready(out)

    ref = _reference(token_ids, embed_matrix, weights, biases)
    assert out.shape == (batch, embedding_dim)
    assert jnp.allclose(out, ref, atol=1e-5, rtol=1e-5), "mismatch vs reference"

    print("KERNEL_OK")
</pallas_src>

<mosaic_0001>
module attributes {stable_mosaic.version = 11 : i64} {
  func.func @dan_kernel(%arg0: i32, %arg1: i32, %arg2: memref<8x384xi32, #tpu.memory_space<vmem>>, %arg3: memref<128x128xf32, #tpu.memory_space<vmem>>, %arg4: memref<3x128x128xf32, #tpu.memory_space<vmem>>, %arg5: memref<3x1x128xf32, #tpu.memory_space<vmem>>, %arg6: memref<8x128xf32, #tpu.memory_space<vmem>>, %arg7: memref<8x128xi32, #tpu.memory_space<vmem>>) attributes {dimension_semantics = [#tpu.dimension_semantics<parallel>, #tpu.dimension_semantics<arbitrary>], iteration_bounds = array<i64: 2, 1>, scalar_prefetch = 0 : i64, scratch_operands = 1 : i64, tpu.core_type = #tpu.core_type<tc>, window_params = [{transform_indices = @transform_0, window_bounds = array<i64: 8, 384>}, {pipeline_mode = #tpu.pipeline_mode<synchronous>, transform_indices = @transform_1, window_bounds = array<i64: 128, 128>}, {pipeline_mode = #tpu.pipeline_mode<synchronous>, transform_indices = @transform_2, window_bounds = array<i64: 3, 128, 128>}, {pipeline_mode = #tpu.pipeline_mode<synchronous>, transform_indices = @transform_3, window_bounds = array<i64: 3, 1, 128>}, {transform_indices = @transform_4, window_bounds = array<i64: 8, 128>}]} {
    %c0_i32 = arith.constant 0 : i32
    %0 = arith.cmpi eq, %arg1, %c0_i32 : i32
    %1 = arith.extui %0 : i1 to i32
    %c0_i32_0 = arith.constant 0 : i32
    %2 = arith.cmpi ne, %1, %c0_i32_0 : i32
    scf.if %2 {
      %c0_i32_8 = arith.constant 0 : i32
      %16 = vector.broadcast %c0_i32_8 : i32 to vector<8x128xi32>
      %c0_9 = arith.constant 0 : index
      %c0_10 = arith.constant 0 : index
      %17 = vector.load %arg7[%c0_9, %c0_10] : memref<8x128xi32, #tpu.memory_space<vmem>>, vector<8x128xi32>
      tpu.vector_store %arg7[%c0_9, %c0_10], %16 {strides = array<i32>} : memref<8x128xi32, #tpu.memory_space<vmem>>, vector<8x128xi32>,
    } else {
    }
    %c0 = arith.constant 0 : index
    %c0_1 = arith.constant 0 : index
    %3 = vector.load %arg2[%c0, %c0_1] : memref<8x384xi32, #tpu.memory_space<vmem>>, vector<8x384xi32>
    %4 = tpu.iota {dimensions = array<i32: 2>} : vector<8x384x128xi32>
    %5 = vector.shape_cast %3 : vector<8x384xi32> to vector<8x384x1xi32>
    %6 = vector.broadcast %5 : vector<8x384x1xi32> to vector<8x384x128xi32>
    %7 = arith.cmpi eq, %6, %4 : vector<8x384x128xi32>
    %8 = arith.extui %7 : vector<8x384x128xi1> to vector<8x384x128xi32>
    %c0_2 = arith.constant 0 : index
    %c0_3 = arith.constant 0 : index
    %9 = vector.load %arg7[%c0_2, %c0_3] : memref<8x128xi32, #tpu.memory_space<vmem>>, vector<8x128xi32>
    %cst = arith.constant dense<0> : vector<8x128xi32>
    %10 = vector.multi_reduction <add>, %8, %cst [1] : vector<8x384x128xi32> to vector<8x128xi32>
    %11 = arith.addi %9, %10 : vector<8x128xi32>
    %c0_4 = arith.constant 0 : index
    %c0_5 = arith.constant 0 : index
    %12 = vector.load %arg7[%c0_4, %c0_5] : memref<8x128xi32, #tpu.memory_space<vmem>>, vector<8x128xi32>
    tpu.vector_store %arg7[%c0_4, %c0_5], %11 {strides = array<i32>} : memref<8x128xi32, #tpu.memory_space<vmem>>, vector<8x128xi32>,
    %c0_i32_6 = arith.constant 0 : i32
    %13 = arith.cmpi eq, %arg1, %c0_i32_6 : i32
    %14 = arith.extui %13 : i1 to i32
    %c0_i32_7 = arith.constant 0 : i32
    %15 = arith.cmpi ne, %14, %c0_i32_7 : i32
    scf.if %15 {
      %c0_8 = arith.constant 0 : index
      %c0_9 = arith.constant 0 : index
      %16 = vector.load %arg7[%c0_8, %c0_9] : memref<8x128xi32, #tpu.memory_space<vmem>>, vector<8x128xi32>
      %17 = arith.sitofp %16 : vector<8x128xi32> to vector<8x128xf32>
      %c0_10 = arith.constant 0 : index
      %c0_11 = arith.constant 0 : index
      %18 = vector.load %arg3[%c0_10, %c0_11] : memref<128x128xf32, #tpu.memory_space<vmem>>, vector<128x128xf32>
      %cst_12 = arith.constant dense<0.000000e+00> : vector<8x128xf32>
      %19 = tpu.matmul %17, %18, %cst_12 {dimension_numbers = #tpu.dot_dimension_numbers<[1], [0], [0], [1], [0, 0, 1, 1], [], []>} : vector<8x128xf32>, vector<128x128xf32>, vector<8x128xf32> -> vector<8x128xf32>
      %cst_13 = arith.constant 0.00260416674 : f32
      %20 = vector.broadcast %cst_13 : f32 to vector<8x128xf32>
      %21 = arith.mulf %19, %20 : vector<8x128xf32>
      %c0_14 = arith.constant 0 : index
      %c0_15 = arith.constant 0 : index
      %c0_16 = arith.constant 0 : index
      %22 = vector.load %arg4[%c0_14, %c0_15, %c0_16] : memref<3x128x128xf32, #tpu.memory_space<vmem>>, vector<1x128x128xf32>
      %23 = vector.shape_cast %22 : vector<1x128x128xf32> to vector<128x128xf32>
      %cst_17 = arith.constant dense<0.000000e+00> : vector<8x128xf32>
      %24 = tpu.matmul %21, %23, %cst_17 {dimension_numbers = #tpu.dot_dimension_numbers<[1], [0], [0], [1], [0, 0, 1, 1], [], []>} : vector<8x128xf32>, vector<128x128xf32>, vector<8x128xf32> -> vector<8x128xf32>
      %c0_18 = arith.constant 0 : index
      %c0_19 = arith.constant 0 : index
      %c0_20 = arith.constant 0 : index
      %25 = vector.load %arg5[%c0_18, %c0_19, %c0_20] : memref<3x1x128xf32, #tpu.memory_space<vmem>>, vector<1x1x128xf32>
      %26 = vector.shape_cast %25 : vector<1x1x128xf32> to vector<1x128xf32>
      %27 = vector.broadcast %26 : vector<1x128xf32> to vector<8x128xf32>
      %28 = arith.addf %24, %27 : vector<8x128xf32>
      %cst_21 = arith.constant 0.000000e+00 : f32
      %29 = vector.broadcast %cst_21 : f32 to vector<8x128xf32>
      %30 = arith.cmpf ogt, %28, %29 : vector<8x128xf32>
      %31 = math.exp %28 : vector<8x128xf32>
      %cst_22 = arith.constant 1.000000e+00 : f32
      %32 = vector.broadcast %cst_22 : f32 to vector<8x128xf32>
      %33 = arith.subf %31, %32 : vector<8x128xf32>
      %cst_23 = arith.constant 1.67326319 : f32
      %34 = vector.broadcast %cst_23 : f32 to vector<8x128xf32>
      %35 = arith.mulf %34, %33 : vector<8x128xf32>
      %36 = arith.select %30, %28, %35 : vector<8x128xi1>, vector<8x128xf32>
      %cst_24 = arith.constant 1.05070102 : f32
      %37 = vector.broadcast %cst_24 : f32 to vector<8x128xf32>
      %38 = arith.mulf %37, %36 : vector<8x128xf32>
      %c1 = arith.constant 1 : index
      %c0_25 = arith.constant 0 : index
      %c0_26 = arith.constant 0 : index
      %39 = vector.load %arg4[%c1, %c0_25, %c0_26] : memref<3x128x128xf32, #tpu.memory_space<vmem>>, vector<1x128x128xf32>
      %40 = vector.shape_cast %39 : vector<1x128x128xf32> to vector<128x128xf32>
      %cst_27 = arith.constant dense<0.000000e+00> : vector<8x128xf32>
      %41 = tpu.matmul %38, %40, %cst_27 {dimension_numbers = #tpu.dot_dimension_numbers<[1], [0], [0], [1], [0, 0, 1, 1], [], []>} : vector<8x128xf32>, vector<128x128xf32>, vector<8x128xf32> -> vector<8x128xf32>
      %c1_28 = arith.constant 1 : index
      %c0_29 = arith.constant 0 : index
      %c0_30 = arith.constant 0 : index
      %42 = vector.load %arg5[%c1_28, %c0_29, %c0_30] : memref<3x1x128xf32, #tpu.memory_space<vmem>>, vector<1x1x128xf32>
      %43 = vector.shape_cast %42 : vector<1x1x128xf32> to vector<1x128xf32>
      %44 = vector.broadcast %43 : vector<1x128xf32> to vector<8x128xf32>
      %45 = arith.addf %41, %44 : vector<8x128xf32>
      %cst_31 = arith.constant 0.000000e+00 : f32
      %46 = vector.broadcast %cst_31 : f32 to vector<8x128xf32>
      %47 = arith.cmpf ogt, %45, %46 : vector<8x128xf32>
      %48 = math.exp %45 : vector<8x128xf32>
      %cst_32 = arith.constant 1.000000e+00 : f32
      %49 = vector.broadcast %cst_32 : f32 to vector<8x128xf32>
      %50 = arith.subf %48, %49 : vector<8x128xf32>
      %cst_33 = arith.constant 1.67326319 : f32
      %51 = vector.broadcast %cst_33 : f32 to vector<8x128xf32>
      %52 = arith.mulf %51, %50 : vector<8x128xf32>
      %53 = arith.select %47, %45, %52 : vector<8x128xi1>, vector<8x128xf32>
      %cst_34 = arith.constant 1.05070102 : f32
      %54 = vector.broadcast %cst_34 : f32 to vector<8x128xf32>
      %55 = arith.mulf %54, %53 : vector<8x128xf32>
      %c2 = arith.constant 2 : index
      %c0_35 = arith.constant 0 : index
      %c0_36 = arith.constant 0 : index
      %56 = vector.load %arg4[%c2, %c0_35, %c0_36] : memref<3x128x128xf32, #tpu.memory_space<vmem>>, vector<1x128x128xf32>
      %57 = vector.shape_cast %56 : vector<1x128x128xf32> to vector<128x128xf32>
      %cst_37 = arith.constant dense<0.000000e+00> : vector<8x128xf32>
      %58 = tpu.matmul %55, %57, %cst_37 {dimension_numbers = #tpu.dot_dimension_numbers<[1], [0], [0], [1], [0, 0, 1, 1], [], []>} : vector<8x128xf32>, vector<128x128xf32>, vector<8x128xf32> -> vector<8x128xf32>
      %c2_38 = arith.constant 2 : index
      %c0_39 = arith.constant 0 : index
      %c0_40 = arith.constant 0 : index
      %59 = vector.load %arg5[%c2_38, %c0_39, %c0_40] : memref<3x1x128xf32, #tpu.memory_space<vmem>>, vector<1x1x128xf32>
      %60 = vector.shape_cast %59 : vector<1x1x128xf32> to vector<1x128xf32>
      %61 = vector.broadcast %60 : vector<1x128xf32> to vector<8x128xf32>
      %62 = arith.addf %58, %61 : vector<8x128xf32>
      %cst_41 = arith.constant 0.000000e+00 : f32
      %63 = vector.broadcast %cst_41 : f32 to vector<8x128xf32>
      %64 = arith.cmpf ogt, %62, %63 : vector<8x128xf32>
      %65 = math.exp %62 : vector<8x128xf32>
      %cst_42 = arith.constant 1.000000e+00 : f32
      %66 = vector.broadcast %cst_42 : f32 to vector<8x128xf32>
      %67 = arith.subf %65, %66 : vector<8x128xf32>
      %cst_43 = arith.constant 1.67326319 : f32
      %68 = vector.broadcast %cst_43 : f32 to vector<8x128xf32>
      %69 = arith.mulf %68, %67 : vector<8x128xf32>
      %70 = arith.select %64, %62, %69 : vector<8x128xi1>, vector<8x128xf32>
      %cst_44 = arith.constant 1.05070102 : f32
      %71 = vector.broadcast %cst_44 : f32 to vector<8x128xf32>
      %72 = arith.mulf %71, %70 : vector<8x128xf32>
      %c0_45 = arith.constant 0 : index
      %c0_46 = arith.constant 0 : index
      %73 = vector.load %arg6[%c0_45, %c0_46] : memref<8x128xf32, #tpu.memory_space<vmem>>, vector<8x128xf32>
      tpu.vector_store %arg6[%c0_45, %c0_46], %72 {strides = array<i32>} : memref<8x128xf32, #tpu.memory_space<vmem>>, vector<8x128xf32>,
    } else {
    }
    return
  }
  func.func @transform_0(%arg0: i32, %arg1: i32) -> (i32, i32) {
    %c0_i32 = arith.constant 0 : i32
    return %arg0, %arg1 : i32, i32
  }
  func.func @transform_1(%arg0: i32, %arg1: i32) -> (i32, i32) {
    %c0_i32 = arith.constant 0 : i32
    %c0_i32_0 = arith.constant 0 : i32
    %c0_i32_1 = arith.constant 0 : i32
    return %c0_i32, %c0_i32_0 : i32, i32
  }
  func.func @transform_2(%arg0: i32, %arg1: i32) -> (i32, i32, i32) {
    %c0_i32 = arith.constant 0 : i32
    %c0_i32_0 = arith.constant 0 : i32
    %c0_i32_1 = arith.constant 0 : i32
    %c0_i32_2 = arith.constant 0 : i32
    return %c0_i32, %c0_i32_0, %c0_i32_1 : i32, i32, i32
  }
  func.func @transform_3(%arg0: i32, %arg1: i32) -> (i32, i32, i32) {
    %c0_i32 = arith.constant 0 : i32
    %c0_i32_0 = arith.constant 0 : i32
    %c0_i32_1 = arith.constant 0 : i32
    %c0_i32_2 = arith.constant 0 : i32
    return %c0_i32, %c0_i32_0, %c0_i32_1 : i32, i32, i32
  }
  func.func @transform_4(%arg0: i32, %arg1: i32) -> (i32, i32) {
    %c0_i32 = arith.constant 0 : i32
    %c0_i32_0 = arith.constant 0 : i32
    return %arg0, %c0_i32 : i32, i32
  }
}

</mosaic_0001>

<bundles_post_ra>
// kernel: tpu_custom_call.1
= control target key start
LH: loop header
LB: loop body
LE: loop exit
PB: predicated region body
PF: predicated region fallthrough
CT: control target
= control target key end

     0   :  { %s6797_s0 = inlined_call_operand.hbm [shape: s32[16,384], index: 0, kind: input, shape index: {}]   ;;  %s6798_s1 = inlined_call_operand.hbm [shape: f32[128,128], index: 1, kind: input, shape index: {}]   ;;  %s6799_s2 = inlined_call_operand.hbm [shape: f32[3,128,128], index: 2, kind: input, shape index: {}]   ;;  %s6800_s3 = inlined_call_operand.vmem [shape: f32[3,1,128], index: 3, kind: input, shape index: {}]   ;;  %s6801_s4 = inlined_call_operand.hbm [shape: f32[16,128], index: 4, kind: output, shape index: {}]  }
   0x1   :  { %6842 = sst [smem:[#allocation157_spill]] %s6798_s1 }
   0x2   :  { %9 = vsyncpa [#allocation4], 0 }
   0x3   :  { %11 = vsyncpa [#allocation4 + $0x1], 0 }
   0x4   :  { %12 = vsyncpa [#allocation7], 0 }
   0x5   :  { %13 = vsyncpa [#allocation5], 0 }
   0x6   :  { %15 = vsyncpa [#allocation5 + $0x1], 0  ;;  %s4126_s15 = smov 0   ;;  %s4128_s16 = smov 0  }
   0x7   :  { %s4130_s17 = smov 0   ;;  %s4132_s18 = smov 0  }
   0x8   :  { %s4134_s19 = smov 0   ;;  %s4136_s20 = smov 0  }
   0x9 LB: > { %s3598_s21 = sadd.s32 4294967295, %s4090_s20   ;;  %s3599_s22 = sadd.s32 4294967294, %s4090_s20   ;;  %s4090_s20 = sphi %s4136_s20, %s21_s20   ;;  %s4086_s19 = sphi %s4134_s19, %s7234_s19   ;;  %s4082_s18 = sphi %s4132_s18, %s7233_s18   ;;  %s4078_s17 = sphi %s4130_s17, %s7232_s17   ;;  %s4074_s16 = sphi %s4128_s16, %s7231_s16   ;;  %s4070_s15 = sphi %s4126_s15, %s7230_s15  }
   0xa   : > { %p55_p0 = scmp.ne.s32.totalorder %s4074_s16, %s4070_s15  ;;  %p4160_p1 = scmp.eq.s32.totalorder %s3598_s21, 0 }
   0xb   : > { %p4164_p2 = scmp.eq.s32.totalorder %s3598_s21, 1  ;;  %p148_p3 = scmp.eq.s32.totalorder %s3599_s22, 1 }
   0xc   : > { %s6843_s23 = scalar_select %p4160_p1, 1, 0 }
   0xd   : > { %p4170_p4 = por %p4160_p1, %p55_p0  ;;  %p3600_p5 = scmp.ge.s32.totalorder %s4090_s20, 1 }
   0xe   : > { %p4175_p6 = por %p148_p3, %p55_p0  ;;  %p155_p7 = scmp.lt.s32.totalorder %s4090_s20, 3 }
   0xf   : > { %s6845_s25 = scalar_select %p4170_p4, 1, 0 }
  0x10   : > { %s6846_s26 = scalar_select %p4175_p6, 1, 0 }
  0x11   : > { %p4180_p8 = pnand %p3600_p5, %p155_p7  ;;  %s4092_s28 = smov [#allocation6]  }
  0x12   : > { %s167_s29 = sshll.u32 %s4092_s28, 4  ;;  %s4093_s5 = smov [#allocation8]   ;;  %s168_s29 = int_to_ptr.vmem [resolvable:$true] %s167_s29 }
  0x13   : > { %p3844_p9 = pneg %p4180_p8  ;;  %s180_s6 = sshll.u32 %s4093_s5, 4  ;;  %s181_s6 = int_to_ptr.vmem [resolvable:$true] %s180_s6 }
  0x14   : > { %s3937_s7 = scalar_lea.vmem %s168_s29, 2048  ;;  %p3945_p5 = scmp.lt.s32.totalorder %s168_s29, %s168_s29 }
  0x15   : > { %p4189_p11 = pnand %p3844_p9, %p4160_p1  ;;  %p3938_p13 = scmp.ne.s32.totalorder %s168_s29, %s3937_s7 }
  0x16   : > { %p3946_p7 = scmp.lt.s32.totalorder %s3937_s7, %s3937_s7 }
  0x17   : > { %p3928_p12 = pneg %p4189_p11 }
  0x18   : > { %p3947_p10 = por %p3946_p7, %p3945_p5 }
  0x19   : > { %p3940_p0 = pnand %p3938_p13, %p3928_p12 }
  0x1b   : > { %p3941_p3 = pneg %p3940_p0 }
  0x1d   : > { %p3948_p9 = pnand %p3947_p10, %p3941_p3 }
  0x1f   : > { %3951 = shalt.err (!%p3948_p9)
}
  0x20   : > { %s4094_s8 = smov 128   ;;  %s4095_s9 = smov 8  }
  0x21   : > { %s6849_s1 = sld [smem:[#allocation157_spill]]  ;;  %s3963_s12 = scalar_lea.vmem %s181_s6, 6144 }
  0x22   : > { %p3964_p6 = scmp.ne.s32.totalorder %s181_s6, %s3963_s12  ;;  %p3971_p1 = scmp.lt.s32.totalorder %s181_s6, %s181_s6 }
  0x23   : > { %p3972_p4 = scmp.lt.s32.totalorder %s3963_s12, %s3963_s12 }
  0x24   : > { %p3966_p13 = pnand %p3964_p6, %p3928_p12 }
  0x25   : > { %p3973_p5 = por %p3972_p4, %p3971_p1 }
  0x26   : > { %p3967_p0 = pneg %p3966_p13 }
  0x27   : > { %3847 = dma.hbm_to_vmem [thread:$0]  (!%p4189_p11), %s6849_s1, 2048, %s168_s29, [#allocation7], %s4094_s8, %s4094_s8, %s4095_s9  }
  0x28   : > { %p3974_p10 = pnand %p3973_p5, %p3967_p0 }
  0x2a   : > { %3977 = shalt.err (!%p3974_p10)
}
  0x2b   : > { %3850 = dma.hbm_to_vmem [thread:$0]  (!%p4189_p11), %s6799_s2, 6144, %s181_s6, [#allocation7], %s4094_s8, %s4094_s8, %s4095_s9  }
  0x2c   : > { %s33_s21 = sadd.s32 1, %s4086_s19  ;;  %s42_s22 = sadd.s32 1, %s4078_s17 }
  0x2d   : > { %p35_p1 = scmp.ge.s32.totalorder %s33_s21, 2  ;;  %p49_p4 = scmp.ne.s32.totalorder %s4078_s17, %s4074_s16 }
  0x2e   : > { %p50_p6 = scmp.eq.s32.totalorder %s4090_s20, 0  ;;  %p3861_p12 = scmp.lt.s32.totalorder %s4090_s20, 2 }
  0x2f   : > { %s7236_s21 = smov (%p35_p1, %s33_s21), 0  ;;  %p4221_p7 = por %p4164_p2, %p49_p4 }
  0x30   : > { %p51_p3 = por %p50_p6, %p49_p4  ;;  %s37_s29 = ssub.s32 %s4086_s19, %s7236_s21 }
  0x31   : > { %s197_s30 = sand.u32 1, %s4078_s17   ;;  %p40_p9 = scmp.eq.s32.totalorder %s37_s29, 0 }
  0x32   : > { %s3829_s5 = smul.u32 24, %s197_s30  ;;  %p4228_p11 = pnand %p3861_p12, %p51_p3 }
  0x33   : > { %s4233_s7 = scalar_select %p40_p9, %s4078_s17, %s42_s22  }
  0x34   : > { %s3830_s8 = smul.u32 384, %s4086_s19  ;;  %s201_s9 = scalar_lea.vmem [#allocation3], %s3829_s5 }
  0x35   : > { %s211_s10 = sshll.u32 %s201_s9, 4  ;;  %s198_s13 = scalar_lea.sflag [#allocation4], %s197_s30  ;;  %s212_s10 = int_to_ptr.vmem [resolvable:$true] %s211_s10 }
  0x36   : > { %s209_s12 = scalar_lea.hbm %s6797_s0, %s3830_s8  ;;  %p3980_p2 = pneg %p4228_p11 }
  0x37   : > { %s3991_s14 = scalar_lea.vmem %s212_s10, 384  ;;  %s4096_s29 = smov [#allocation3]  }
  0x38   : > { %p3992_p13 = scmp.ne.s32.totalorder %s212_s10, %s3991_s14  ;;  %s3996_s1 = sshll.u32 %s4096_s29, 4  ;;  %s3997_s1 = int_to_ptr.vmem [resolvable:$false] %s3996_s1 }
  0x39   : > { %s3998_s22 = scalar_lea.vmem %s3997_s1, 768  ;;  %p3999_p10 = scmp.lt.s32.totalorder %s212_s10, %s3997_s1 }
  0x3a   : > { %p3994_p0 = pnand %p3992_p13, %p3980_p2  ;;  %p4000_p1 = scmp.lt.s32.totalorder %s3998_s22, %s3991_s14 }
  0x3c   : > { %p3995_p5 = pneg %p3994_p0  ;;  %p4001_p4 = por %p4000_p1, %p3999_p10 }
  0x3e   : > { %p4002_p6 = pnand %p4001_p4, %p3995_p5 }
  0x40   : > { %4005 = shalt.err (!%p4002_p6)
}
  0x41   : > { %3854 = dma.hbm_to_vmem [thread:$0]  (!%p4228_p11), %s209_s12, 384, %s212_s10, %s198_s13  }
  0x42   : > { %220 = sbr.rel (%p4180_p8) target bundleno = 1848 (0x738), region = 36 }
  0x47   : > { %s4246_s30 = sand.u32 1, %s4074_s16   ;;  %p6852_p12 = scmp.ne.s32.totalorder %s6845_s25, 0 }
  0x48   : > { %s3831_s5 = smul.u32 24, %s4246_s30  ;;  %s223_s8 = scalar_lea.sflag [#allocation4], %s4246_s30 }
  0x4a   : > { %s4250_s9 = scalar_lea.vmem [#allocation3], %s3831_s5 }
  0x4b   : > { %4057 = dma.done.wait (%p6852_p12), %s223_s8, 384  }
  0x4c   : > { %4059 = vsyncadd (%p6852_p12), %s223_s8, 4294966912  ;;  %p6853_p3 = scmp.ne.s32.totalorder %s6843_s23, 0 }
  0x4e   : > { %4061 = dma.done.wait (%p6853_p3), [#allocation7], 8192  }
  0x4f   : > { %4063 = vsyncadd (%p6853_p3), [#allocation7], 4294959104  ;;  %v6805_v0 = vlaneseq  ;;  %v265_v4 = vld [vmem:[%s4250_s9] sm:$0xff]  ;;  %s3608_s11 = sshll.u32 %s4246_s30, 3  ;;  %s3618_s24 = sshll.u32 %s4082_s18, 7 }
  0x50   : > { %s258_s12 = scalar_lea.vmem [#allocation9], %s3608_s11  ;;  %s3496_s22 = scalar_lea.hbm %s6801_s4, %s3618_s24 }
  0x51   : > { %v271_v1 = vshrl.u32 %v6805_v0, 7  ;;  %s3498_s13 = sshll.u32 %s258_s12, 4  ;;  %s3485_s5 = scalar_lea.sflag [#allocation5], %s4246_s30  ;;  %s3499_s13 = int_to_ptr.vmem [resolvable:$true] %s3498_s13 }
  0x52   : > { %s4006_s8 = scalar_lea.vmem %s3499_s13, 128 }
  0x53   : > { %v4261_v2 = vsub.s32 1, %v271_v1  ;;  %v4263_v3 = vsub.s32 0, %v271_v1  ;;  %v4274_v7 = vsub.s32 2, %v271_v1  ;;  %v4283_v9 = vsub.s32 3, %v271_v1  ;;  %p4007_p8 = scmp.ne.s32.totalorder %s3499_s13, %s4006_s8 }
  0x54   : > { %v4290_v11 = vsub.s32 4, %v271_v1  ;;  %v4301_v13 = vsub.s32 5, %v271_v1  ;;  %v4310_v15 = vsub.s32 6, %v271_v1  ;;  %v4321_v17 = vsub.s32 7, %v271_v1 }
  0x55   : > { %v4267_v5 = vrot.slane %v265_v4, %v4261_v2  ;;  %v4270_v6 = vrot.slane %v265_v4, %v4263_v3  ;;  %v4279_v8 = vrot.slane %v265_v4, %v4274_v7  ;;  %v4288_v10 = vrot.slane %v265_v4, %v4283_v9  ;;  %p4008_p9 = pnand %p4007_p8, %p4221_p7 }
  0x56   : > { %v4295_v12 = vrot.slane %v265_v4, %v4290_v11  ;;  %v4306_v14 = vrot.slane %v265_v4, %v4301_v13  ;;  %v4315_v16 = vrot.slane %v265_v4, %v4310_v15  ;;  %6854 = vst [vmem:[#allocation13_spill] sm:$0xff] %v4321_v17  ;;  %v4326_v18 = vrot.slane %v265_v4, %v4321_v17 }
  0x57   : > { %476 = vbcast.lane.b32.xlu1 %v4267_v5, 256  ;;  %275 = vbcast.lane.b32.xlu0 %v4270_v6, 256  ;;  %p4009_p11 = pneg %p4008_p9 }
  0x5b   : > { %480 = vbcast.lane.b32.xlu1 %v4267_v5, 264  ;;  %279 = vbcast.lane.b32.xlu0 %v4270_v6, 264 }
  0x5f   : > { %681 = vbcast.lane.b32.xlu1 %v4279_v8, 264  ;;  %677 = vbcast.lane.b32.xlu0 %v4279_v8, 256 }
  0x63   : > { %484 = vbcast.lane.b32.xlu1 %v4267_v5, 272  ;;  %283 = vbcast.lane.b32.xlu0 %v4270_v6, 272 }
  0x67   : > { %882 = vbcast.lane.b32.xlu1 %v4288_v10, 264  ;;  %878 = vbcast.lane.b32.xlu0 %v4288_v10, 256 }
  0x6b   : > { %1079 = vbcast.lane.b32.xlu1 %v4295_v12, 256  ;;  %685 = vbcast.lane.b32.xlu0 %v4279_v8, 272 }
  0x6f   : > { %287 = vbcast.lane.b32.xlu1 %v4270_v6, 280  ;;  %1083 = vbcast.lane.b32.xlu0 %v4295_v12, 264 }
  0x73   : > { %886 = vbcast.lane.b32.xlu1 %v4288_v10, 272  ;;  %488 = vbcast.lane.b32.xlu0 %v4267_v5, 280 }
  0x77   : > { %1284 = vbcast.lane.b32.xlu1 %v4306_v14, 264  ;;  %1280 = vbcast.lane.b32.xlu0 %v4306_v14, 256 }
  0x7b   : > { %1087 = vbcast.lane.b32.xlu1 %v4295_v12, 272  ;;  %689 = vbcast.lane.b32.xlu0 %v4279_v8, 280 }
  0x7f   : > { %1485 = vbcast.lane.b32.xlu1 %v4315_v16, 264  ;;  %1481 = vbcast.lane.b32.xlu0 %v4315_v16, 256 }
  0x83   : > { %492 = vbcast.lane.b32.xlu1 %v4267_v5, 288  ;;  %291 = vbcast.lane.b32.xlu0 %v4270_v6, 288 }
  0x87   : > { %1288 = vbcast.lane.b32.xlu1 %v4306_v14, 272  ;;  %890 = vbcast.lane.b32.xlu0 %v4288_v10, 280 }
  0x8b   : > { %1686 = vbcast.lane.b32.xlu1 %v4326_v18, 264  ;;  %1682 = vbcast.lane.b32.xlu0 %v4326_v18, 256 }
  0x8f   : > { %1091 = vbcast.lane.b32.xlu1 %v4295_v12, 280  ;;  %693 = vbcast.lane.b32.xlu0 %v4279_v8, 288 }
  0x93   : > { %295 = vbcast.lane.b32.xlu1 %v4270_v6, 296  ;;  %1489 = vbcast.lane.b32.xlu0 %v4315_v16, 272 }
  0x97   : > { %894 = vbcast.lane.b32.xlu1 %v4288_v10, 288  ;;  %496 = vbcast.lane.b32.xlu0 %v4267_v5, 296 }
  0x9b   : > { %1690 = vbcast.lane.b32.xlu1 %v4326_v18, 272  ;;  %1292 = vbcast.lane.b32.xlu0 %v4306_v14, 280 }
  0x9f   : > { %1095 = vbcast.lane.b32.xlu1 %v4295_v12, 288  ;;  %697 = vbcast.lane.b32.xlu0 %v4279_v8, 296 }
  0xa3   : > { %299 = vbcast.lane.b32.xlu1 %v4270_v6, 304  ;;  %1493 = vbcast.lane.b32.xlu0 %v4315_v16, 280 }
  0xa7   : > { %898 = vbcast.lane.b32.xlu1 %v4288_v10, 296  ;;  %500 = vbcast.lane.b32.xlu0 %v4267_v5, 304 }
  0xab   : > { %1694 = vbcast.lane.b32.xlu1 %v4326_v18, 280  ;;  %1296 = vbcast.lane.b32.xlu0 %v4306_v14, 288 }
  0xaf   : > { %1099 = vbcast.lane.b32.xlu1 %v4295_v12, 296  ;;  %701 = vbcast.lane.b32.xlu0 %v4279_v8, 304 }
  0xb3   : > { %303 = vbcast.lane.b32.xlu1 %v4270_v6, 312  ;;  %1497 = vbcast.lane.b32.xlu0 %v4315_v16, 288 }
  0xb7   : > { %902 = vbcast.lane.b32.xlu1 %v4288_v10, 304  ;;  %504 = vbcast.lane.b32.xlu0 %v4267_v5, 312 }
  0xbb   : > { %1698 = vbcast.lane.b32.xlu1 %v4326_v18, 288  ;;  %1300 = vbcast.lane.b32.xlu0 %v4306_v14, 296 }
  0xbf   : > { %1103 = vbcast.lane.b32.xlu1 %v4295_v12, 304  ;;  %705 = vbcast.lane.b32.xlu0 %v4279_v8, 312 }
  0xc3   : > { %307 = vbcast.lane.b32.xlu1 %v4270_v6, 320  ;;  %1501 = vbcast.lane.b32.xlu0 %v4315_v16, 296 }
  0xc7   : > { %906 = vbcast.lane.b32.xlu1 %v4288_v10, 312  ;;  %508 = vbcast.lane.b32.xlu0 %v4267_v5, 320 }
  0xc9   : > { %v4360_v19 = vpop.permute.xlu1 %476  ;;  %v4362_v20 = vpop.permute.xlu0 %275 }
  0xcb   : > { %1702 = vbcast.lane.b32.xlu1 %v4326_v18, 296  ;;  %1304 = vbcast.lane.b32.xlu0 %v4306_v14, 304 }
  0xcd   : > { %v4366_v21 = vpop.permute.xlu1 %480  ;;  %v4368_v22 = vpop.permute.xlu0 %279 }
  0xcf   : > { %1107 = vbcast.lane.b32.xlu1 %v4295_v12, 312  ;;  %709 = vbcast.lane.b32.xlu0 %v4279_v8, 320 }
  0xd1   : > { %v4372_v23 = vpop.permute.xlu1 %681  ;;  %v4374_v24 = vpop.permute.xlu0 %677 }
  0xd3   : > { %311 = vbcast.lane.b32.xlu1 %v4270_v6, 328  ;;  %1505 = vbcast.lane.b32.xlu0 %v4315_v16, 304 }
  0xd5   : > { %v4378_v25 = vpop.permute.xlu1 %484  ;;  %v4380_v26 = vpop.permute.xlu0 %283 }
  0xd7   : > { %910 = vbcast.lane.b32.xlu1 %v4288_v10, 320  ;;  %512 = vbcast.lane.b32.xlu0 %v4267_v5, 328 }
  0xd9   : > { %v4384_v27 = vpop.permute.xlu1 %882  ;;  %v4386_v28 = vpop.permute.xlu0 %878 }
  0xdb   : > { %1706 = vbcast.lane.b32.xlu1 %v4326_v18, 304  ;;  %1308 = vbcast.lane.b32.xlu0 %v4306_v14, 312 }
  0xdd   : > { %v4390_v29 = vpop.permute.xlu1 %1079  ;;  %v4392_v30 = vpop.permute.xlu0 %685 }
  0xdf   : > { %1111 = vbcast.lane.b32.xlu1 %v4295_v12, 320  ;;  %713 = vbcast.lane.b32.xlu0 %v4279_v8, 328 }
  0xe1   : > { %v4396_v31 = vpop.permute.xlu1 %287  ;;  %v4398_v32 = vpop.permute.xlu0 %1083 }
  0xe3   : > { %315 = vbcast.lane.b32.xlu1 %v4270_v6, 336  ;;  %1509 = vbcast.lane.b32.xlu0 %v4315_v16, 312 }
  0xe5   : > { %v4402_v33 = vpop.permute.xlu1 %886  ;;  %v4404_v34 = vpop.permute.xlu0 %488 }
  0xe7   : > { %914 = vbcast.lane.b32.xlu1 %v4288_v10, 328  ;;  %516 = vbcast.lane.b32.xlu0 %v4267_v5, 336 }
  0xe9   : > { %v4408_v35 = vpop.permute.xlu1 %1284  ;;  %v4410_v36 = vpop.permute.xlu0 %1280 }
  0xeb   : > { %1710 = vbcast.lane.b32.xlu1 %v4326_v18, 312  ;;  %1312 = vbcast.lane.b32.xlu0 %v4306_v14, 320 }
  0xed   : > { %v4414_v37 = vpop.permute.xlu1 %1087  ;;  %v4416_v38 = vpop.permute.xlu0 %689 }
  0xef   : > { %1115 = vbcast.lane.b32.xlu1 %v4295_v12, 328  ;;  %717 = vbcast.lane.b32.xlu0 %v4279_v8, 336 }
  0xf1   : > { %v4420_v39 = vpop.permute.xlu1 %1485  ;;  %v4422_v40 = vpop.permute.xlu0 %1481 }
  0xf3   : > { %319 = vbcast.lane.b32.xlu1 %v4270_v6, 344  ;;  %1513 = vbcast.lane.b32.xlu0 %v4315_v16, 320 }
  0xf5   : > { %v4426_v41 = vpop.permute.xlu1 %492  ;;  %v4428_v42 = vpop.permute.xlu0 %291 }
  0xf7   : > { %918 = vbcast.lane.b32.xlu1 %v4288_v10, 336  ;;  %520 = vbcast.lane.b32.xlu0 %v4267_v5, 344 }
  0xf9   : > { %v4432_v43 = vpop.permute.xlu1 %1288  ;;  %v4434_v44 = vpop.permute.xlu0 %890 }
  0xfb   : > { %1714 = vbcast.lane.b32.xlu1 %v4326_v18, 320  ;;  %1316 = vbcast.lane.b32.xlu0 %v4306_v14, 328 }
  0xfd   : > { %v4438_v45 = vpop.permute.xlu1 %1686  ;;  %v4440_v46 = vpop.permute.xlu0 %1682 }
  0xff   : > { %1119 = vbcast.lane.b32.xlu1 %v4295_v12, 336  ;;  %721 = vbcast.lane.b32.xlu0 %v4279_v8, 344 }
 0x101   : > { %v4444_v47 = vpop.permute.xlu1 %1091  ;;  %v4446_v48 = vpop.permute.xlu0 %693 }
 0x103   : > { %323 = vbcast.lane.b32.xlu1 %v4270_v6, 352  ;;  %1517 = vbcast.lane.b32.xlu0 %v4315_v16, 328 }
 0x105   : > { %v4450_v49 = vpop.permute.xlu1 %295  ;;  %v4452_v50 = vpop.permute.xlu0 %1489 }
 0x107   : > { %922 = vbcast.lane.b32.xlu1 %v4288_v10, 344  ;;  %524 = vbcast.lane.b32.xlu0 %v4267_v5, 352 }
 0x109   : > { %v4456_v51 = vpop.permute.xlu1 %894  ;;  %v4458_v52 = vpop.permute.xlu0 %496 }
 0x10b   : > { %1718 = vbcast.lane.b32.xlu1 %v4326_v18, 328  ;;  %1320 = vbcast.lane.b32.xlu0 %v4306_v14, 336 }
 0x10d   : > { %v4462_v53 = vpop.permute.xlu1 %1690  ;;  %v4464_v54 = vpop.permute.xlu0 %1292 }
 0x10f   : > { %1123 = vbcast.lane.b32.xlu1 %v4295_v12, 344  ;;  %725 = vbcast.lane.b32.xlu0 %v4279_v8, 352 }
 0x111   : > { %v4468_v55 = vpop.permute.xlu1 %1095  ;;  %v4470_v56 = vpop.permute.xlu0 %697 }
 0x113   : > { %327 = vbcast.lane.b32.xlu1 %v4270_v6, 360  ;;  %1521 = vbcast.lane.b32.xlu0 %v4315_v16, 336 }
 0x115   : > { %v4474_v57 = vpop.permute.xlu1 %299  ;;  %v4476_v58 = vpop.permute.xlu0 %1493 }
 0x117   : > { %926 = vbcast.lane.b32.xlu1 %v4288_v10, 352  ;;  %528 = vbcast.lane.b32.xlu0 %v4267_v5, 360 }
 0x119   : > { %v4480_v59 = vpop.permute.xlu1 %898  ;;  %v4482_v60 = vpop.permute.xlu0 %500 }
 0x11b   : > { %1722 = vbcast.lane.b32.xlu1 %v4326_v18, 336  ;;  %1324 = vbcast.lane.b32.xlu0 %v4306_v14, 344 }
 0x11d   : > { %v4486_v61 = vpop.permute.xlu1 %1694  ;;  %v4488_v62 = vpop.permute.xlu0 %1296 }
 0x11e   : > { %6855 = vst [vmem:[#allocation14_spill] sm:$0xff] %v4486_v61  ;;  %6856 = vst [vmem:[#allocation15_spill] sm:$0xff] %v4488_v62 }
 0x11f   : > { %1127 = vbcast.lane.b32.xlu1 %v4295_v12, 352  ;;  %729 = vbcast.lane.b32.xlu0 %v4279_v8, 360 }
 0x121   : > { %v4492_v63 = vpop.permute.xlu1 %1099  ;;  %v4494_v1 = vpop.permute.xlu0 %701 }
 0x122   : > { %6857 = vst [vmem:[#allocation16_spill] sm:$0xff] %v4492_v63  ;;  %6858 = vst [vmem:[#allocation17_spill] sm:$0xff] %v4494_v1 }
 0x123   : > { %331 = vbcast.lane.b32.xlu1 %v4270_v6, 368  ;;  %1525 = vbcast.lane.b32.xlu0 %v4315_v16, 344 }
 0x125   : > { %v4498_v4 = vpop.permute.xlu1 %303  ;;  %v4500_v0 = vpop.permute.xlu0 %1497 }
 0x126   : > { %6859 = vst [vmem:[#allocation18_spill] sm:$0xff] %v4498_v4  ;;  %6860 = vst [vmem:[#allocation19_spill] sm:$0xff] %v4500_v0 }
 0x127   : > { %930 = vbcast.lane.b32.xlu1 %v4288_v10, 360  ;;  %532 = vbcast.lane.b32.xlu0 %v4267_v5, 368 }
 0x129   : > { %v4504_v62 = vpop.permute.xlu1 %902  ;;  %v4506_v61 = vpop.permute.xlu0 %504 }
 0x12a   : > { %6861 = vst [vmem:[#allocation20_spill] sm:$0xff] %v4504_v62  ;;  %6862 = vst [vmem:[#allocation21_spill] sm:$0xff] %v4506_v61 }
 0x12b   : > { %1726 = vbcast.lane.b32.xlu1 %v4326_v18, 344  ;;  %1328 = vbcast.lane.b32.xlu0 %v4306_v14, 352 }
 0x12d   : > { %v4510_v1 = vpop.permute.xlu1 %1698  ;;  %v4512_v63 = vpop.permute.xlu0 %1300 }
 0x12e   : > { %6863 = vst [vmem:[#allocation22_spill] sm:$0xff] %v4510_v1  ;;  %6864 = vst [vmem:[#allocation23_spill] sm:$0xff] %v4512_v63 }
 0x12f   : > { %1131 = vbcast.lane.b32.xlu1 %v4295_v12, 360  ;;  %733 = vbcast.lane.b32.xlu0 %v4279_v8, 368 }
 0x131   : > { %v4516_v0 = vpop.permute.xlu1 %1103  ;;  %v4518_v4 = vpop.permute.xlu0 %705 }
 0x132   : > { %6865 = vst [vmem:[#allocation24_spill] sm:$0xff] %v4516_v0  ;;  %6866 = vst [vmem:[#allocation25_spill] sm:$0xff] %v4518_v4  ;;  %v4535_v4 = vld [vmem:[%s4250_s9 + $0x8] sm:$0xff] }
 0x133   : > { %335 = vbcast.lane.b32.xlu1 %v4270_v6, 376  ;;  %1529 = vbcast.lane.b32.xlu0 %v4315_v16, 352 }
 0x135   : > { %v4522_v61 = vpop.permute.xlu1 %307  ;;  %v4524_v62 = vpop.permute.xlu0 %1501 }
 0x136   : > { %6867 = vst [vmem:[#allocation26_spill] sm:$0xff] %v4522_v61  ;;  %6868 = vst [vmem:[#allocation27_spill] sm:$0xff] %v4524_v62 }
 0x137   : > { %934 = vbcast.lane.b32.xlu1 %v4288_v10, 368  ;;  %536 = vbcast.lane.b32.xlu0 %v4267_v5, 376  ;;  %v4545_v5 = vrot.slane %v4535_v4, %v4263_v3 }
 0x139   : > { %v4528_v63 = vpop.permute.xlu1 %906  ;;  %v4530_v1 = vpop.permute.xlu0 %508 }
 0x13a   : > { %6869 = vst [vmem:[#allocation28_spill] sm:$0xff] %v4528_v63  ;;  %6870 = vst [vmem:[#allocation29_spill] sm:$0xff] %v4530_v1 }
 0x13b   : > { %1730 = vbcast.lane.b32.xlu1 %v4326_v18, 352  ;;  %1332 = vbcast.lane.b32.xlu0 %v4306_v14, 360 }
 0x13d   : > { %v4537_v6 = vpop.permute.xlu1 %1702  ;;  %v4539_v0 = vpop.permute.xlu0 %1304 }
 0x13e   : > { %6871 = vst [vmem:[#allocation30_spill] sm:$0xff] %v4537_v6  ;;  %6872 = vst [vmem:[#allocation31_spill] sm:$0xff] %v4539_v0  ;;  %v4555_v6 = vrot.slane %v4535_v4, %v4261_v2 }
 0x13f   : > { %1135 = vbcast.lane.b32.xlu1 %v4295_v12, 368  ;;  %737 = vbcast.lane.b32.xlu0 %v4279_v8, 376 }
 0x141   : > { %v4547_v63 = vpop.permute.xlu1 %1107  ;;  %v4549_v1 = vpop.permute.xlu0 %709 }
 0x142   : > { %6873 = vst [vmem:[#allocation32_spill] sm:$0xff] %v4547_v63  ;;  %6874 = vst [vmem:[#allocation33_spill] sm:$0xff] %v4549_v1  ;;  %v4571_v1 = vrot.slane %v4535_v4, %v4274_v7 }
 0x143   : > { %342 = vbcast.lane.b32.xlu1 %v4545_v5, 256  ;;  %1533 = vbcast.lane.b32.xlu0 %v4315_v16, 360 }
 0x145   : > { %v4557_v0 = vpop.permute.xlu1 %311  ;;  %v4559_v62 = vpop.permute.xlu0 %1505 }
 0x146   : > { %6875 = vst [vmem:[#allocation34_spill] sm:$0xff] %v4557_v0  ;;  %6876 = vst [vmem:[#allocation35_spill] sm:$0xff] %v4559_v62 }
 0x147   : > { %938 = vbcast.lane.b32.xlu1 %v4288_v10, 376  ;;  %543 = vbcast.lane.b32.xlu0 %v4555_v6, 256 }
 0x149   : > { %v4563_v8 = vpop.permute.xlu1 %910  ;;  %v4565_v63 = vpop.permute.xlu0 %512 }
 0x14a   : > { %6877 = vst [vmem:[#allocation36_spill] sm:$0xff] %v4563_v8  ;;  %6878 = vst [vmem:[#allocation37_spill] sm:$0xff] %v4565_v63  ;;  %v4587_v63 = vrot.slane %v4535_v4, %v4283_v9 }
 0x14b   : > { %1734 = vbcast.lane.b32.xlu1 %v4326_v18, 360  ;;  %1336 = vbcast.lane.b32.xlu0 %v4306_v14, 368 }
 0x14d   : > { %v4573_v61 = vpop.permute.xlu1 %1706  ;;  %v4575_v0 = vpop.permute.xlu0 %1308 }
 0x14e   : > { %6879 = vst [vmem:[#allocation38_spill] sm:$0xff] %v4573_v61  ;;  %6880 = vst [vmem:[#allocation39_spill] sm:$0xff] %v4575_v0 }
 0x14f   : > { %1139 = vbcast.lane.b32.xlu1 %v4295_v12, 376  ;;  %744 = vbcast.lane.b32.xlu0 %v4571_v1, 256 }
 0x151   : > { %v4579_v10 = vpop.permute.xlu1 %1111  ;;  %v4581_v8 = vpop.permute.xlu0 %713 }
 0x152   : > { %6881 = vst [vmem:[#allocation40_spill] sm:$0xff] %v4579_v10  ;;  %6882 = vst [vmem:[#allocation41_spill] sm:$0xff] %v4581_v8  ;;  %v4603_v8 = vrot.slane %v4535_v4, %v4290_v11 }
 0x153   : > { %346 = vbcast.lane.b32.xlu1 %v4545_v5, 264  ;;  %1537 = vbcast.lane.b32.xlu0 %v4315_v16, 368 }
 0x155   : > { %v4589_v62 = vpop.permute.xlu1 %315  ;;  %v4591_v61 = vpop.permute.xlu0 %1509 }
 0x156   : > { %6883 = vst [vmem:[#allocation42_spill] sm:$0xff] %v4589_v62  ;;  %6884 = vst [vmem:[#allocation43_spill] sm:$0xff] %v4591_v61 }
 0x157   : > { %945 = vbcast.lane.b32.xlu1 %v4587_v63, 256  ;;  %547 = vbcast.lane.b32.xlu0 %v4555_v6, 264 }
 0x159   : > { %v4595_v12 = vpop.permute.xlu1 %914  ;;  %v4597_v10 = vpop.permute.xlu0 %516 }
 0x15a   : > { %6885 = vst [vmem:[#allocation44_spill] sm:$0xff] %v4595_v12  ;;  %6886 = vst [vmem:[#allocation45_spill] sm:$0xff] %v4597_v10 }
 0x15b   : > { %1738 = vbcast.lane.b32.xlu1 %v4326_v18, 368  ;;  %1340 = vbcast.lane.b32.xlu0 %v4306_v14, 376 }
 0x15d   : > { %v4605_v0 = vpop.permute.xlu1 %1710  ;;  %v4607_v62 = vpop.permute.xlu0 %1312 }
 0x15e   : > { %6887 = vst [vmem:[#allocation46_spill] sm:$0xff] %v4605_v0  ;;  %6888 = vst [vmem:[#allocation47_spill] sm:$0xff] %v4607_v62  ;;  %v4625_v62 = vrot.slane %v4535_v4, %v4301_v13 }
 0x15f   : > { %1146 = vbcast.lane.b32.xlu1 %v4603_v8, 256  ;;  %748 = vbcast.lane.b32.xlu0 %v4571_v1, 264 }
 0x161   : > { %v4611_v61 = vpop.permute.xlu1 %1115  ;;  %v4613_v12 = vpop.permute.xlu0 %717 }
 0x162   : > { %6889 = vst [vmem:[#allocation48_spill] sm:$0xff] %v4611_v61  ;;  %6890 = vst [vmem:[#allocation49_spill] sm:$0xff] %v4613_v12 }
 0x163   : > { %350 = vbcast.lane.b32.xlu1 %v4545_v5, 272  ;;  %1541 = vbcast.lane.b32.xlu0 %v4315_v16, 376 }
 0x165   : > { %v4617_v14 = vpop.permute.xlu1 %319  ;;  %v4619_v10 = vpop.permute.xlu0 %1513 }
 0x166   : > { %6891 = vst [vmem:[#allocation50_spill] sm:$0xff] %v4617_v14  ;;  %6892 = vst [vmem:[#allocation51_spill] sm:$0xff] %v4619_v10  ;;  %v4641_v10 = vrot.slane %v4535_v4, %v4310_v15 }
 0x167   : > { %949 = vbcast.lane.b32.xlu1 %v4587_v63, 264  ;;  %551 = vbcast.lane.b32.xlu0 %v4555_v6, 272 }
 0x169   : > { %v4627_v0 = vpop.permute.xlu1 %918  ;;  %v4629_v61 = vpop.permute.xlu0 %520 }
 0x16a   : > { %6893 = vst [vmem:[#allocation52_spill] sm:$0xff] %v4627_v0  ;;  %6894 = vst [vmem:[#allocation53_spill] sm:$0xff] %v4629_v61 }
 0x16b   : > { %1742 = vbcast.lane.b32.xlu1 %v4326_v18, 376  ;;  %1347 = vbcast.lane.b32.xlu0 %v4625_v62, 256 }
 0x16d   : > { %v4633_v16 = vpop.permute.xlu1 %1714  ;;  %v4635_v14 = vpop.permute.xlu0 %1316 }
 0x16e   : > { %6895 = vst [vmem:[#allocation54_spill] sm:$0xff] %v4633_v16  ;;  %6896 = vst [vmem:[#allocation55_spill] sm:$0xff] %v4635_v14  ;;  %v4657_v14 = vrot.slane %v4535_v4, %v4321_v17 }
 0x16f   : > { %1150 = vbcast.lane.b32.xlu1 %v4603_v8, 264  ;;  %752 = vbcast.lane.b32.xlu0 %v4571_v1, 272 }
 0x171   : > { %v4643_v12 = vpop.permute.xlu1 %1119  ;;  %v4645_v0 = vpop.permute.xlu0 %721 }
 0x172   : > { %6897 = vst [vmem:[#allocation56_spill] sm:$0xff] %v4643_v12  ;;  %6898 = vst [vmem:[#allocation57_spill] sm:$0xff] %v4645_v0 }
 0x173   : > { %354 = vbcast.lane.b32.xlu1 %v4545_v5, 280  ;;  %1548 = vbcast.lane.b32.xlu0 %v4641_v10, 256 }
 0x175   : > { %v4649_v18 = vpop.permute.xlu1 %323  ;;  %v4651_v16 = vpop.permute.xlu0 %1517 }
 0x176   : > { %6899 = vst [vmem:[#allocation58_spill] sm:$0xff] %v4649_v18  ;;  %6900 = vst [vmem:[#allocation59_spill] sm:$0xff] %v4651_v16 }
 0x177   : > { %953 = vbcast.lane.b32.xlu1 %v4587_v63, 272  ;;  %555 = vbcast.lane.b32.xlu0 %v4555_v6, 280 }
 0x179   : > { %v4659_v61 = vpop.permute.xlu1 %922  ;;  %v4661_v12 = vpop.permute.xlu0 %524 }
 0x17a   : > { %6901 = vst [vmem:[#allocation60_spill] sm:$0xff] %v4659_v61  ;;  %6902 = vst [vmem:[#allocation61_spill] sm:$0xff] %v4661_v12 }
 0x17b   : > { %1749 = vbcast.lane.b32.xlu1 %v4657_v14, 256  ;;  %1351 = vbcast.lane.b32.xlu0 %v4625_v62, 264 }
 0x17d   : > { %v4665_v0 = vpop.permute.xlu1 %1718  ;;  %v4667_v18 = vpop.permute.xlu0 %1320 }
 0x17e   : > { %6903 = vst [vmem:[#allocation62_spill] sm:$0xff] %v4665_v0  ;;  %6904 = vst [vmem:[#allocation63_spill] sm:$0xff] %v4667_v18 }
 0x17f   : > { %1154 = vbcast.lane.b32.xlu1 %v4603_v8, 272  ;;  %756 = vbcast.lane.b32.xlu0 %v4571_v1, 280 }
 0x181   : > { %v4671_v16 = vpop.permute.xlu1 %1123  ;;  %v4673_v4 = vpop.permute.xlu0 %725 }
 0x182   : > { %6905 = vst [vmem:[#allocation64_spill] sm:$0xff] %v4671_v16  ;;  %6906 = vst [vmem:[#allocation65_spill] sm:$0xff] %v4673_v4 }
 0x183   : > { %358 = vbcast.lane.b32.xlu1 %v4545_v5, 288  ;;  %1552 = vbcast.lane.b32.xlu0 %v4641_v10, 264 }
 0x185   : > { %v4677_v12 = vpop.permute.xlu1 %327  ;;  %v4679_v61 = vpop.permute.xlu0 %1521 }
 0x186   : > { %6907 = vst [vmem:[#allocation66_spill] sm:$0xff] %v4677_v12  ;;  %6908 = vst [vmem:[#allocation67_spill] sm:$0xff] %v4679_v61 }
 0x187   : > { %957 = vbcast.lane.b32.xlu1 %v4587_v63, 280  ;;  %559 = vbcast.lane.b32.xlu0 %v4555_v6, 288 }
 0x189   : > { %v4683_v18 = vpop.permute.xlu1 %926  ;;  %v4685_v0 = vpop.permute.xlu0 %528 }
 0x18a   : > { %6909 = vst [vmem:[#allocation68_spill] sm:$0xff] %v4683_v18  ;;  %6910 = vst [vmem:[#allocation69_spill] sm:$0xff] %v4685_v0 }
 0x18b   : > { %1753 = vbcast.lane.b32.xlu1 %v4657_v14, 264  ;;  %1355 = vbcast.lane.b32.xlu0 %v4625_v62, 272 }
 0x18d   : > { %v4689_v4 = vpop.permute.xlu1 %1722  ;;  %v4691_v16 = vpop.permute.xlu0 %1324 }
 0x18e   : > { %6911 = vst [vmem:[#allocation70_spill] sm:$0xff] %v4689_v4  ;;  %6912 = vst [vmem:[#allocation71_spill] sm:$0xff] %v4691_v16 }
 0x18f   : > { %1158 = vbcast.lane.b32.xlu1 %v4603_v8, 280  ;;  %760 = vbcast.lane.b32.xlu0 %v4571_v1, 288 }
 0x191   : > { %v4695_v61 = vpop.permute.xlu1 %1127  ;;  %v4697_v12 = vpop.permute.xlu0 %729 }
 0x192   : > { %6913 = vst [vmem:[#allocation72_spill] sm:$0xff] %v4695_v61  ;;  %6914 = vst [vmem:[#allocation73_spill] sm:$0xff] %v4697_v12 }
 0x193   : > { %362 = vbcast.lane.b32.xlu1 %v4545_v5, 296  ;;  %1556 = vbcast.lane.b32.xlu0 %v4641_v10, 272 }
 0x195   : > { %v4701_v0 = vpop.permute.xlu1 %331  ;;  %v4703_v18 = vpop.permute.xlu0 %1525 }
 0x196   : > { %6915 = vst [vmem:[#allocation74_spill] sm:$0xff] %v4701_v0  ;;  %6916 = vst [vmem:[#allocation75_spill] sm:$0xff] %v4703_v18 }
 0x197   : > { %961 = vbcast.lane.b32.xlu1 %v4587_v63, 288  ;;  %563 = vbcast.lane.b32.xlu0 %v4555_v6, 296 }
 0x199   : > { %v4707_v16 = vpop.permute.xlu1 %930  ;;  %v4709_v4 = vpop.permute.xlu0 %532 }
 0x19a   : > { %6917 = vst [vmem:[#allocation76_spill] sm:$0xff] %v4707_v16  ;;  %6918 = vst [vmem:[#allocation77_spill] sm:$0xff] %v4709_v4 }
 0x19b   : > { %1757 = vbcast.lane.b32.xlu1 %v4657_v14, 272  ;;  %1359 = vbcast.lane.b32.xlu0 %v4625_v62, 280 }
 0x19d   : > { %v4713_v12 = vpop.permute.xlu1 %1726  ;;  %v4715_v61 = vpop.permute.xlu0 %1328 }
 0x19e   : > { %6919 = vst [vmem:[#allocation78_spill] sm:$0xff] %v4713_v12  ;;  %6920 = vst [vmem:[#allocation79_spill] sm:$0xff] %v4715_v61 }
 0x19f   : > { %1162 = vbcast.lane.b32.xlu1 %v4603_v8, 288  ;;  %764 = vbcast.lane.b32.xlu0 %v4571_v1, 296 }
 0x1a1   : > { %v4719_v18 = vpop.permute.xlu1 %1131  ;;  %v4721_v0 = vpop.permute.xlu0 %733 }
 0x1a2   : > { %6921 = vst [vmem:[#allocation80_spill] sm:$0xff] %v4719_v18  ;;  %6922 = vst [vmem:[#allocation81_spill] sm:$0xff] %v4721_v0 }
 0x1a3   : > { %366 = vbcast.lane.b32.xlu1 %v4545_v5, 304  ;;  %1560 = vbcast.lane.b32.xlu0 %v4641_v10, 280 }
 0x1a5   : > { %v4725_v4 = vpop.permute.xlu1 %335  ;;  %v4727_v16 = vpop.permute.xlu0 %1529 }
 0x1a6   : > { %6923 = vst [vmem:[#allocation82_spill] sm:$0xff] %v4725_v4  ;;  %6924 = vst [vmem:[#allocation83_spill] sm:$0xff] %v4727_v16 }
 0x1a7   : > { %965 = vbcast.lane.b32.xlu1 %v4587_v63, 296  ;;  %567 = vbcast.lane.b32.xlu0 %v4555_v6, 304 }
 0x1a9   : > { %v4731_v61 = vpop.permute.xlu1 %934  ;;  %v4733_v12 = vpop.permute.xlu0 %536 }
 0x1aa   : > { %6925 = vst [vmem:[#allocation84_spill] sm:$0xff] %v4731_v61  ;;  %6926 = vst [vmem:[#allocation85_spill] sm:$0xff] %v4733_v12 }
 0x1ab   : > { %1761 = vbcast.lane.b32.xlu1 %v4657_v14, 280  ;;  %1363 = vbcast.lane.b32.xlu0 %v4625_v62, 288 }
 0x1ad   : > { %v4737_v0 = vpop.permute.xlu1 %1730  ;;  %v4739_v18 = vpop.permute.xlu0 %1332 }
 0x1ae   : > { %6927 = vst [vmem:[#allocation86_spill] sm:$0xff] %v4737_v0  ;;  %6928 = vst [vmem:[#allocation87_spill] sm:$0xff] %v4739_v18 }
 0x1af   : > { %1166 = vbcast.lane.b32.xlu1 %v4603_v8, 296  ;;  %768 = vbcast.lane.b32.xlu0 %v4571_v1, 304 }
 0x1b1   : > { %v4743_v16 = vpop.permute.xlu1 %1135  ;;  %v4745_v4 = vpop.permute.xlu0 %737 }
 0x1b2   : > { %6929 = vst [vmem:[#allocation88_spill] sm:$0xff] %v4743_v16  ;;  %6930 = vst [vmem:[#allocation89_spill] sm:$0xff] %v4745_v4 }
 0x1b3   : > { %370 = vbcast.lane.b32.xlu1 %v4545_v5, 312  ;;  %1564 = vbcast.lane.b32.xlu0 %v4641_v10, 288 }
 0x1b5   : > { %v4749_v12 = vpop.permute.xlu1 %342  ;;  %v4751_v61 = vpop.permute.xlu0 %1533 }
 0x1b6   : > { %6931 = vst [vmem:[#allocation90_spill] sm:$0xff] %v4749_v12  ;;  %6932 = vst [vmem:[#allocation91_spill] sm:$0xff] %v4751_v61 }
 0x1b7   : > { %969 = vbcast.lane.b32.xlu1 %v4587_v63, 304  ;;  %571 = vbcast.lane.b32.xlu0 %v4555_v6, 312 }
 0x1b9   : > { %v4755_v18 = vpop.permute.xlu1 %938  ;;  %v4757_v0 = vpop.permute.xlu0 %543 }
 0x1ba   : > { %6933 = vst [vmem:[#allocation92_spill] sm:$0xff] %v4755_v18  ;;  %6934 = vst [vmem:[#allocation93_spill] sm:$0xff] %v4757_v0 }
 0x1bb   : > { %1765 = vbcast.lane.b32.xlu1 %v4657_v14, 288  ;;  %1367 = vbcast.lane.b32.xlu0 %v4625_v62, 296 }
 0x1bd   : > { %v4761_v4 = vpop.permute.xlu1 %1734  ;;  %v4763_v16 = vpop.permute.xlu0 %1336 }
 0x1be   : > { %6935 = vst [vmem:[#allocation94_spill] sm:$0xff] %v4761_v4  ;;  %6936 = vst [vmem:[#allocation95_spill] sm:$0xff] %v4763_v16 }
 0x1bf   : > { %1170 = vbcast.lane.b32.xlu1 %v4603_v8, 304  ;;  %772 = vbcast.lane.b32.xlu0 %v4571_v1, 312 }
 0x1c1   : > { %v4767_v61 = vpop.permute.xlu1 %1139  ;;  %v4769_v12 = vpop.permute.xlu0 %744 }
 0x1c2   : > { %6937 = vst [vmem:[#allocation96_spill] sm:$0xff] %v4767_v61  ;;  %6938 = vst [vmem:[#allocation97_spill] sm:$0xff] %v4769_v12 }
 0x1c3   : > { %374 = vbcast.lane.b32.xlu1 %v4545_v5, 320  ;;  %1568 = vbcast.lane.b32.xlu0 %v4641_v10, 296 }
 0x1c5   : > { %v4773_v0 = vpop.permute.xlu1 %346  ;;  %v4775_v18 = vpop.permute.xlu0 %1537 }
 0x1c6   : > { %6939 = vst [vmem:[#allocation98_spill] sm:$0xff] %v4773_v0  ;;  %6940 = vst [vmem:[#allocation99_spill] sm:$0xff] %v4775_v18 }
 0x1c7   : > { %973 = vbcast.lane.b32.xlu1 %v4587_v63, 312  ;;  %575 = vbcast.lane.b32.xlu0 %v4555_v6, 320 }
 0x1c9   : > { %v4779_v16 = vpop.permute.xlu1 %945  ;;  %v4781_v4 = vpop.permute.xlu0 %547 }
 0x1ca   : > { %6941 = vst [vmem:[#allocation100_spill] sm:$0xff] %v4779_v16  ;;  %6942 = vst [vmem:[#allocation101_spill] sm:$0xff] %v4781_v4 }
 0x1cb   : > { %1769 = vbcast.lane.b32.xlu1 %v4657_v14, 296  ;;  %1371 = vbcast.lane.b32.xlu0 %v4625_v62, 304 }
 0x1cd   : > { %v4785_v12 = vpop.permute.xlu1 %1738  ;;  %v4787_v61 = vpop.permute.xlu0 %1340 }
 0x1ce   : > { %6943 = vst [vmem:[#allocation102_spill] sm:$0xff] %v4785_v12  ;;  %6944 = vst [vmem:[#allocation103_spill] sm:$0xff] %v4787_v61 }
 0x1cf   : > { %1174 = vbcast.lane.b32.xlu1 %v4603_v8, 312  ;;  %776 = vbcast.lane.b32.xlu0 %v4571_v1, 320 }
 0x1d1   : > { %v4791_v18 = vpop.permute.xlu1 %1146  ;;  %v4793_v0 = vpop.permute.xlu0 %748 }
 0x1d2   : > { %6945 = vst [vmem:[#allocation104_spill] sm:$0xff] %v4791_v18  ;;  %6946 = vst [vmem:[#allocation105_spill] sm:$0xff] %v4793_v0 }
 0x1d3   : > { %378 = vbcast.lane.b32.xlu1 %v4545_v5, 328  ;;  %1572 = vbcast.lane.b32.xlu0 %v4641_v10, 304 }
 0x1d5   : > { %v4797_v4 = vpop.permute.xlu1 %350  ;;  %v4799_v16 = vpop.permute.xlu0 %1541 }
 0x1d6   : > { %6947 = vst [vmem:[#allocation106_spill] sm:$0xff] %v4797_v4  ;;  %6948 = vst [vmem:[#allocation107_spill] sm:$0xff] %v4799_v16 }
 0x1d7   : > { %977 = vbcast.lane.b32.xlu1 %v4587_v63, 320  ;;  %579 = vbcast.lane.b32.xlu0 %v4555_v6, 328 }
 0x1d9   : > { %v4803_v61 = vpop.permute.xlu1 %949  ;;  %v4805_v12 = vpop.permute.xlu0 %551 }
 0x1da   : > { %6949 = vst [vmem:[#allocation108_spill] sm:$0xff] %v4803_v61  ;;  %6950 = vst [vmem:[#allocation109_spill] sm:$0xff] %v4805_v12 }
 0x1db   : > { %1773 = vbcast.lane.b32.xlu1 %v4657_v14, 304  ;;  %1375 = vbcast.lane.b32.xlu0 %v4625_v62, 312 }
 0x1dd   : > { %v4809_v0 = vpop.permute.xlu1 %1742  ;;  %v4811_v18 = vpop.permute.xlu0 %1347 }
 0x1de   : > { %6951 = vst [vmem:[#allocation110_spill] sm:$0xff] %v4809_v0  ;;  %6952 = vst [vmem:[#allocation111_spill] sm:$0xff] %v4811_v18 }
 0x1df   : > { %1178 = vbcast.lane.b32.xlu1 %v4603_v8, 320  ;;  %780 = vbcast.lane.b32.xlu0 %v4571_v1, 328 }
 0x1e1   : > { %v4815_v16 = vpop.permute.xlu1 %1150  ;;  %v4817_v4 = vpop.permute.xlu0 %752 }
 0x1e2   : > { %6953 = vst [vmem:[#allocation112_spill] sm:$0xff] %v4815_v16  ;;  %6954 = vst [vmem:[#allocation113_spill] sm:$0xff] %v4817_v4 }
 0x1e3   : > { %382 = vbcast.lane.b32.xlu1 %v4545_v5, 336  ;;  %1576 = vbcast.lane.b32.xlu0 %v4641_v10, 312 }
 0x1e5   : > { %v4821_v12 = vpop.permute.xlu1 %354  ;;  %v4823_v61 = vpop.permute.xlu0 %1548 }
 0x1e6   : > { %6955 = vst [vmem:[#allocation114_spill] sm:$0xff] %v4821_v12  ;;  %6956 = vst [vmem:[#allocation115_spill] sm:$0xff] %v4823_v61 }
 0x1e7   : > { %981 = vbcast.lane.b32.xlu1 %v4587_v63, 328  ;;  %583 = vbcast.lane.b32.xlu0 %v4555_v6, 336 }
 0x1e9   : > { %v4827_v18 = vpop.permute.xlu1 %953  ;;  %v4829_v0 = vpop.permute.xlu0 %555 }
 0x1ea   : > { %6957 = vst [vmem:[#allocation116_spill] sm:$0xff] %v4827_v18  ;;  %6958 = vst [vmem:[#allocation117_spill] sm:$0xff] %v4829_v0 }
 0x1eb   : > { %1777 = vbcast.lane.b32.xlu1 %v4657_v14, 312  ;;  %1379 = vbcast.lane.b32.xlu0 %v4625_v62, 320 }
 0x1ed   : > { %v4833_v4 = vpop.permute.xlu1 %1749  ;;  %v4835_v16 = vpop.permute.xlu0 %1351 }
 0x1ee   : > { %6959 = vst [vmem:[#allocation118_spill] sm:$0xff] %v4833_v4  ;;  %6960 = vst [vmem:[#allocation119_spill] sm:$0xff] %v4835_v16 }
 0x1ef   : > { %1182 = vbcast.lane.b32.xlu1 %v4603_v8, 328  ;;  %784 = vbcast.lane.b32.xlu0 %v4571_v1, 336 }
 0x1f1   : > { %v4839_v61 = vpop.permute.xlu1 %1154  ;;  %v4841_v12 = vpop.permute.xlu0 %756 }
 0x1f2   : > { %6961 = vst [vmem:[#allocation120_spill] sm:$0xff] %v4839_v61  ;;  %6962 = vst [vmem:[#allocation121_spill] sm:$0xff] %v4841_v12 }
 0x1f3   : > { %386 = vbcast.lane.b32.xlu1 %v4545_v5, 344  ;;  %1580 = vbcast.lane.b32.xlu0 %v4641_v10, 320 }
 0x1f5   : > { %v4845_v0 = vpop.permute.xlu1 %358  ;;  %v4847_v18 = vpop.permute.xlu0 %1552 }
 0x1f6   : > { %6963 = vst [vmem:[#allocation122_spill] sm:$0xff] %v4845_v0  ;;  %6964 = vst [vmem:[#allocation123_spill] sm:$0xff] %v4847_v18 }
 0x1f7   : > { %985 = vbcast.lane.b32.xlu1 %v4587_v63, 336  ;;  %587 = vbcast.lane.b32.xlu0 %v4555_v6, 344 }
 0x1f9   : > { %v4851_v16 = vpop.permute.xlu1 %957  ;;  %v4853_v4 = vpop.permute.xlu0 %559 }
 0x1fa   : > { %6965 = vst [vmem:[#allocation124_spill] sm:$0xff] %v4851_v16  ;;  %6966 = vst [vmem:[#allocation125_spill] sm:$0xff] %v4853_v4 }
 0x1fb   : > { %1781 = vbcast.lane.b32.xlu1 %v4657_v14, 320  ;;  %1383 = vbcast.lane.b32.xlu0 %v4625_v62, 328 }
 0x1fd   : > { %v4857_v12 = vpop.permute.xlu1 %1753  ;;  %v4859_v61 = vpop.permute.xlu0 %1355 }
 0x1fe   : > { %6967 = vst [vmem:[#allocation126_spill] sm:$0xff] %v4857_v12  ;;  %6968 = vst [vmem:[#allocation127_spill] sm:$0xff] %v4859_v61 }
 0x1ff   : > { %1186 = vbcast.lane.b32.xlu1 %v4603_v8, 336  ;;  %788 = vbcast.lane.b32.xlu0 %v4571_v1, 344 }
 0x201   : > { %v4863_v18 = vpop.permute.xlu1 %1158  ;;  %v4865_v0 = vpop.permute.xlu0 %760 }
 0x202   : > { %6969 = vst [vmem:[#allocation128_spill] sm:$0xff] %v4863_v18  ;;  %6970 = vst [vmem:[#allocation129_spill] sm:$0xff] %v4865_v0 }
 0x203   : > { %390 = vbcast.lane.b32.xlu1 %v4545_v5, 352  ;;  %1584 = vbcast.lane.b32.xlu0 %v4641_v10, 328 }
 0x205   : > { %v4869_v4 = vpop.permute.xlu1 %362  ;;  %v4871_v16 = vpop.permute.xlu0 %1556 }
 0x206   : > { %6971 = vst [vmem:[#allocation130_spill] sm:$0xff] %v4869_v4  ;;  %6972 = vst [vmem:[#allocation131_spill] sm:$0xff] %v4871_v16 }
 0x207   : > { %989 = vbcast.lane.b32.xlu1 %v4587_v63, 344  ;;  %591 = vbcast.lane.b32.xlu0 %v4555_v6, 352 }
 0x209   : > { %v4875_v61 = vpop.permute.xlu1 %961  ;;  %v4877_v12 = vpop.permute.xlu0 %563 }
 0x20a   : > { %6973 = vst [vmem:[#allocation132_spill] sm:$0xff] %v4875_v61  ;;  %6974 = vst [vmem:[#allocation133_spill] sm:$0xff] %v4877_v12 }
 0x20b   : > { %1785 = vbcast.lane.b32.xlu1 %v4657_v14, 328  ;;  %1387 = vbcast.lane.b32.xlu0 %v4625_v62, 336 }
 0x20d   : > { %v4881_v0 = vpop.permute.xlu1 %1757  ;;  %v4883_v18 = vpop.permute.xlu0 %1359 }
 0x20e   : > { %6975 = vst [vmem:[#allocation134_spill] sm:$0xff] %v4881_v0  ;;  %6976 = vst [vmem:[#allocation135_spill] sm:$0xff] %v4883_v18 }
 0x20f   : > { %1190 = vbcast.lane.b32.xlu1 %v4603_v8, 344  ;;  %792 = vbcast.lane.b32.xlu0 %v4571_v1, 352 }
 0x211   : > { %v4887_v16 = vpop.permute.xlu1 %1162  ;;  %v4889_v4 = vpop.permute.xlu0 %764 }
 0x212   : > { %6977 = vst [vmem:[#allocation136_spill] sm:$0xff] %v4887_v16  ;;  %6978 = vst [vmem:[#allocation137_spill] sm:$0xff] %v4889_v4 }
 0x213   : > { %394 = vbcast.lane.b32.xlu1 %v4545_v5, 360  ;;  %1588 = vbcast.lane.b32.xlu0 %v4641_v10, 336 }
 0x215   : > { %v4893_v12 = vpop.permute.xlu1 %366  ;;  %v4895_v61 = vpop.permute.xlu0 %1560 }
 0x216   : > { %6979 = vst [vmem:[#allocation138_spill] sm:$0xff] %v4893_v12  ;;  %6980 = vst [vmem:[#allocation139_spill] sm:$0xff] %v4895_v61 }
 0x217   : > { %993 = vbcast.lane.b32.xlu1 %v4587_v63, 352  ;;  %595 = vbcast.lane.b32.xlu0 %v4555_v6, 360 }
 0x219   : > { %v4899_v18 = vpop.permute.xlu1 %965  ;;  %v4901_v0 = vpop.permute.xlu0 %567 }
 0x21a   : > { %6981 = vst [vmem:[#allocation140_spill] sm:$0xff] %v4899_v18  ;;  %6982 = vst [vmem:[#allocation141_spill] sm:$0xff] %v4901_v0 }
 0x21b   : > { %1789 = vbcast.lane.b32.xlu1 %v4657_v14, 336  ;;  %1391 = vbcast.lane.b32.xlu0 %v4625_v62, 344 }
 0x21d   : > { %v4905_v4 = vpop.permute.xlu1 %1761  ;;  %v4907_v16 = vpop.permute.xlu0 %1363 }
 0x21e   : > { %6983 = vst [vmem:[#allocation142_spill] sm:$0xff] %v4905_v4  ;;  %6984 = vst [vmem:[#allocation143_spill] sm:$0xff] %v4907_v16 }
 0x21f   : > { %1194 = vbcast.lane.b32.xlu1 %v4603_v8, 352  ;;  %796 = vbcast.lane.b32.xlu0 %v4571_v1, 360 }
 0x221   : > { %v4911_v61 = vpop.permute.xlu1 %1166  ;;  %v4913_v12 = vpop.permute.xlu0 %768 }
 0x222   : > { %6985 = vst [vmem:[#allocation144_spill] sm:$0xff] %v4911_v61  ;;  %6986 = vst [vmem:[#allocation145_spill] sm:$0xff] %v4913_v12 }
 0x223   : > { %398 = vbcast.lane.b32.xlu1 %v4545_v5, 368  ;;  %1592 = vbcast.lane.b32.xlu0 %v4641_v10, 344 }
 0x225   : > { %v4917_v0 = vpop.permute.xlu1 %370  ;;  %v4919_v18 = vpop.permute.xlu0 %1564 }
 0x226   : > { %6987 = vst [vmem:[#allocation146_spill] sm:$0xff] %v4917_v0  ;;  %6988 = vst [vmem:[#allocation147_spill] sm:$0xff] %v4919_v18 }
 0x227   : > { %997 = vbcast.lane.b32.xlu1 %v4587_v63, 360  ;;  %599 = vbcast.lane.b32.xlu0 %v4555_v6, 368 }
 0x229   : > { %v4923_v16 = vpop.permute.xlu1 %969  ;;  %v4925_v4 = vpop.permute.xlu0 %571 }
 0x22a   : > { %6989 = vst [vmem:[#allocation148_spill] sm:$0xff] %v4923_v16  ;;  %6990 = vst [vmem:[#allocation149_spill] sm:$0xff] %v4925_v4  ;;  %v6993_v4 = vlaneseq }
 0x22b   : > { %1793 = vbcast.lane.b32.xlu1 %v4657_v14, 344  ;;  %1395 = vbcast.lane.b32.xlu0 %v4625_v62, 352 }
 0x22c   : > { %v4942_v16 = vand.u32 127, %v6993_v4 }
 0x22d   : > { %v4929_v12 = vpop.permute.xlu1 %1765  ;;  %v4931_v61 = vpop.permute.xlu0 %1367 }
 0x22e   : > { %6991 = vst [vmem:[#allocation150_spill] sm:$0xff] %v4929_v12  ;;  %vm1926_vm0 = vcmp.eq.s32.totalorder %v4360_v19, %v4942_v16  ;;  %vm1927_vm1 = vcmp.eq.s32.totalorder %v4366_v21, %v4942_v16  ;;  %vm1879_vm2 = vcmp.eq.s32.totalorder %v4368_v22, %v4942_v16  ;;  %vm1975_vm3 = vcmp.eq.s32.totalorder %v4372_v23, %v4942_v16 }
 0x22f   : > { %1198 = vbcast.lane.b32.xlu1 %v4603_v8, 360  ;;  %800 = vbcast.lane.b32.xlu0 %v4571_v1, 368  ;;  %vm1974_vm4 = vcmp.eq.s32.totalorder %v4374_v24, %v4942_v16  ;;  %vm1878_vm5 = vcmp.eq.s32.totalorder %v4362_v20, %v4942_v16  ;;  %v6831_v19 = vmov 0   ;;  %vm1928_vm6 = vcmp.eq.s32.totalorder %v4378_v25, %v4942_v16  ;;  %v4978_v20 = vld [vmem:[%s4250_s9 + $0x10] sm:$0xff]  ;;  %s4100_s9 = smov [#allocation9]  }
 0x230   : > { %v2310_v21 = vsel %vm1926_vm0, 1, %v6831_v19  ;;  %v2263_v22 = vsel %vm1879_vm2, 1, %v6831_v19  ;;  %v2359_v23 = vsel %vm1975_vm3, 1, %v6831_v19  ;;  %v2358_v24 = vsel %vm1974_vm4, 1, %v6831_v19  ;;  %s4010_s1 = sshll.u32 %s4100_s9, 4  ;;  %s4011_s1 = int_to_ptr.vmem [resolvable:$false] %s4010_s1 }
 0x231   : > { %v4935_v18 = vpop.permute.xlu1 %1170  ;;  %v4937_v0 = vpop.permute.xlu0 %772  ;;  %vm1880_vm7 = vcmp.eq.s32.totalorder %v4380_v26, %v4942_v16  ;;  %vm2023_vm8 = vcmp.eq.s32.totalorder %v4384_v27, %v4942_v16  ;;  %vm2022_vm9 = vcmp.eq.s32.totalorder %v4386_v28, %v4942_v16  ;;  %vm1976_vm10 = vcmp.eq.s32.totalorder %v4392_v30, %v4942_v16  ;;  %s4012_s18 = scalar_lea.vmem %s4011_s1, 256  ;;  %p4013_p2 = scmp.lt.s32.totalorder %s3499_s13, %s4011_s1 }
 0x232   : > { %6992 = vst [vmem:[#allocation151_spill] sm:$0xff] %v4937_v0  ;;  %vm1881_vm11 = vcmp.eq.s32.totalorder %v4396_v31, %v4942_v16  ;;  %v2753_v26 = vadd.s32 %v2359_v23, %v2358_v24  ;;  %v2312_v0 = vsel %vm1928_vm6, 1, %v6831_v19  ;;  %v2264_v27 = vsel %vm1880_vm7, 1, %v6831_v19  ;;  %p4014_p13 = scmp.lt.s32.totalorder %s4012_s18, %s4006_s8 }
 0x233   : > { %402 = vbcast.lane.b32.xlu1 %v4545_v5, 376  ;;  %1596 = vbcast.lane.b32.xlu0 %v4641_v10, 352  ;;  %v4999_v28 = vrot.slane %v4978_v20, %v4263_v3  ;;  %v2407_v30 = vsel %vm2023_vm8, 1, %v6831_v19  ;;  %vm2070_vm12 = vcmp.eq.s32.totalorder %v4390_v29, %v4942_v16  ;;  %v2360_v31 = vsel %vm1976_vm10, 1, %v6831_v19 }
 0x234   : > { %vm2071_vm13 = vcmp.eq.s32.totalorder %v4398_v32, %v4942_v16  ;;  %vm2024_vm14 = vcmp.eq.s32.totalorder %v4402_v33, %v4942_v16  ;;  %vm1929_vm15 = vcmp.eq.s32.totalorder %v4404_v34, %v4942_v16  ;;  %v2454_v23 = vsel %vm2070_vm12, 1, %v6831_v19  ;;  %p4015_p0 = por %p4014_p13, %p4013_p2 }
 0x235   : > { %v4944_v17 = vpop.permute.xlu1 %374  ;;  %v4946_v12 = vpop.permute.xlu0 %1568  ;;  %v2754_v24 = vadd.s32 %v2753_v26, %v2360_v31  ;;  %v5022_v32 = vrot.slane %v4978_v20, %v4261_v2  ;;  %v2455_v34 = vsel %vm2071_vm13, 1, %v6831_v19  ;;  %vm2119_vm0 = vcmp.eq.s32.totalorder %v4408_v35, %v4942_v16 }
 0x236   : > { %6994 = vst [vmem:[#allocation152_spill] sm:$0xff] %v4944_v17  ;;  %6995 = vst [vmem:[#allocation153_spill] sm:$0xff] %v4946_v12  ;;  %vm2072_vm2 = vcmp.eq.s32.totalorder %v4414_v37, %v4942_v16  ;;  %vm1977_vm3 = vcmp.eq.s32.totalorder %v4416_v38, %v4942_v16  ;;  %vm2167_vm4 = vcmp.eq.s32.totalorder %v4420_v39, %v4942_v16  ;;  %v2503_v38 = vsel %vm2119_vm0, 1, %v6831_v19  ;;  %p4016_p5 = pnand %p4015_p0, %p4009_p11 }
 0x237   : > { %1001 = vbcast.lane.b32.xlu1 %v4587_v63, 368  ;;  %603 = vbcast.lane.b32.xlu0 %v4555_v6, 376  ;;  %v2311_v6 = vsel %vm1927_vm1, 1, %v6831_v19  ;;  %vm2118_vm1 = vcmp.eq.s32.totalorder %v4410_v36, %v4942_v16  ;;  %vm1930_vm6 = vcmp.eq.s32.totalorder %v4426_v41, %v4942_v16  ;;  %vm1882_vm7 = vcmp.eq.s32.totalorder %v4428_v42, %v4942_v16 }
 0x238   : > { %v2700_v25 = vadd.s32 %v2311_v6, %v2310_v21  ;;  %v2265_v21 = vsel %vm1881_vm11, 1, %v6831_v19  ;;  %v2859_v35 = vadd.s32 %v2455_v34, %v2454_v23  ;;  %v2502_v39 = vsel %vm2118_vm1, 1, %v6831_v19 }
 0x239   : > { %v4960_v5 = vpop.permute.xlu1 %973  ;;  %v4962_v4 = vpop.permute.xlu0 %575  ;;  %v2551_v41 = vsel %vm2167_vm4, 1, %v6831_v19  ;;  %v2314_v42 = vsel %vm1930_vm6, 1, %v6831_v19  ;;  %vm2120_vm8 = vcmp.eq.s32.totalorder %v4432_v43, %v4942_v16  ;;  %vm2215_vm10 = vcmp.eq.s32.totalorder %v4438_v45, %v4942_v16 }
 0x23a   : > { %6996 = vst [vmem:[#allocation154_spill] sm:$0xff] %v4960_v5  ;;  %6997 = vst [vmem:[#allocation155_spill] sm:$0xff] %v4962_v4  ;;  %v2262_v4 = vsel %vm1878_vm5, 1, %v6831_v19  ;;  %v2701_v6 = vadd.s32 %v2700_v25, %v2312_v0  ;;  %v2313_v0 = vsel %vm1929_vm15, 1, %v6831_v19  ;;  %vm2166_vm5 = vcmp.eq.s32.totalorder %v4422_v40, %v4942_v16 }
 0x23b   : > { %1797 = vbcast.lane.b32.xlu1 %v4657_v14, 352  ;;  %1399 = vbcast.lane.b32.xlu0 %v4625_v62, 360  ;;  %v2647_v17 = vadd.s32 %v2263_v22, %v2262_v4  ;;  %v2406_v4 = vsel %vm2022_vm9, 1, %v6831_v19  ;;  %v2456_v25 = vsel %vm2072_vm2, 1, %v6831_v19  ;;  %v2361_v40 = vsel %vm1977_vm3, 1, %v6831_v19 }
 0x23c   : > { %v2806_v29 = vadd.s32 %v2407_v30, %v2406_v4  ;;  %v2702_v37 = vadd.s32 %v2701_v6, %v2313_v0  ;;  %v2550_v26 = vsel %vm2166_vm5, 1, %v6831_v19  ;;  %vm2025_vm9 = vcmp.eq.s32.totalorder %v4434_v44, %v4942_v16 }
 0x23d   : > { %v4987_v5 = vpop.permute.xlu1 %1769  ;;  %v4989_v12 = vpop.permute.xlu0 %1371  ;;  %v2648_v22 = vadd.s32 %v2647_v17, %v2264_v27  ;;  %v2266_v27 = vsel %vm1882_vm7, 1, %v6831_v19  ;;  %vm2214_vm11 = vcmp.eq.s32.totalorder %v4440_v46, %v4942_v16  ;;  %vm2073_vm12 = vcmp.eq.s32.totalorder %v4444_v47, %v4942_v16 }
 0x23e   : > { %vm1978_vm13 = vcmp.eq.s32.totalorder %v4446_v48, %v4942_v16  ;;  %v5077_v43 = vrot.slane %v4978_v20, %v4274_v7  ;;  %v2912_v44 = vadd.s32 %v2503_v38, %v2502_v39  ;;  %v2860_v4 = vadd.s32 %v2859_v35, %v2456_v25 }
 0x23f   : > { %1202 = vbcast.lane.b32.xlu1 %v4603_v8, 368  ;;  %804 = vbcast.lane.b32.xlu0 %v4571_v1, 376  ;;  %v2649_v33 = vadd.s32 %v2648_v22, %v2265_v21  ;;  %v2755_v31 = vadd.s32 %v2754_v24, %v2361_v40  ;;  %v2965_v21 = vadd.s32 %v2551_v41, %v2550_v26  ;;  %v2504_v22 = vsel %vm2120_vm8, 1, %v6831_v19 }
 0x240   : > { %v2599_v7 = vsel %vm2215_vm10, 1, %v6831_v19  ;;  %v2598_v24 = vsel %vm2214_vm11, 1, %v6831_v19  ;;  %v2362_v0 = vsel %vm1978_vm13, 1, %v6831_v19  ;;  %vm2168_vm15 = vcmp.eq.s32.totalorder %v4452_v50, %v4942_v16 }
 0x241   : > { %v5013_v3 = vpop.permute.xlu1 %1174  ;;  %v5015_v1 = vpop.permute.xlu0 %776  ;;  %v2650_v6 = vadd.s32 %v2649_v33, %v2266_v27  ;;  %v2457_v33 = vsel %vm2073_vm12, 1, %v6831_v19  ;;  %vm2026_vm0 = vcmp.eq.s32.totalorder %v4456_v51, %v4942_v16  ;;  %v2913_v45 = vadd.s32 %v2912_v44, %v2504_v22 }
 0x242   : > { %6998 = vst [vmem:[#allocation156_spill] sm:$0xff] %v5013_v3  ;;  %v2408_v3 = vsel %vm2024_vm14, 1, %v6831_v19  ;;  %vm1883_vm14 = vcmp.eq.s32.totalorder %v4450_v49, %v4942_v16  ;;  %vm1931_vm1 = vcmp.eq.s32.totalorder %v4458_v52, %v4942_v16  ;;  %vm2216_vm2 = vcmp.eq.s32.totalorder %v4462_v53, %v4942_v16 }
 0x243   : > { %409 = vbcast.lane.b32.xlu1 %v4999_v28, 256  ;;  %1600 = vbcast.lane.b32.xlu0 %v4641_v10, 360  ;;  %v2807_v36 = vadd.s32 %v2806_v29, %v2408_v3  ;;  %v2703_v3 = vadd.s32 %v2702_v37, %v2314_v42  ;;  %v2409_v29 = vsel %vm2025_vm9, 1, %v6831_v19  ;;  %v3018_v47 = vadd.s32 %v2599_v7, %v2598_v24 }
 0x244   : > { %v2861_v48 = vadd.s32 %v2860_v4, %v2457_v33  ;;  %v2756_v49 = vadd.s32 %v2755_v31, %v2362_v0  ;;  %vm2121_vm3 = vcmp.eq.s32.totalorder %v4464_v54, %v4942_v16  ;;  %v2552_v35 = vsel %vm2168_vm15, 1, %v6831_v19  ;;  %v6999_v4 = vld [vmem:[#allocation14_spill] sm:$0xff]  ;;  %v7004_v0 = vld [vmem:[#allocation19_spill] sm:$0xff] }
 0x245   : > { %v5035_v2 = vpop.permute.xlu1 %378  ;;  %v5037_v17 = vpop.permute.xlu0 %1572  ;;  %v2808_v46 = vadd.s32 %v2807_v36, %v2409_v29  ;;  %v2410_v36 = vsel %vm2026_vm0, 1, %v6831_v19  ;;  %vm2074_vm4 = vcmp.eq.s32.totalorder %v4468_v55, %v4942_v16  ;;  %v2315_v52 = vsel %vm1931_vm1, 1, %v6831_v19 }
 0x246   : > { %v2600_v53 = vsel %vm2216_vm2, 1, %v6831_v19  ;;  %vm1979_vm5 = vcmp.eq.s32.totalorder %v4470_v56, %v4942_v16  ;;  %v5132_v54 = vrot.slane %v4978_v20, %v4283_v9  ;;  %v2505_v37 = vsel %vm2121_vm3, 1, %v6831_v19  ;;  %v7000_v56 = vld [vmem:[#allocation15_spill] sm:$0xff] }
 0x247   : > { %1005 = vbcast.lane.b32.xlu1 %v4587_v63, 376  ;;  %610 = vbcast.lane.b32.xlu0 %v5022_v32, 256  ;;  %vm1884_vm6 = vcmp.eq.s32.totalorder %v4474_v57, %v4942_v16  ;;  %vm2169_vm7 = vcmp.eq.s32.totalorder %v4476_v58, %v4942_v16  ;;  %vm2027_vm8 = vcmp.eq.s32.totalorder %v4480_v59, %v4942_v16  ;;  %v2458_v39 = vsel %vm2074_vm4, 1, %v6831_v19 }
 0x248   : > { %v2966_v38 = vadd.s32 %v2965_v21, %v2552_v35  ;;  %vm1932_vm9 = vcmp.eq.s32.totalorder %v4482_v60, %v4942_v16  ;;  %v2809_v40 = vadd.s32 %v2808_v46, %v2410_v36  ;;  %v2704_v41 = vadd.s32 %v2703_v3, %v2315_v52  ;;  %v7001_v21 = vld [vmem:[#allocation16_spill] sm:$0xff]  ;;  %v7002_v3 = vld [vmem:[#allocation17_spill] sm:$0xff] }
 0x249   : > { %v5057_v30 = vpop.permute.xlu1 %977  ;;  %v5059_v63 = vpop.permute.xlu0 %579  ;;  %v3019_v57 = vadd.s32 %v3018_v47, %v2600_v53  ;;  %v2363_v58 = vsel %vm1979_vm5, 1, %v6831_v19  ;;  %v2914_v59 = vadd.s32 %v2913_v45, %v2505_v37  ;;  %v2268_v26 = vsel %vm1884_vm6, 1, %v6831_v19  ;;  %v7005_v36 = vld [vmem:[#allocation20_spill] sm:$0xff]  ;;  %v7006_v53 = vld [vmem:[#allocation21_spill] sm:$0xff] }
 0x24a   : > { %v2553_v42 = vsel %vm2169_vm7, 1, %v6831_v19  ;;  %v2411_v27 = vsel %vm2027_vm8, 1, %v6831_v19  ;;  %v2862_v60 = vadd.s32 %v2861_v48, %v2458_v39  ;;  %v2316_v44 = vsel %vm1932_vm9, 1, %v6831_v19 }
 0x24b   : > { %1801 = vbcast.lane.b32.xlu1 %v4657_v14, 360  ;;  %1403 = vbcast.lane.b32.xlu0 %v4625_v62, 368  ;;  %vm2217_vm10 = vcmp.eq.s32.totalorder %v6999_v4, %v4942_v16  ;;  %vm2122_vm11 = vcmp.eq.s32.totalorder %v7000_v56, %v4942_v16  ;;  %v2757_v31 = vadd.s32 %v2756_v49, %v2363_v58 }
 0x24c   : > { %vm2075_vm12 = vcmp.eq.s32.totalorder %v7001_v21, %v4942_v16  ;;  %vm1980_vm13 = vcmp.eq.s32.totalorder %v7002_v3, %v4942_v16  ;;  %v2967_v24 = vadd.s32 %v2966_v38, %v2553_v42  ;;  %v2810_v33 = vadd.s32 %v2809_v40, %v2411_v27  ;;  %v7009_v40 = vld [vmem:[#allocation24_spill] sm:$0xff]  ;;  %v7012_v21 = vld [vmem:[#allocation27_spill] sm:$0xff] }
 0x24d   : > { %v5081_v23 = vpop.permute.xlu1 %1773  ;;  %v5083_v34 = vpop.permute.xlu0 %1375  ;;  %vm2170_vm15 = vcmp.eq.s32.totalorder %v7004_v0, %v4942_v16  ;;  %v2705_v45 = vadd.s32 %v2704_v41, %v2316_v44  ;;  %v2601_v46 = vsel %vm2217_vm10, 1, %v6831_v19  ;;  %v2506_v47 = vsel %vm2122_vm11, 1, %v6831_v19  ;;  %v7010_v41 = vld [vmem:[#allocation25_spill] sm:$0xff] }
 0x24e   : > { %v5180_v48 = vrot.slane %v4978_v20, %v4290_v11  ;;  %v2459_v49 = vsel %vm2075_vm12, 1, %v6831_v19  ;;  %vm2028_vm0 = vcmp.eq.s32.totalorder %v7005_v36, %v4942_v16  ;;  %v2554_v52 = vsel %vm2170_vm15, 1, %v6831_v19  ;;  %v7008_v11 = vld [vmem:[#allocation23_spill] sm:$0xff]  ;;  %v7014_v0 = vld [vmem:[#allocation29_spill] sm:$0xff] }
 0x24f   : > { %1206 = vbcast.lane.b32.xlu1 %v4603_v8, 376  ;;  %811 = vbcast.lane.b32.xlu0 %v5077_v43, 256  ;;  %v2267_v8 = vsel %vm1883_vm14, 1, %v6831_v19  ;;  %vm1933_vm1 = vcmp.eq.s32.totalorder %v7006_v53, %v4942_v16  ;;  %vm2123_vm3 = vcmp.eq.s32.totalorder %v7008_v11, %v4942_v16  ;;  %v3020_v38 = vadd.s32 %v3019_v57, %v2601_v46  ;;  %v7015_v46 = vld [vmem:[#allocation30_spill] sm:$0xff] }
 0x250   : > { %v2651_v55 = vadd.s32 %v2650_v6, %v2267_v8  ;;  %v7003_v6 = vld [vmem:[#allocation18_spill] sm:$0xff]  ;;  %v2364_v8 = vsel %vm1980_vm13, 1, %v6831_v19  ;;  %v2915_v39 = vadd.s32 %v2914_v59, %v2506_v47  ;;  %vm2076_vm4 = vcmp.eq.s32.totalorder %v7009_v40, %v4942_v16  ;;  %v7018_v40 = vld [vmem:[#allocation33_spill] sm:$0xff] }
 0x251   : > { %v5115_v50 = vpop.permute.xlu1 %1178  ;;  %v5117_v51 = vpop.permute.xlu0 %780  ;;  %vm1885_vm14 = vcmp.eq.s32.totalorder %v7003_v6, %v4942_v16  ;;  %vm1981_vm5 = vcmp.eq.s32.totalorder %v7010_v41, %v4942_v16  ;;  %v2863_v58 = vadd.s32 %v2862_v60, %v2459_v49  ;;  %v2412_v27 = vsel %vm2028_vm0, 1, %v6831_v19  ;;  %v7019_v41 = vld [vmem:[#allocation34_spill] sm:$0xff] }
 0x252   : > { %v2652_v7 = vadd.s32 %v2651_v55, %v2268_v26  ;;  %v2269_v35 = vsel %vm1885_vm14, 1, %v6831_v19  ;;  %v2758_v26 = vadd.s32 %v2757_v31, %v2364_v8  ;;  %v2968_v44 = vadd.s32 %v2967_v24, %v2554_v52  ;;  %v7011_v31 = vld [vmem:[#allocation26_spill] sm:$0xff]  ;;  %v7013_v24 = vld [vmem:[#allocation28_spill] sm:$0xff] }
 0x253   : > { %413 = vbcast.lane.b32.xlu1 %v4999_v28, 264  ;;  %1604 = vbcast.lane.b32.xlu0 %v4641_v10, 368  ;;  %v2317_v57 = vsel %vm1933_vm1, 1, %v6831_v19  ;;  %v2507_v60 = vsel %vm2123_vm3, 1, %v6831_v19  ;;  %v2460_v4 = vsel %vm2076_vm4, 1, %v6831_v19  ;;  %v2365_v56 = vsel %vm1981_vm5, 1, %v6831_v19 }
 0x254   : > { %v2653_v42 = vadd.s32 %v2652_v7, %v2269_v35  ;;  %vm1886_vm6 = vcmp.eq.s32.totalorder %v7011_v31, %v4942_v16  ;;  %vm2171_vm7 = vcmp.eq.s32.totalorder %v7012_v21, %v4942_v16  ;;  %v2811_v7 = vadd.s32 %v2810_v33, %v2412_v27 }
 0x255   : > { %v5144_v9 = vpop.permute.xlu1 %382  ;;  %v5146_v25 = vpop.permute.xlu0 %1576  ;;  %vm2029_vm8 = vcmp.eq.s32.totalorder %v7013_v24, %v4942_v16  ;;  %vm1934_vm9 = vcmp.eq.s32.totalorder %v7014_v0, %v4942_v16  ;;  %vm2219_vm10 = vcmp.eq.s32.totalorder %v7015_v46, %v4942_v16  ;;  %v2706_v47 = vadd.s32 %v2705_v45, %v2317_v57  ;;  %v7016_v45 = vld [vmem:[#allocation31_spill] sm:$0xff]  ;;  %v7024_v46 = vld [vmem:[#allocation38_spill] sm:$0xff] }
 0x256   : > { %v2916_v8 = vadd.s32 %v2915_v39, %v2507_v60  ;;  %v2864_v35 = vadd.s32 %v2863_v58, %v2460_v4  ;;  %v2759_v36 = vadd.s32 %v2758_v26, %v2365_v56  ;;  %v2270_v33 = vsel %vm1886_vm6, 1, %v6831_v19  ;;  %v7020_v58 = vld [vmem:[#allocation35_spill] sm:$0xff] }
 0x257   : > { %1012 = vbcast.lane.b32.xlu1 %v5132_v54, 256  ;;  %614 = vbcast.lane.b32.xlu0 %v5022_v32, 264  ;;  %v2555_v52 = vsel %vm2171_vm7, 1, %v6831_v19  ;;  %v2413_v53 = vsel %vm2029_vm8, 1, %v6831_v19  ;;  %v2603_v11 = vsel %vm2219_vm10, 1, %v6831_v19  ;;  %vm2124_vm11 = vcmp.eq.s32.totalorder %v7016_v45, %v4942_v16 }
 0x258   : > { %vm1982_vm13 = vcmp.eq.s32.totalorder %v7018_v40, %v4942_v16  ;;  %vm1887_vm14 = vcmp.eq.s32.totalorder %v7019_v41, %v4942_v16  ;;  %vm2172_vm15 = vcmp.eq.s32.totalorder %v7020_v58, %v4942_v16  ;;  %v2654_v26 = vadd.s32 %v2653_v42, %v2270_v33  ;;  %v7026_v33 = vld [vmem:[#allocation40_spill] sm:$0xff] }
 0x259   : > { %v5168_v22 = vpop.permute.xlu1 %981  ;;  %v5170_v29 = vpop.permute.xlu0 %583  ;;  %v2969_v27 = vadd.s32 %v2968_v44, %v2555_v52  ;;  %v5258_v57 = vrot.slane %v4978_v20, %v4301_v13  ;;  %v2508_v56 = vsel %vm2124_vm11, 1, %v6831_v19  ;;  %v2366_v21 = vsel %vm1982_vm13, 1, %v6831_v19  ;;  %v7022_v13 = vld [vmem:[#allocation36_spill] sm:$0xff]  ;;  %v7027_v52 = vld [vmem:[#allocation41_spill] sm:$0xff] }
 0x25a   : > { %v2271_v42 = vsel %vm1887_vm14, 1, %v6831_v19  ;;  %v2556_v44 = vsel %vm2172_vm15, 1, %v6831_v19  ;;  %vm2030_vm0 = vcmp.eq.s32.totalorder %v7022_v13, %v4942_v16  ;;  %vm2078_vm4 = vcmp.eq.s32.totalorder %v7026_v33, %v4942_v16 }
 0x25b   : > { %1805 = vbcast.lane.b32.xlu1 %v4657_v14, 368  ;;  %1407 = vbcast.lane.b32.xlu0 %v4625_v62, 376  ;;  %v7007_v62 = vld [vmem:[#allocation22_spill] sm:$0xff]  ;;  %vm1983_vm5 = vcmp.eq.s32.totalorder %v7027_v52, %v4942_v16  ;;  %v2970_v45 = vadd.s32 %v2969_v27, %v2556_v44  ;;  %v7033_v27 = vld [vmem:[#allocation45_spill] sm:$0xff] }
 0x25c   : > { %vm2218_vm2 = vcmp.eq.s32.totalorder %v7007_v62, %v4942_v16  ;;  %v2318_v62 = vsel %vm1934_vm9, 1, %v6831_v19  ;;  %v2367_v13 = vsel %vm1983_vm5, 1, %v6831_v19  ;;  %vm1936_vm9 = vcmp.eq.s32.totalorder %v7033_v27, %v4942_v16 }
 0x25d   : > { %v5194_v37 = vpop.permute.xlu1 %1777  ;;  %v5196_v55 = vpop.permute.xlu0 %1379  ;;  %v2602_v59 = vsel %vm2218_vm2, 1, %v6831_v19  ;;  %v2707_v60 = vadd.s32 %v2706_v47, %v2318_v62  ;;  %vm2220_vm2 = vcmp.eq.s32.totalorder %v7024_v46, %v4942_v16  ;;  %v7025_v47 = vld [vmem:[#allocation39_spill] sm:$0xff]  ;;  %v2760_v62 = vadd.s32 %v2759_v36, %v2366_v21 }
 0x25e   : > { %v3021_v49 = vadd.s32 %v3020_v38, %v2602_v59  ;;  %v2812_v59 = vadd.s32 %v2811_v7, %v2413_v53  ;;  %v7023_v7 = vld [vmem:[#allocation37_spill] sm:$0xff]  ;;  %vm2125_vm3 = vcmp.eq.s32.totalorder %v7025_v47, %v4942_v16  ;;  %v7031_v36 = vld [vmem:[#allocation43_spill] sm:$0xff] }
 0x25f   : > { %1213 = vbcast.lane.b32.xlu1 %v5180_v48, 256  ;;  %815 = vbcast.lane.b32.xlu0 %v5077_v43, 264  ;;  %vm1935_vm1 = vcmp.eq.s32.totalorder %v7023_v7, %v4942_v16  ;;  %v2509_v41 = vsel %vm2125_vm3, 1, %v6831_v19  ;;  %vm2173_vm7 = vcmp.eq.s32.totalorder %v7031_v36, %v4942_v16  ;;  %v7034_v7 = vld [vmem:[#allocation46_spill] sm:$0xff]  ;;  %v2761_v33 = vadd.s32 %v2760_v62, %v2367_v13  ;;  %v7039_v62 = vld [vmem:[#allocation49_spill] sm:$0xff] }
 0x260   : > { %v3022_v4 = vadd.s32 %v3021_v49, %v2603_v11  ;;  %v2917_v49 = vadd.s32 %v2916_v8, %v2508_v56  ;;  %v2655_v11 = vadd.s32 %v2654_v26, %v2271_v42  ;;  %v2319_v40 = vsel %vm1935_vm1, 1, %v6831_v19  ;;  %v7032_v26 = vld [vmem:[#allocation44_spill] sm:$0xff] }
 0x261   : > { %v5223_v3 = vpop.permute.xlu1 %1182  ;;  %v5225_v6 = vpop.permute.xlu0 %784  ;;  %v2604_v8 = vsel %vm2220_vm2, 1, %v6831_v19  ;;  %vm2031_vm8 = vcmp.eq.s32.totalorder %v7032_v26, %v4942_v16  ;;  %v2708_v42 = vadd.s32 %v2707_v60, %v2319_v40  ;;  %vm2221_vm10 = vcmp.eq.s32.totalorder %v7034_v7, %v4942_v16 }
 0x262   : > { %v3023_v44 = vadd.s32 %v3022_v4, %v2604_v8  ;;  %v2918_v46 = vadd.s32 %v2917_v49, %v2509_v41  ;;  %v2320_v60 = vsel %vm1936_vm9, 1, %v6831_v19  ;;  %v7037_v4 = vld [vmem:[#allocation47_spill] sm:$0xff]  ;;  %v2605_v49 = vsel %vm2221_vm10, 1, %v6831_v19  ;;  %v7042_v41 = vld [vmem:[#allocation52_spill] sm:$0xff] }
 0x263   : > { %417 = vbcast.lane.b32.xlu1 %v4999_v28, 272  ;;  %1608 = vbcast.lane.b32.xlu0 %v4641_v10, 376  ;;  %v7017_v10 = vld [vmem:[#allocation32_spill] sm:$0xff]  ;;  %vm2126_vm11 = vcmp.eq.s32.totalorder %v7037_v4, %v4942_v16  ;;  %vm1984_vm13 = vcmp.eq.s32.totalorder %v7039_v62, %v4942_v16  ;;  %v7041_v8 = vld [vmem:[#allocation51_spill] sm:$0xff]  ;;  %v2709_v26 = vadd.s32 %v2708_v42, %v2320_v60 }
 0x264   : > { %vm2077_vm12 = vcmp.eq.s32.totalorder %v7017_v10, %v4942_v16  ;;  %v2414_v10 = vsel %vm2030_vm0, 1, %v6831_v19  ;;  %vm2174_vm15 = vcmp.eq.s32.totalorder %v7041_v8, %v4942_v16  ;;  %vm2032_vm0 = vcmp.eq.s32.totalorder %v7042_v41, %v4942_v16  ;;  %v7049_v62 = vld [vmem:[#allocation56_spill] sm:$0xff] }
 0x265   : > { %v5242_v38 = vpop.permute.xlu1 %386  ;;  %v5244_v39 = vpop.permute.xlu0 %1580  ;;  %v2461_v31 = vsel %vm2077_vm12, 1, %v6831_v19  ;;  %v2813_v21 = vadd.s32 %v2812_v59, %v2414_v10  ;;  %v2415_v59 = vsel %vm2031_vm8, 1, %v6831_v19  ;;  %v7040_v10 = vld [vmem:[#allocation50_spill] sm:$0xff]  ;;  %v2510_v27 = vsel %vm2126_vm11, 1, %v6831_v19 }
 0x266   : > { %v2865_v53 = vadd.s32 %v2864_v35, %v2461_v31  ;;  %v7030_v35 = vld [vmem:[#allocation42_spill] sm:$0xff]  ;;  %v5305_v31 = vrot.slane %v4978_v20, %v4310_v15  ;;  %v2557_v15 = vsel %vm2173_vm7, 1, %v6831_v19  ;;  %vm1889_vm14 = vcmp.eq.s32.totalorder %v7040_v10, %v4942_v16 }
 0x267   : > { %1016 = vbcast.lane.b32.xlu1 %v5132_v54, 264  ;;  %618 = vbcast.lane.b32.xlu0 %v5022_v32, 272  ;;  %vm1888_vm6 = vcmp.eq.s32.totalorder %v7030_v35, %v4942_v16  ;;  %v2971_v13 = vadd.s32 %v2970_v45, %v2557_v15  ;;  %v2814_v36 = vadd.s32 %v2813_v21, %v2415_v59  ;;  %v2273_v45 = vsel %vm1889_vm14, 1, %v6831_v19  ;;  %v7046_v15 = vld [vmem:[#allocation13_spill] sm:$0xff] }
 0x268   : > { %v2272_v52 = vsel %vm1888_vm6, 1, %v6831_v19  ;;  %v2558_v21 = vsel %vm2174_vm15, 1, %v6831_v19  ;;  %v2416_v42 = vsel %vm2032_vm0, 1, %v6831_v19  ;;  %v5367_v59 = vrot.slane %v4978_v20, %v7046_v15 }
 0x269   : > { %v5265_v24 = vpop.permute.xlu1 %985  ;;  %v5267_v0 = vpop.permute.xlu0 %587  ;;  %v2656_v40 = vadd.s32 %v2655_v11, %v2272_v52  ;;  %v2368_v52 = vsel %vm1984_vm13, 1, %v6831_v19  ;;  %v2919_v60 = vadd.s32 %v2918_v46, %v2510_v27  ;;  %v2972_v46 = vadd.s32 %v2971_v13, %v2558_v21  ;;  %v7056_v13 = vld [vmem:[#allocation60_spill] sm:$0xff]  ;;  %v7061_v21 = vld [vmem:[#allocation65_spill] sm:$0xff] }
 0x26a   : > { %7021 = vst [vmem:[#allocation14_spill] sm:$0xff] %v5267_v0  ;;  %v2762_v8 = vadd.s32 %v2761_v33, %v2368_v52  ;;  %v2815_v27 = vadd.s32 %v2814_v36, %v2416_v42  ;;  %v7055_v33 = vld [vmem:[#allocation59_spill] sm:$0xff]  ;;  %vm2033_vm8 = vcmp.eq.s32.totalorder %v7056_v13, %v4942_v16  ;;  %v7057_v36 = vld [vmem:[#allocation61_spill] sm:$0xff]  ;;  %vm1986_vm13 = vcmp.eq.s32.totalorder %v7061_v21, %v4942_v16 }
 0x26b   : > { %1809 = vbcast.lane.b32.xlu1 %v4657_v14, 376  ;;  %1414 = vbcast.lane.b32.xlu0 %v5258_v57, 256  ;;  %v2462_v14 = vsel %vm2078_vm4, 1, %v6831_v19  ;;  %vm2080_vm4 = vcmp.eq.s32.totalorder %v7049_v62, %v4942_v16  ;;  %v2657_v41 = vadd.s32 %v2656_v40, %v2273_v45  ;;  %vm2175_vm7 = vcmp.eq.s32.totalorder %v7055_v33, %v4942_v16  ;;  %v7059_v52 = vld [vmem:[#allocation63_spill] sm:$0xff]  ;;  %v7060_v45 = vld [vmem:[#allocation64_spill] sm:$0xff] }
 0x26c   : > { %v2866_v47 = vadd.s32 %v2865_v53, %v2462_v14  ;;  %v7038_v53 = vld [vmem:[#allocation48_spill] sm:$0xff]  ;;  %v7043_v14 = vld [vmem:[#allocation53_spill] sm:$0xff]  ;;  %vm1938_vm9 = vcmp.eq.s32.totalorder %v7057_v36, %v4942_v16  ;;  %vm2128_vm11 = vcmp.eq.s32.totalorder %v7059_v52, %v4942_v16 }
 0x26d   : > { %v5287_v58 = vpop.permute.xlu1 %1781  ;;  %v5289_v56 = vpop.permute.xlu0 %1383  ;;  %vm2079_vm12 = vcmp.eq.s32.totalorder %v7038_v53, %v4942_v16  ;;  %vm1937_vm1 = vcmp.eq.s32.totalorder %v7043_v14, %v4942_v16  ;;  %v7048_v53 = vld [vmem:[#allocation55_spill] sm:$0xff]  ;;  %v7050_v14 = vld [vmem:[#allocation57_spill] sm:$0xff] }
 0x26e   : > { %7028 = vst [vmem:[#allocation15_spill] sm:$0xff] %v5287_v58  ;;  %7029 = vst [vmem:[#allocation16_spill] sm:$0xff] %v5289_v56  ;;  %v2463_v11 = vsel %vm2079_vm12, 1, %v6831_v19  ;;  %vm2127_vm3 = vcmp.eq.s32.totalorder %v7048_v53, %v4942_v16  ;;  %vm1985_vm5 = vcmp.eq.s32.totalorder %v7050_v14, %v4942_v16  ;;  %v7054_v53 = vmov 0  }
 0x26f   : > { %1217 = vbcast.lane.b32.xlu1 %v5180_v48, 264  ;;  %819 = vbcast.lane.b32.xlu0 %v5077_v43, 272  ;;  %v2867_v10 = vadd.s32 %v2866_v47, %v2463_v11  ;;  %v2511_v62 = vsel %vm2127_vm3, 1, %v7054_v53  ;;  %v2464_v47 = vsel %vm2080_vm4, 1, %v7054_v53  ;;  %v2369_v40 = vsel %vm1985_vm5, 1, %v7054_v53 }
 0x270   : > { %vm2081_vm12 = vcmp.eq.s32.totalorder %v7060_v45, %v4942_v16  ;;  %v2559_v36 = vsel %vm2175_vm7, 1, %v7054_v53  ;;  %v7069_v45 = vld [vmem:[#allocation69_spill] sm:$0xff] }
 0x271   : > { %v5310_v35 = vpop.permute.xlu1 %1186  ;;  %v5312_v56 = vpop.permute.xlu0 %788  ;;  %v2868_v13 = vadd.s32 %v2867_v10, %v2464_v47  ;;  %v2973_v10 = vadd.s32 %v2972_v46, %v2559_v36 }
 0x272   : > { %7035 = vst [vmem:[#allocation17_spill] sm:$0xff] %v5310_v35  ;;  %7036 = vst [vmem:[#allocation18_spill] sm:$0xff] %v5312_v56  ;;  %v3024_v56 = vadd.s32 %v3023_v44, %v2605_v49  ;;  %v2321_v44 = vsel %vm1937_vm1, 1, %v6831_v19  ;;  %v7047_v49 = vld [vmem:[#allocation54_spill] sm:$0xff]  ;;  %vm1939_vm1 = vcmp.eq.s32.totalorder %v7069_v45, %v4942_v16  ;;  %v7102_v35 = vld [vmem:[#allocation92_spill] sm:$0xff] }
 0x273   : > { %421 = vbcast.lane.b32.xlu1 %v4999_v28, 280  ;;  %1615 = vbcast.lane.b32.xlu0 %v5305_v31, 256  ;;  %vm2222_vm2 = vcmp.eq.s32.totalorder %v7047_v49, %v4942_v16  ;;  %v2710_v15 = vadd.s32 %v2709_v26, %v2321_v44  ;;  %v7053_v49 = vld [vmem:[#allocation58_spill] sm:$0xff] }
 0x274   : > { %vm1890_vm6 = vcmp.eq.s32.totalorder %v7053_v49, %v4942_v16  ;;  %v7058_v26 = vld [vmem:[#allocation62_spill] sm:$0xff]  ;;  %v2920_v49 = vadd.s32 %v2919_v60, %v2511_v62  ;;  %v2370_v60 = vsel %vm1986_vm13, 1, %v7054_v53  ;;  %v7066_v62 = vld [vmem:[#allocation68_spill] sm:$0xff] }
 0x275   : > { %v5344_v7 = vpop.permute.xlu1 %390  ;;  %v5346_v4 = vpop.permute.xlu0 %1584  ;;  %vm2223_vm10 = vcmp.eq.s32.totalorder %v7058_v26, %v4942_v16  ;;  %v2274_v11 = vsel %vm1890_vm6, 1, %v7054_v53  ;;  %v2763_v26 = vadd.s32 %v2762_v8, %v2369_v40  ;;  %v7064_v8 = vld [vmem:[#allocation66_spill] sm:$0xff]  ;;  %vm2034_vm0 = vcmp.eq.s32.totalorder %v7066_v62, %v4942_v16 }
 0x276   : > { %7044 = vst [vmem:[#allocation19_spill] sm:$0xff] %v5344_v7  ;;  %7045 = vst [vmem:[#allocation20_spill] sm:$0xff] %v5346_v4  ;;  %v2606_v4 = vsel %vm2222_vm2, 1, %v7054_v53  ;;  %v2607_v7 = vsel %vm2223_vm10, 1, %v7054_v53  ;;  %vm1891_vm14 = vcmp.eq.s32.totalorder %v7064_v8, %v4942_v16  ;;  %v2418_v62 = vsel %vm2034_vm0, 1, %v7054_v53 }
 0x277   : > { %1020 = vbcast.lane.b32.xlu1 %v5132_v54, 272  ;;  %622 = vbcast.lane.b32.xlu0 %v5022_v32, 280  ;;  %v3025_v14 = vadd.s32 %v3024_v56, %v2606_v4  ;;  %v2512_v56 = vsel %vm2128_vm11, 1, %v7054_v53  ;;  %v2465_v4 = vsel %vm2081_vm12, 1, %v7054_v53  ;;  %v2764_v36 = vadd.s32 %v2763_v26, %v2370_v60  ;;  %v7077_v26 = vld [vmem:[#allocation75_spill] sm:$0xff] }
 0x278   : > { %v2921_v46 = vadd.s32 %v2920_v49, %v2512_v56  ;;  %v2869_v21 = vadd.s32 %v2868_v13, %v2465_v4  ;;  %v2275_v8 = vsel %vm1891_vm14, 1, %v7054_v53  ;;  %v7076_v13 = vld [vmem:[#allocation74_spill] sm:$0xff]  ;;  %vm2177_vm7 = vcmp.eq.s32.totalorder %v7077_v26, %v4942_v16  ;;  %v7078_v56 = vld [vmem:[#allocation76_spill] sm:$0xff]  ;;  %v7079_v4 = vld [vmem:[#allocation77_spill] sm:$0xff] }
 0x279   : > { %v5377_v19 = vpop.permute.xlu1 %989  ;;  %v5379_v20 = vpop.permute.xlu0 %591  ;;  %v3026_v52 = vadd.s32 %v3025_v14, %v2607_v7  ;;  %v7071_v7 = vld [vmem:[#allocation71_spill] sm:$0xff]  ;;  %vm1892_vm6 = vcmp.eq.s32.totalorder %v7076_v13, %v4942_v16 }
 0x27a   : > { %7051 = vst [vmem:[#allocation21_spill] sm:$0xff] %v5377_v19  ;;  %7052 = vst [vmem:[#allocation22_spill] sm:$0xff] %v5379_v20  ;;  %v2417_v20 = vsel %vm2033_vm8, 1, %v7054_v53  ;;  %v2322_v19 = vsel %vm1938_vm9, 1, %v7054_v53  ;;  %vm2129_vm3 = vcmp.eq.s32.totalorder %v7071_v7, %v4942_v16  ;;  %vm2035_vm8 = vcmp.eq.s32.totalorder %v7078_v56, %v4942_v16  ;;  %v7082_v7 = vld [vmem:[#allocation78_spill] sm:$0xff] }
 0x27b   : > { %1816 = vbcast.lane.b32.xlu1 %v5367_v59, 256  ;;  %1418 = vbcast.lane.b32.xlu0 %v5258_v57, 264  ;;  %v2816_v40 = vadd.s32 %v2815_v27, %v2417_v20  ;;  %v7070_v20 = vld [vmem:[#allocation70_spill] sm:$0xff]  ;;  %v7072_v27 = vld [vmem:[#allocation72_spill] sm:$0xff]  ;;  %vm1940_vm9 = vcmp.eq.s32.totalorder %v7079_v4, %v4942_v16  ;;  %v2513_v13 = vsel %vm2129_vm3, 1, %v7054_v53  ;;  %vm2225_vm10 = vcmp.eq.s32.totalorder %v7082_v7, %v4942_v16 }
 0x27c   : > { %vm2224_vm2 = vcmp.eq.s32.totalorder %v7070_v20, %v4942_v16  ;;  %vm2082_vm4 = vcmp.eq.s32.totalorder %v7072_v27, %v4942_v16  ;;  %v7083_v27 = vld [vmem:[#allocation79_spill] sm:$0xff]  ;;  %v2922_v56 = vadd.s32 %v2921_v46, %v2513_v13  ;;  %v7094_v13 = vld [vmem:[#allocation88_spill] sm:$0xff] }
 0x27d   : > { %v5404_v42 = vpop.permute.xlu1 %1785  ;;  %v5406_v44 = vpop.permute.xlu0 %1387  ;;  %v2817_v20 = vadd.s32 %v2816_v40, %v2418_v62  ;;  %v2466_v26 = vsel %vm2082_vm4, 1, %v7054_v53  ;;  %v2561_v40 = vsel %vm2177_vm7, 1, %v7054_v53  ;;  %vm2130_vm11 = vcmp.eq.s32.totalorder %v7083_v27, %v4942_v16 }
 0x27e   : > { %7062 = vst [vmem:[#allocation23_spill] sm:$0xff] %v5404_v42  ;;  %7063 = vst [vmem:[#allocation24_spill] sm:$0xff] %v5406_v44  ;;  %v2658_v44 = vadd.s32 %v2657_v41, %v2274_v11  ;;  %v7065_v41 = vld [vmem:[#allocation67_spill] sm:$0xff]  ;;  %v2711_v11 = vadd.s32 %v2710_v15, %v2322_v19  ;;  %v2323_v19 = vsel %vm1939_vm1, 1, %v7054_v53  ;;  %v7073_v15 = vld [vmem:[#allocation73_spill] sm:$0xff]  ;;  %v2870_v4 = vadd.s32 %v2869_v21, %v2466_v26 }
 0x27f   : > { %1221 = vbcast.lane.b32.xlu1 %v5180_v48, 272  ;;  %823 = vbcast.lane.b32.xlu0 %v5077_v43, 280  ;;  %vm2176_vm15 = vcmp.eq.s32.totalorder %v7065_v41, %v4942_v16  ;;  %vm1987_vm5 = vcmp.eq.s32.totalorder %v7073_v15, %v4942_v16  ;;  %v7084_v15 = vld [vmem:[#allocation80_spill] sm:$0xff]  ;;  %v2514_v7 = vsel %vm2130_vm11, 1, %v7054_v53  ;;  %v7085_v42 = vld [vmem:[#allocation81_spill] sm:$0xff]  ;;  %vm2084_vm4 = vcmp.eq.s32.totalorder %v7094_v13, %v4942_v16 }
 0x280   : > { %v2560_v41 = vsel %vm2176_vm15, 1, %v7054_v53  ;;  %v2659_v60 = vadd.s32 %v2658_v44, %v2275_v8  ;;  %v2371_v44 = vsel %vm1987_vm5, 1, %v7054_v53  ;;  %v2324_v8 = vsel %vm1940_vm9, 1, %v7054_v53 }
 0x281   : > { %v5435_v47 = vpop.permute.xlu1 %1190  ;;  %v5437_v33 = vpop.permute.xlu0 %792  ;;  %v2974_v45 = vadd.s32 %v2973_v10, %v2560_v41  ;;  %v2276_v10 = vsel %vm1892_vm6, 1, %v7054_v53  ;;  %vm2083_vm12 = vcmp.eq.s32.totalorder %v7084_v15, %v4942_v16  ;;  %vm1988_vm13 = vcmp.eq.s32.totalorder %v7085_v42, %v4942_v16  ;;  %v7093_v42 = vld [vmem:[#allocation87_spill] sm:$0xff] }
 0x282   : > { %7067 = vst [vmem:[#allocation25_spill] sm:$0xff] %v5435_v47  ;;  %7068 = vst [vmem:[#allocation26_spill] sm:$0xff] %v5437_v33  ;;  %v2608_v33 = vsel %vm2224_vm2, 1, %v7054_v53  ;;  %v2467_v27 = vsel %vm2083_vm12, 1, %v7054_v53  ;;  %vm2131_vm3 = vcmp.eq.s32.totalorder %v7093_v42, %v4942_v16 }
 0x283   : > { %425 = vbcast.lane.b32.xlu1 %v4999_v28, 288  ;;  %1619 = vbcast.lane.b32.xlu0 %v5305_v31, 264  ;;  %v2975_v47 = vadd.s32 %v2974_v45, %v2561_v40  ;;  %v7091_v45 = vld [vmem:[#allocation85_spill] sm:$0xff]  ;;  %v2372_v40 = vsel %vm1988_vm13, 1, %v7054_v53 }
 0x284   : > { %vm1941_vm1 = vcmp.eq.s32.totalorder %v7091_v45, %v4942_v16 }
 0x285   : > { %v5455_v14 = vpop.permute.xlu1 %394  ;;  %v5457_v49 = vpop.permute.xlu0 %1588 }
 0x286   : > { %7074 = vst [vmem:[#allocation27_spill] sm:$0xff] %v5455_v14  ;;  %7075 = vst [vmem:[#allocation28_spill] sm:$0xff] %v5457_v49  ;;  %v2712_v49 = vadd.s32 %v2711_v11, %v2323_v19  ;;  %v2419_v11 = vsel %vm2035_vm8, 1, %v7054_v53  ;;  %v3027_v19 = vadd.s32 %v3026_v52, %v2608_v33  ;;  %v2765_v14 = vadd.s32 %v2764_v36, %v2371_v44  ;;  %v7088_v36 = vld [vmem:[#allocation82_spill] sm:$0xff] }
 0x287   : > { %1024 = vbcast.lane.b32.xlu1 %v5132_v54, 280  ;;  %626 = vbcast.lane.b32.xlu0 %v5022_v32, 288  ;;  %v2609_v52 = vsel %vm2225_vm10, 1, %v7054_v53  ;;  %vm1893_vm14 = vcmp.eq.s32.totalorder %v7088_v36, %v4942_v16  ;;  %v2923_v44 = vadd.s32 %v2922_v56, %v2514_v7  ;;  %v2325_v36 = vsel %vm1941_vm1, 1, %v7054_v53  ;;  %v7098_v7 = vld [vmem:[#allocation90_spill] sm:$0xff] }
 0x288   : > { %v2713_v33 = vadd.s32 %v2712_v49, %v2324_v8  ;;  %v7090_v49 = vld [vmem:[#allocation84_spill] sm:$0xff]  ;;  %v3028_v26 = vadd.s32 %v3027_v19, %v2609_v52  ;;  %v2515_v19 = vsel %vm2131_vm3, 1, %v7054_v53  ;;  %v2468_v56 = vsel %vm2084_vm4, 1, %v7054_v53 }
 0x289   : > { %v5486_v41 = vpop.permute.xlu1 %993  ;;  %v5488_v62 = vpop.permute.xlu0 %595  ;;  %vm2036_vm0 = vcmp.eq.s32.totalorder %v7090_v49, %v4942_v16  ;;  %v2766_v52 = vadd.s32 %v2765_v14, %v2372_v40  ;;  %vm1894_vm6 = vcmp.eq.s32.totalorder %v7098_v7, %v4942_v16  ;;  %vm2037_vm8 = vcmp.eq.s32.totalorder %v7102_v35, %v4942_v16  ;;  %v7108_v35 = vld [vmem:[#allocation98_spill] sm:$0xff] }
 0x28a   : > { %7080 = vst [vmem:[#allocation29_spill] sm:$0xff] %v5486_v41  ;;  %7081 = vst [vmem:[#allocation30_spill] sm:$0xff] %v5488_v62  ;;  %v2660_v41 = vadd.s32 %v2659_v60, %v2276_v10  ;;  %v2818_v62 = vadd.s32 %v2817_v20, %v2419_v11  ;;  %v7089_v60 = vld [vmem:[#allocation83_spill] sm:$0xff]  ;;  %v7092_v20 = vld [vmem:[#allocation86_spill] sm:$0xff]  ;;  %v2871_v10 = vadd.s32 %v2870_v4, %v2467_v27  ;;  %v2277_v11 = vsel %vm1893_vm14, 1, %v7054_v53 }
 0x28b   : > { %1820 = vbcast.lane.b32.xlu1 %v5367_v59, 264  ;;  %1422 = vbcast.lane.b32.xlu0 %v5258_v57, 272  ;;  %vm2178_vm15 = vcmp.eq.s32.totalorder %v7089_v60, %v4942_v16  ;;  %vm2226_vm2 = vcmp.eq.s32.totalorder %v7092_v20, %v4942_v16  ;;  %v2420_v15 = vsel %vm2036_vm0, 1, %v7054_v53  ;;  %v7097_v4 = vld [vmem:[#allocation89_spill] sm:$0xff]  ;;  %v7099_v27 = vld [vmem:[#allocation91_spill] sm:$0xff]  ;;  %v2278_v7 = vsel %vm1894_vm6, 1, %v7054_v53 }
 0x28c   : > { %v2562_v8 = vsel %vm2178_vm15, 1, %v7054_v53  ;;  %v2610_v45 = vsel %vm2226_vm2, 1, %v7054_v53  ;;  %vm1989_vm5 = vcmp.eq.s32.totalorder %v7097_v4, %v4942_v16  ;;  %vm2179_vm7 = vcmp.eq.s32.totalorder %v7099_v27, %v4942_v16 }
 0x28d   : > { %v5503_v46 = vpop.permute.xlu1 %1789  ;;  %v5505_v21 = vpop.permute.xlu0 %1391  ;;  %v2661_v20 = vadd.s32 %v2660_v41, %v2277_v11  ;;  %v2976_v42 = vadd.s32 %v2975_v47, %v2562_v8  ;;  %v2819_v13 = vadd.s32 %v2818_v62, %v2420_v15  ;;  %v2373_v4 = vsel %vm1989_vm5, 1, %v7054_v53  ;;  %v7103_v47 = vld [vmem:[#allocation93_spill] sm:$0xff]  ;;  %v7104_v41 = vld [vmem:[#allocation94_spill] sm:$0xff]  ;;  %v7105_v62 = vld [vmem:[#allocation95_spill] sm:$0xff] }
 0x28e   : > { %7086 = vst [vmem:[#allocation31_spill] sm:$0xff] %v5503_v46  ;;  %7087 = vst [vmem:[#allocation32_spill] sm:$0xff] %v5505_v21  ;;  %v2924_v21 = vadd.s32 %v2923_v44, %v2515_v19  ;;  %v2872_v46 = vadd.s32 %v2871_v10, %v2468_v56  ;;  %v2563_v27 = vsel %vm2179_vm7, 1, %v7054_v53  ;;  %vm1942_vm9 = vcmp.eq.s32.totalorder %v7103_v47, %v4942_v16  ;;  %v7107_v44 = vld [vmem:[#allocation97_spill] sm:$0xff]  ;;  %v7109_v10 = vld [vmem:[#allocation99_spill] sm:$0xff] }
 0x28f   : > { %1225 = vbcast.lane.b32.xlu1 %v5180_v48, 280  ;;  %827 = vbcast.lane.b32.xlu0 %v5077_v43, 288  ;;  %vm2227_vm10 = vcmp.eq.s32.totalorder %v7104_v41, %v4942_v16  ;;  %vm2132_vm11 = vcmp.eq.s32.totalorder %v7105_v62, %v4942_v16  ;;  %vm1990_vm13 = vcmp.eq.s32.totalorder %v7107_v44, %v4942_v16  ;;  %v2421_v15 = vsel %vm2037_vm8, 1, %v7054_v53  ;;  %v7112_v47 = vld [vmem:[#allocation100_spill] sm:$0xff]  ;;  %v7115_v44 = vld [vmem:[#allocation103_spill] sm:$0xff] }
 0x290   : > { %vm1895_vm14 = vcmp.eq.s32.totalorder %v7108_v35, %v4942_v16  ;;  %vm2180_vm15 = vcmp.eq.s32.totalorder %v7109_v10, %v4942_v16  ;;  %v2662_v11 = vadd.s32 %v2661_v20, %v2278_v7  ;;  %v2977_v8 = vadd.s32 %v2976_v42, %v2563_v27  ;;  %v7113_v27 = vld [vmem:[#allocation101_spill] sm:$0xff] }
 0x291   : > { %v5528_v60 = vpop.permute.xlu1 %1194  ;;  %v5530_v49 = vpop.permute.xlu0 %796  ;;  %v2611_v56 = vsel %vm2227_vm10, 1, %v7054_v53  ;;  %vm2038_vm0 = vcmp.eq.s32.totalorder %v7112_v47, %v4942_v16  ;;  %v2374_v20 = vsel %vm1990_vm13, 1, %v7054_v53  ;;  %v2279_v42 = vsel %vm1895_vm14, 1, %v7054_v53 }
 0x292   : > { %7095 = vst [vmem:[#allocation33_spill] sm:$0xff] %v5528_v60  ;;  %7096 = vst [vmem:[#allocation34_spill] sm:$0xff] %v5530_v49  ;;  %v2714_v49 = vadd.s32 %v2713_v33, %v2325_v36  ;;  %v3029_v60 = vadd.s32 %v3028_v26, %v2610_v45  ;;  %v7106_v33 = vld [vmem:[#allocation96_spill] sm:$0xff]  ;;  %v2767_v26 = vadd.s32 %v2766_v52, %v2373_v4  ;;  %v2326_v36 = vsel %vm1942_vm9, 1, %v7054_v53 }
 0x293   : > { %429 = vbcast.lane.b32.xlu1 %v4999_v28, 296  ;;  %1623 = vbcast.lane.b32.xlu0 %v5305_v31, 272  ;;  %vm2085_vm12 = vcmp.eq.s32.totalorder %v7106_v33, %v4942_v16  ;;  %v2516_v52 = vsel %vm2132_vm11, 1, %v7054_v53  ;;  %v2564_v7 = vsel %vm2180_vm15, 1, %v7054_v53  ;;  %vm1943_vm1 = vcmp.eq.s32.totalorder %v7113_v27, %v4942_v16  ;;  %v7114_v33 = vld [vmem:[#allocation102_spill] sm:$0xff] }
 0x294   : > { %v2469_v4 = vsel %vm2085_vm12, 1, %v7054_v53  ;;  %v2820_v41 = vadd.s32 %v2819_v13, %v2421_v15  ;;  %v2715_v62 = vadd.s32 %v2714_v49, %v2326_v36  ;;  %vm2228_vm2 = vcmp.eq.s32.totalorder %v7114_v33, %v4942_v16  ;;  %v7121_v15 = vld [vmem:[#allocation108_spill] sm:$0xff] }
 0x295   : > { %v5544_v14 = vpop.permute.xlu1 %398  ;;  %v5546_v40 = vpop.permute.xlu0 %1592  ;;  %vm2133_vm3 = vcmp.eq.s32.totalorder %v7115_v44, %v4942_v16  ;;  %v3030_v35 = vadd.s32 %v3029_v60, %v2611_v56  ;;  %v2925_v10 = vadd.s32 %v2924_v21, %v2516_v52  ;;  %v2873_v47 = vadd.s32 %v2872_v46, %v2469_v4  ;;  %v7117_v46 = vld [vmem:[#allocation104_spill] sm:$0xff]  ;;  %v7118_v21 = vld [vmem:[#allocation105_spill] sm:$0xff]  ;;  %v7123_v52 = vld [vmem:[#allocation110_spill] sm:$0xff] }
 0x296   : > { %7100 = vst [vmem:[#allocation35_spill] sm:$0xff] %v5544_v14  ;;  %7101 = vst [vmem:[#allocation36_spill] sm:$0xff] %v5546_v40  ;;  %v2768_v14 = vadd.s32 %v2767_v26, %v2374_v20  ;;  %v2663_v58 = vadd.s32 %v2662_v11, %v2279_v42  ;;  %v2978_v0 = vadd.s32 %v2977_v8, %v2564_v7  ;;  %v2327_v49 = vsel %vm1943_vm1, 1, %v7054_v53  ;;  %v7119_v11 = vld [vmem:[#allocation106_spill] sm:$0xff]  ;;  %v7120_v8 = vld [vmem:[#allocation107_spill] sm:$0xff] }
 0x297   : > { %1028 = vbcast.lane.b32.xlu1 %v5132_v54, 288  ;;  %630 = vbcast.lane.b32.xlu0 %v5022_v32, 296  ;;  %v2612_v13 = vsel %vm2228_vm2, 1, %v7054_v53  ;;  %v2517_v60 = vsel %vm2133_vm3, 1, %v7054_v53  ;;  %vm2086_vm4 = vcmp.eq.s32.totalorder %v7117_v46, %v4942_v16  ;;  %vm1991_vm5 = vcmp.eq.s32.totalorder %v7118_v21, %v4942_v16  ;;  %v7122_v56 = vld [vmem:[#allocation109_spill] sm:$0xff]  ;;  %v7124_v4 = vld [vmem:[#allocation111_spill] sm:$0xff] }
 0x298   : > { %vm1896_vm6 = vcmp.eq.s32.totalorder %v7119_v11, %v4942_v16  ;;  %vm2181_vm7 = vcmp.eq.s32.totalorder %v7120_v8, %v4942_v16  ;;  %vm2039_vm8 = vcmp.eq.s32.totalorder %v7121_v15, %v4942_v16  ;;  %v2716_v36 = vadd.s32 %v2715_v62, %v2327_v49  ;;  %v7127_v49 = vld [vmem:[#allocation112_spill] sm:$0xff]  ;;  %v7129_v11 = vld [vmem:[#allocation114_spill] sm:$0xff]  ;;  %v7130_v8 = vld [vmem:[#allocation115_spill] sm:$0xff] }
 0x299   : > { %v5570_v45 = vpop.permute.xlu1 %997  ;;  %v5572_v19 = vpop.permute.xlu0 %599  ;;  %vm1944_vm9 = vcmp.eq.s32.totalorder %v7122_v56, %v4942_v16  ;;  %vm2229_vm10 = vcmp.eq.s32.totalorder %v7123_v52, %v4942_v16  ;;  %vm2134_vm11 = vcmp.eq.s32.totalorder %v7124_v4, %v4942_v16  ;;  %v3031_v42 = vadd.s32 %v3030_v35, %v2612_v13 }
 0x29a   : > { %7110 = vst [vmem:[#allocation37_spill] sm:$0xff] %v5570_v45  ;;  %7111 = vst [vmem:[#allocation38_spill] sm:$0xff] %v5572_v19  ;;  %v2422_v19 = vsel %vm2038_vm0, 1, %v7054_v53  ;;  %v2926_v7 = vadd.s32 %v2925_v10, %v2517_v60  ;;  %v2470_v27 = vsel %vm2086_vm4, 1, %v7054_v53  ;;  %v2280_v62 = vsel %vm1896_vm6, 1, %v7054_v53  ;;  %v7128_v60 = vld [vmem:[#allocation113_spill] sm:$0xff] }
 0x29b   : > { %1824 = vbcast.lane.b32.xlu1 %v5367_v59, 272  ;;  %1426 = vbcast.lane.b32.xlu0 %v5258_v57, 280  ;;  %v2821_v26 = vadd.s32 %v2820_v41, %v2422_v19  ;;  %v2375_v41 = vsel %vm1991_vm5, 1, %v7054_v53  ;;  %v2565_v33 = vsel %vm2181_vm7, 1, %v7054_v53  ;;  %v2423_v44 = vsel %vm2039_vm8, 1, %v7054_v53 }
 0x29c   : > { %vm2087_vm12 = vcmp.eq.s32.totalorder %v7127_v49, %v4942_v16  ;;  %v2328_v35 = vsel %vm1944_vm9, 1, %v7054_v53  ;;  %v2613_v10 = vsel %vm2229_vm10, 1, %v7054_v53  ;;  %v2518_v13 = vsel %vm2134_vm11, 1, %v7054_v53 }
 0x29d   : > { %v5591_v45 = vpop.permute.xlu1 %1793  ;;  %v5593_v40 = vpop.permute.xlu0 %1395  ;;  %vm1992_vm13 = vcmp.eq.s32.totalorder %v7128_v60, %v4942_v16  ;;  %v2874_v46 = vadd.s32 %v2873_v47, %v2470_v27  ;;  %v2769_v21 = vadd.s32 %v2768_v14, %v2375_v41  ;;  %vm1897_vm14 = vcmp.eq.s32.totalorder %v7129_v11, %v4942_v16 }
 0x29e   : > { %7116 = vst [vmem:[#allocation39_spill] sm:$0xff] %v5593_v40  ;;  %vm2182_vm15 = vcmp.eq.s32.totalorder %v7130_v8, %v4942_v16  ;;  %v2664_v52 = vadd.s32 %v2663_v58, %v2280_v62  ;;  %v2979_v4 = vadd.s32 %v2978_v0, %v2565_v33  ;;  %v2471_v60 = vsel %vm2087_vm12, 1, %v7054_v53  ;;  %v7133_v0 = vld [vmem:[#allocation116_spill] sm:$0xff] }
 0x29f   : > { %1229 = vbcast.lane.b32.xlu1 %v5180_v48, 288  ;;  %831 = vbcast.lane.b32.xlu0 %v5077_v43, 296  ;;  %v2717_v47 = vadd.s32 %v2716_v36, %v2328_v35  ;;  %v3032_v14 = vadd.s32 %v3031_v42, %v2613_v10  ;;  %v2927_v27 = vadd.s32 %v2926_v7, %v2518_v13  ;;  %v2376_v41 = vsel %vm1992_vm13, 1, %v7054_v53  ;;  %v7135_v36 = vld [vmem:[#allocation118_spill] sm:$0xff]  ;;  %v7136_v42 = vld [vmem:[#allocation119_spill] sm:$0xff]  ;;  %v7137_v7 = vld [vmem:[#allocation120_spill] sm:$0xff] }
 0x2a0   : > { %v2281_v11 = vsel %vm1897_vm14, 1, %v7054_v53  ;;  %v2566_v58 = vsel %vm2182_vm15, 1, %v7054_v53  ;;  %vm2040_vm0 = vcmp.eq.s32.totalorder %v7133_v0, %v4942_v16  ;;  %v2875_v62 = vadd.s32 %v2874_v46, %v2471_v60  ;;  %v7140_v35 = vld [vmem:[#allocation121_spill] sm:$0xff]  ;;  %v7141_v10 = vld [vmem:[#allocation122_spill] sm:$0xff]  ;;  %v7142_v13 = vld [vmem:[#allocation123_spill] sm:$0xff] }
 0x2a1   : > { %v5619_v19 = vpop.permute.xlu1 %1198  ;;  %v5621_v20 = vpop.permute.xlu0 %800  ;;  %vm2230_vm2 = vcmp.eq.s32.totalorder %v7135_v36, %v4942_v16  ;;  %vm2135_vm3 = vcmp.eq.s32.totalorder %v7136_v42, %v4942_v16  ;;  %vm2088_vm4 = vcmp.eq.s32.totalorder %v7137_v7, %v4942_v16  ;;  %v2770_v49 = vadd.s32 %v2769_v21, %v2376_v41  ;;  %v7143_v36 = vld [vmem:[#allocation124_spill] sm:$0xff] }
 0x2a2   : > { %7125 = vst [vmem:[#allocation40_spill] sm:$0xff] %v5619_v19  ;;  %7126 = vst [vmem:[#allocation41_spill] sm:$0xff] %v5621_v20  ;;  %v2822_v20 = vadd.s32 %v2821_v26, %v2423_v44  ;;  %v7134_v26 = vld [vmem:[#allocation117_spill] sm:$0xff]  ;;  %vm1993_vm5 = vcmp.eq.s32.totalorder %v7140_v35, %v4942_v16  ;;  %vm1898_vm6 = vcmp.eq.s32.totalorder %v7141_v10, %v4942_v16  ;;  %v2424_v60 = vsel %vm2040_vm0, 1, %v7054_v53 }
 0x2a3   : > { %433 = vbcast.lane.b32.xlu1 %v4999_v28, 304  ;;  %1627 = vbcast.lane.b32.xlu0 %v5305_v31, 280  ;;  %vm1945_vm1 = vcmp.eq.s32.totalorder %v7134_v26, %v4942_v16  ;;  %vm2183_vm7 = vcmp.eq.s32.totalorder %v7142_v13, %v4942_v16  ;;  %v2665_v46 = vadd.s32 %v2664_v52, %v2281_v11  ;;  %v2614_v21 = vsel %vm2230_vm2, 1, %v7054_v53  ;;  %v7147_v13 = vld [vmem:[#allocation126_spill] sm:$0xff] }
 0x2a4   : > { %v2980_v8 = vadd.s32 %v2979_v4, %v2566_v58  ;;  %v2329_v0 = vsel %vm1945_vm1, 1, %v7054_v53  ;;  %v2519_v41 = vsel %vm2135_vm3, 1, %v7054_v53  ;;  %v2472_v26 = vsel %vm2088_vm4, 1, %v7054_v53  ;;  %v7144_v58 = vld [vmem:[#allocation125_spill] sm:$0xff] }
 0x2a5   : > { %v5647_v15 = vpop.permute.xlu1 %402  ;;  %v5649_v56 = vpop.permute.xlu0 %1596  ;;  %vm2041_vm8 = vcmp.eq.s32.totalorder %v7143_v36, %v4942_v16  ;;  %v2377_v52 = vsel %vm1993_vm5, 1, %v7054_v53  ;;  %v2282_v4 = vsel %vm1898_vm6, 1, %v7054_v53  ;;  %v2567_v11 = vsel %vm2183_vm7, 1, %v7054_v53  ;;  %v7148_v36 = vld [vmem:[#allocation127_spill] sm:$0xff] }
 0x2a6   : > { %7131 = vst [vmem:[#allocation42_spill] sm:$0xff] %v5647_v15  ;;  %7132 = vst [vmem:[#allocation43_spill] sm:$0xff] %v5649_v56  ;;  %vm1946_vm9 = vcmp.eq.s32.totalorder %v7144_v58, %v4942_v16  ;;  %v2823_v35 = vadd.s32 %v2822_v20, %v2424_v60  ;;  %v2718_v10 = vadd.s32 %v2717_v47, %v2329_v0  ;;  %v2425_v15 = vsel %vm2041_vm8, 1, %v7054_v53  ;;  %v7154_v0 = vld [vmem:[#allocation131_spill] sm:$0xff] }
 0x2a7   : > { %1032 = vbcast.lane.b32.xlu1 %v5132_v54, 296  ;;  %634 = vbcast.lane.b32.xlu0 %v5022_v32, 304  ;;  %vm2231_vm10 = vcmp.eq.s32.totalorder %v7147_v13, %v4942_v16  ;;  %vm2136_vm11 = vcmp.eq.s32.totalorder %v7148_v36, %v4942_v16  ;;  %v2876_v56 = vadd.s32 %v2875_v62, %v2472_v26  ;;  %v2330_v20 = vsel %vm1946_vm9, 1, %v7054_v53  ;;  %v7150_v62 = vld [vmem:[#allocation129_spill] sm:$0xff]  ;;  %v7158_v36 = vld [vmem:[#allocation135_spill] sm:$0xff] }
 0x2a8   : > { %v2666_v19 = vadd.s32 %v2665_v46, %v2282_v4  ;;  %v2615_v47 = vsel %vm2231_vm10, 1, %v7054_v53  ;;  %vm1994_vm13 = vcmp.eq.s32.totalorder %v7150_v62, %v4942_v16  ;;  %v2824_v46 = vadd.s32 %v2823_v35, %v2425_v15  ;;  %v7156_v26 = vld [vmem:[#allocation133_spill] sm:$0xff] }
 0x2a9   : > { %v5670_v33 = vpop.permute.xlu1 %1001  ;;  %v5672_v44 = vpop.permute.xlu0 %603  ;;  %vm2184_vm15 = vcmp.eq.s32.totalorder %v7154_v0, %v4942_v16  ;;  %vm1947_vm1 = vcmp.eq.s32.totalorder %v7156_v26, %v4942_v16  ;;  %v2378_v58 = vsel %vm1994_vm13, 1, %v7054_v53  ;;  %vm2137_vm3 = vcmp.eq.s32.totalorder %v7158_v36, %v4942_v16  ;;  %v7163_v0 = vld [vmem:[#allocation138_spill] sm:$0xff] }
 0x2aa   : > { %7138 = vst [vmem:[#allocation44_spill] sm:$0xff] %v5670_v33  ;;  %7139 = vst [vmem:[#allocation45_spill] sm:$0xff] %v5672_v44  ;;  %v3033_v44 = vadd.s32 %v3032_v14, %v2614_v21  ;;  %v2928_v33 = vadd.s32 %v2927_v27, %v2519_v41  ;;  %v2520_v14 = vsel %vm2136_vm11, 1, %v7054_v53  ;;  %v7149_v27 = vld [vmem:[#allocation128_spill] sm:$0xff]  ;;  %v2719_v41 = vadd.s32 %v2718_v10, %v2330_v20 }
 0x2ab   : > { %1828 = vbcast.lane.b32.xlu1 %v5367_v59, 280  ;;  %1430 = vbcast.lane.b32.xlu0 %v5258_v57, 288  ;;  %vm2089_vm12 = vcmp.eq.s32.totalorder %v7149_v27, %v4942_v16  ;;  %v7155_v21 = vld [vmem:[#allocation132_spill] sm:$0xff]  ;;  %v2568_v10 = vsel %vm2184_vm15, 1, %v7054_v53  ;;  %vm1900_vm6 = vcmp.eq.s32.totalorder %v7163_v0, %v4942_v16  ;;  %v2521_v36 = vsel %vm2137_vm3, 1, %v7054_v53 }
 0x2ac   : > { %vm2042_vm0 = vcmp.eq.s32.totalorder %v7155_v21, %v4942_v16  ;;  %v3034_v15 = vadd.s32 %v3033_v44, %v2615_v47  ;;  %v2929_v4 = vadd.s32 %v2928_v33, %v2520_v14  ;;  %v2331_v44 = vsel %vm1947_vm1, 1, %v7054_v53  ;;  %v7161_v47 = vld [vmem:[#allocation136_spill] sm:$0xff]  ;;  %v7162_v14 = vld [vmem:[#allocation137_spill] sm:$0xff] }
 0x2ad   : > { %v5694_v42 = vpop.permute.xlu1 %1797  ;;  %v5696_v7 = vpop.permute.xlu0 %1399  ;;  %v2426_v13 = vsel %vm2042_vm0, 1, %v7054_v53  ;;  %vm2090_vm4 = vcmp.eq.s32.totalorder %v7161_v47, %v4942_v16  ;;  %vm1995_vm5 = vcmp.eq.s32.totalorder %v7162_v14, %v4942_v16  ;;  %vm2139_vm3 = vcmp.eq.s32.totalorder %v4931_v61, %v4942_v16 }
 0x2ae   : > { %7145 = vst [vmem:[#allocation46_spill] sm:$0xff] %v5694_v42  ;;  %7146 = vst [vmem:[#allocation47_spill] sm:$0xff] %v5696_v7  ;;  %v2771_v42 = vadd.s32 %v2770_v49, %v2377_v52  ;;  %v2981_v7 = vadd.s32 %v2980_v8, %v2567_v11  ;;  %v7153_v8 = vld [vmem:[#allocation130_spill] sm:$0xff]  ;;  %v2473_v11 = vsel %vm2089_vm12, 1, %v7054_v53  ;;  %v2474_v47 = vsel %vm2090_vm4, 1, %v7054_v53 }
 0x2af   : > { %1233 = vbcast.lane.b32.xlu1 %v5180_v48, 296  ;;  %835 = vbcast.lane.b32.xlu0 %v5077_v43, 304  ;;  %vm1899_vm14 = vcmp.eq.s32.totalorder %v7153_v8, %v4942_v16  ;;  %v7157_v52 = vld [vmem:[#allocation134_spill] sm:$0xff]  ;;  %v2877_v62 = vadd.s32 %v2876_v56, %v2473_v11  ;;  %v2379_v14 = vsel %vm1995_vm5, 1, %v7054_v53  ;;  %v2284_v11 = vsel %vm1900_vm6, 1, %v7054_v53 }
 0x2b0   : > { %vm2232_vm2 = vcmp.eq.s32.totalorder %v7157_v52, %v4942_v16  ;;  %v2283_v35 = vsel %vm1899_vm14, 1, %v7054_v53  ;;  %v2772_v8 = vadd.s32 %v2771_v42, %v2378_v58  ;;  %v2982_v26 = vadd.s32 %v2981_v7, %v2568_v10  ;;  %v7166_v58 = vld [vmem:[#allocation139_spill] sm:$0xff]  ;;  %v7168_v7 = vld [vmem:[#allocation141_spill] sm:$0xff] }
 0x2b1   : > { %v5715_v60 = vpop.permute.xlu1 %1202  ;;  %v5717_v49 = vpop.permute.xlu0 %804  ;;  %v2616_v33 = vsel %vm2232_vm2, 1, %v7054_v53  ;;  %v2667_v21 = vadd.s32 %v2666_v19, %v2283_v35  ;;  %v2825_v52 = vadd.s32 %v2824_v46, %v2426_v13  ;;  %vm2185_vm7 = vcmp.eq.s32.totalorder %v7166_v58, %v4942_v16  ;;  %v7167_v19 = vld [vmem:[#allocation140_spill] sm:$0xff] }
 0x2b2   : > { %7151 = vst [vmem:[#allocation48_spill] sm:$0xff] %v5715_v60  ;;  %7152 = vst [vmem:[#allocation49_spill] sm:$0xff] %v5717_v49  ;;  %vm2043_vm8 = vcmp.eq.s32.totalorder %v7167_v19, %v4942_v16  ;;  %vm1948_vm9 = vcmp.eq.s32.totalorder %v7168_v7, %v4942_v16  ;;  %v2930_v46 = vadd.s32 %v2929_v4, %v2521_v36  ;;  %v7171_v13 = vld [vmem:[#allocation144_spill] sm:$0xff]  ;;  %v2569_v4 = vsel %vm2185_vm7, 1, %v7054_v53 }
 0x2b3   : > { %437 = vbcast.lane.b32.xlu1 %v4999_v28, 312  ;;  %1631 = vbcast.lane.b32.xlu0 %v5305_v31, 288  ;;  %v2878_v35 = vadd.s32 %v2877_v62, %v2474_v47  ;;  %v2773_v10 = vadd.s32 %v2772_v8, %v2379_v14  ;;  %vm2091_vm12 = vcmp.eq.s32.totalorder %v7171_v13, %v4942_v16  ;;  %v2427_v0 = vsel %vm2043_vm8, 1, %v7054_v53  ;;  %v7175_v47 = vld [vmem:[#allocation146_spill] sm:$0xff]  ;;  %v7176_v14 = vld [vmem:[#allocation147_spill] sm:$0xff]  ;;  %v7177_v7 = vld [vmem:[#allocation148_spill] sm:$0xff] }
 0x2b4   : > { %v2332_v36 = vsel %vm1948_vm9, 1, %v7054_v53  ;;  %vm1901_vm14 = vcmp.eq.s32.totalorder %v7175_v47, %v4942_v16  ;;  %vm2186_vm15 = vcmp.eq.s32.totalorder %v7176_v14, %v4942_v16  ;;  %vm2044_vm0 = vcmp.eq.s32.totalorder %v7177_v7, %v4942_v16  ;;  %v7179_v47 = vld [vmem:[#allocation150_spill] sm:$0xff] }
 0x2b5   : > { %v5738_v20 = vpop.permute.xlu1 %409  ;;  %v5740_v27 = vpop.permute.xlu0 %1600  ;;  %v2826_v13 = vadd.s32 %v2825_v52, %v2427_v0  ;;  %vm2234_vm2 = vcmp.eq.s32.totalorder %v7179_v47, %v4942_v16  ;;  %vm2092_vm4 = vcmp.eq.s32.totalorder %v4935_v18, %v4942_v16  ;;  %v7180_v52 = vld [vmem:[#allocation151_spill] sm:$0xff] }
 0x2b6   : > { %7159 = vst [vmem:[#allocation50_spill] sm:$0xff] %v5738_v20  ;;  %7160 = vst [vmem:[#allocation51_spill] sm:$0xff] %v5740_v27  ;;  %v2720_v27 = vadd.s32 %v2719_v41, %v2331_v44  ;;  %v3035_v20 = vadd.s32 %v3034_v15, %v2616_v33  ;;  %v7169_v41 = vld [vmem:[#allocation142_spill] sm:$0xff]  ;;  %v7170_v15 = vld [vmem:[#allocation143_spill] sm:$0xff]  ;;  %v2668_v33 = vadd.s32 %v2667_v21, %v2284_v11  ;;  %v2475_v21 = vsel %vm2091_vm12, 1, %v7054_v53 }
 0x2b7   : > { %1036 = vbcast.lane.b32.xlu1 %v5132_v54, 304  ;;  %638 = vbcast.lane.b32.xlu0 %v5022_v32, 312  ;;  %vm2233_vm10 = vcmp.eq.s32.totalorder %v7169_v41, %v4942_v16  ;;  %vm2138_vm11 = vcmp.eq.s32.totalorder %v7170_v15, %v4942_v16  ;;  %v7172_v44 = vld [vmem:[#allocation145_spill] sm:$0xff]  ;;  %v2983_v15 = vadd.s32 %v2982_v26, %v2569_v4  ;;  %v2618_v26 = vsel %vm2234_vm2, 1, %v7054_v53 }
 0x2b8   : > { %vm1996_vm13 = vcmp.eq.s32.totalorder %v7172_v44, %v4942_v16  ;;  %v2617_v62 = vsel %vm2233_vm10, 1, %v7054_v53  ;;  %v2522_v8 = vsel %vm2138_vm11, 1, %v7054_v53  ;;  %v7178_v41 = vld [vmem:[#allocation149_spill] sm:$0xff]  ;;  %v2721_v44 = vadd.s32 %v2720_v27, %v2332_v36 }
 0x2b9   : > { %v5755_v56 = vpop.permute.xlu1 %1005  ;;  %v5757_v42 = vpop.permute.xlu0 %610  ;;  %v2380_v11 = vsel %vm1996_vm13, 1, %v7054_v53  ;;  %vm1949_vm1 = vcmp.eq.s32.totalorder %v7178_v41, %v4942_v16  ;;  %v3036_v14 = vadd.s32 %v3035_v20, %v2617_v62  ;;  %v2879_v60 = vadd.s32 %v2878_v35, %v2475_v21  ;;  %v7182_v4 = vld [vmem:[#allocation153_spill] sm:$0xff]  ;;  %v7183_v62 = vld [vmem:[#allocation154_spill] sm:$0xff] }
 0x2ba   : > { %7164 = vst [vmem:[#allocation52_spill] sm:$0xff] %v5755_v56  ;;  %7165 = vst [vmem:[#allocation53_spill] sm:$0xff] %v5757_v42  ;;  %v2570_v42 = vsel %vm2186_vm15, 1, %v7054_v53  ;;  %v2774_v40 = vadd.s32 %v2773_v10, %v2380_v11  ;;  %v2428_v27 = vsel %vm2044_vm0, 1, %v7054_v53  ;;  %v2333_v20 = vsel %vm1949_vm1, 1, %v7054_v53  ;;  %v7181_v10 = vld [vmem:[#allocation152_spill] sm:$0xff] }
 0x2bb   : > { %1832 = vbcast.lane.b32.xlu1 %v5367_v59, 288  ;;  %1434 = vbcast.lane.b32.xlu0 %v5258_v57, 296  ;;  %vm1997_vm5 = vcmp.eq.s32.totalorder %v7180_v52, %v4942_v16  ;;  %v2984_v35 = vadd.s32 %v2983_v15, %v2570_v42  ;;  %vm1902_vm6 = vcmp.eq.s32.totalorder %v7181_v10, %v4942_v16  ;;  %v2523_v42 = vsel %vm2139_vm3, 1, %v7054_v53 }
 0x2bc   : > { %vm2187_vm7 = vcmp.eq.s32.totalorder %v7182_v4, %v4942_v16  ;;  %v2827_v0 = vadd.s32 %v2826_v13, %v2428_v27  ;;  %v2722_v36 = vadd.s32 %v2721_v44, %v2333_v20  ;;  %vm2045_vm8 = vcmp.eq.s32.totalorder %v7183_v62, %v4942_v16  ;;  %v7185_v13 = vld [vmem:[#allocation156_spill] sm:$0xff] }
 0x2bd   : > { %v5779_v58 = vpop.permute.xlu1 %1801  ;;  %v5781_v19 = vpop.permute.xlu0 %1403  ;;  %v2381_v7 = vsel %vm1997_vm5, 1, %v7054_v53  ;;  %v2286_v41 = vsel %vm1902_vm6, 1, %v7054_v53  ;;  %v2571_v15 = vsel %vm2187_vm7, 1, %v7054_v53  ;;  %vm2235_vm10 = vcmp.eq.s32.totalorder %v4987_v5, %v4942_v16 }
 0x2be   : > { %7173 = vst [vmem:[#allocation13_spill] sm:$0xff] %v5779_v58  ;;  %7174 = vst [vmem:[#allocation54_spill] sm:$0xff] %v5781_v19  ;;  %v2931_v19 = vadd.s32 %v2930_v46, %v2522_v8  ;;  %v2285_v58 = vsel %vm1901_vm14, 1, %v7054_v53  ;;  %v7184_v8 = vld [vmem:[#allocation155_spill] sm:$0xff]  ;;  %vm2140_vm11 = vcmp.eq.s32.totalorder %v4989_v12, %v4942_v16  ;;  %v2429_v61 = vsel %vm2045_vm8, 1, %v7054_v53 }
 0x2bf   : > { %1237 = vbcast.lane.b32.xlu1 %v5180_v48, 304  ;;  %839 = vbcast.lane.b32.xlu0 %v5077_v43, 312  ;;  %v2669_v46 = vadd.s32 %v2668_v33, %v2285_v58  ;;  %vm1950_vm9 = vcmp.eq.s32.totalorder %v7184_v8, %v4942_v16  ;;  %v3037_v33 = vadd.s32 %v3036_v14, %v2618_v26  ;;  %v2476_v58 = vsel %vm2092_vm4, 1, %v7054_v53 }
 0x2c0   : > { %v2334_v18 = vsel %vm1950_vm9, 1, %v7054_v53  ;;  %vm2093_vm12 = vcmp.eq.s32.totalorder %v7185_v13, %v4942_v16  ;;  %vm1998_vm13 = vcmp.eq.s32.totalorder %v5015_v1, %v4942_v16  ;;  %v2932_v44 = vadd.s32 %v2931_v19, %v2523_v42 }
 0x2c1   : > { %v5801_v56 = vpop.permute.xlu1 %1206  ;;  %v5803_v49 = vpop.permute.xlu0 %811  ;;  %v2880_v47 = vadd.s32 %v2879_v60, %v2476_v58  ;;  %v2775_v14 = vadd.s32 %v2774_v40, %v2381_v7  ;;  %vm1903_vm14 = vcmp.eq.s32.totalorder %v5035_v2, %v4942_v16  ;;  %v2670_v26 = vadd.s32 %v2669_v46, %v2286_v41 }
 0x2c2   : > { %v2985_v52 = vadd.s32 %v2984_v35, %v2571_v15  ;;  %v2619_v10 = vsel %vm2235_vm10, 1, %v7054_v53  ;;  %v2524_v1 = vsel %vm2140_vm11, 1, %v7054_v53  ;;  %v2828_v40 = vadd.s32 %v2827_v0, %v2429_v61 }
 0x2c3   : > { %441 = vbcast.lane.b32.xlu1 %v4999_v28, 320  ;;  %1635 = vbcast.lane.b32.xlu0 %v5305_v31, 296  ;;  %v2723_v60 = vadd.s32 %v2722_v36, %v2334_v18  ;;  %v2477_v2 = vsel %vm2093_vm12, 1, %v7054_v53  ;;  %v2382_v19 = vsel %vm1998_vm13, 1, %v7054_v53  ;;  %v2287_v46 = vsel %vm1903_vm14, 1, %v7054_v53 }
 0x2c4   : > { %vm2188_vm15 = vcmp.eq.s32.totalorder %v5037_v17, %v4942_v16  ;;  %vm2046_vm0 = vcmp.eq.s32.totalorder %v5057_v30, %v4942_v16  ;;  %vm1951_vm1 = vcmp.eq.s32.totalorder %v5059_v63, %v4942_v16  ;;  %v3038_v12 = vadd.s32 %v3037_v33, %v2619_v10 }
 0x2c5   : > { %v5830_v21 = vpop.permute.xlu1 %413  ;;  %v5832_v11 = vpop.permute.xlu0 %1604  ;;  %v2933_v5 = vadd.s32 %v2932_v44, %v2524_v1  ;;  %vm2236_vm2 = vcmp.eq.s32.totalorder %v5081_v23, %v4942_v16  ;;  %vm2141_vm3 = vcmp.eq.s32.totalorder %v5083_v34, %v4942_v16  ;;  %v2881_v0 = vadd.s32 %v2880_v47, %v2477_v2  ;;  %v7186_v1 = vld [vmem:[#allocation14_spill] sm:$0xff] }
 0x2c6   : > { %v2776_v17 = vadd.s32 %v2775_v14, %v2382_v19  ;;  %vm2094_vm4 = vcmp.eq.s32.totalorder %v5115_v50, %v4942_v16  ;;  %vm1999_vm5 = vcmp.eq.s32.totalorder %v5117_v51, %v4942_v16  ;;  %v2671_v30 = vadd.s32 %v2670_v26, %v2287_v46  ;;  %v7188_v19 = vld [vmem:[#allocation16_spill] sm:$0xff]  ;;  %v7189_v46 = vld [vmem:[#allocation17_spill] sm:$0xff] }
 0x2c7   : > { %1040 = vbcast.lane.b32.xlu1 %v5132_v54, 312  ;;  %642 = vbcast.lane.b32.xlu0 %v5022_v32, 320  ;;  %v2572_v63 = vsel %vm2188_vm15, 1, %v7054_v53  ;;  %v2430_v23 = vsel %vm2046_vm0, 1, %v7054_v53  ;;  %v2335_v36 = vsel %vm1951_vm1, 1, %v7054_v53  ;;  %v2620_v34 = vsel %vm2236_vm2, 1, %v7054_v53 }
 0x2c8   : > { %v2525_v62 = vsel %vm2141_vm3, 1, %v7054_v53  ;;  %vm1904_vm6 = vcmp.eq.s32.totalorder %v5144_v9, %v4942_v16  ;;  %vm2189_vm7 = vcmp.eq.s32.totalorder %v5146_v25, %v4942_v16  ;;  %v2478_v50 = vsel %vm2094_vm4, 1, %v7054_v53 }
 0x2c9   : > { %v5862_v27 = vpop.permute.xlu1 %1012  ;;  %v5864_v20 = vpop.permute.xlu0 %614  ;;  %v2383_v51 = vsel %vm1999_vm5, 1, %v7054_v53  ;;  %vm2047_vm8 = vcmp.eq.s32.totalorder %v5168_v22, %v4942_v16  ;;  %vm1952_vm9 = vcmp.eq.s32.totalorder %v5170_v29, %v4942_v16  ;;  %v2986_v42 = vadd.s32 %v2985_v52, %v2572_v63 }
 0x2ca   : > { %v2829_v58 = vadd.s32 %v2828_v40, %v2430_v23  ;;  %v2724_v9 = vadd.s32 %v2723_v60, %v2335_v36  ;;  %vm2237_vm10 = vcmp.eq.s32.totalorder %v5194_v37, %v4942_v16  ;;  %v3039_v25 = vadd.s32 %v3038_v12, %v2620_v34  ;;  %v7190_v12 = vld [vmem:[#allocation18_spill] sm:$0xff] }
 0x2cb   : > { %1836 = vbcast.lane.b32.xlu1 %v5367_v59, 296  ;;  %1438 = vbcast.lane.b32.xlu0 %v5258_v57, 304  ;;  %v2934_v7 = vadd.s32 %v2933_v5, %v2525_v62  ;;  %v2288_v41 = vsel %vm1904_vm6, 1, %v7054_v53  ;;  %v2573_v15 = vsel %vm2189_vm7, 1, %v7054_v53  ;;  %v2882_v61 = vadd.s32 %v2881_v0, %v2478_v50 }
 0x2cc   : > { %v2777_v18 = vadd.s32 %v2776_v17, %v2383_v51  ;;  %v2431_v13 = vsel %vm2047_vm8, 1, %v7054_v53  ;;  %v2336_v37 = vsel %vm1952_vm9, 1, %v7054_v53  ;;  %v2621_v44 = vsel %vm2237_vm10, 1, %v7054_v53 }
 0x2cd   : > { %v5889_v35 = vpop.permute.xlu1 %1805  ;;  %v5891_v4 = vpop.permute.xlu0 %1407  ;;  %vm2142_vm11 = vcmp.eq.s32.totalorder %v5196_v55, %v4942_v16  ;;  %vm2095_vm12 = vcmp.eq.s32.totalorder %v5223_v3, %v4942_v16  ;;  %vm2000_vm13 = vcmp.eq.s32.totalorder %v5225_v6, %v4942_v16  ;;  %v2672_v14 = vadd.s32 %v2671_v30, %v2288_v41  ;;  %v7194_v41 = vld [vmem:[#allocation22_spill] sm:$0xff] }
 0x2ce   : > { %v2987_v26 = vadd.s32 %v2986_v42, %v2573_v15  ;;  %vm1905_vm14 = vcmp.eq.s32.totalorder %v5242_v38, %v4942_v16  ;;  %vm2190_vm15 = vcmp.eq.s32.totalorder %v5244_v39, %v4942_v16  ;;  %v2830_v29 = vadd.s32 %v2829_v58, %v2431_v13 }
 0x2cf   : > { %1241 = vbcast.lane.b32.xlu1 %v5180_v48, 312  ;;  %843 = vbcast.lane.b32.xlu0 %v5077_v43, 320  ;;  %v2725_v55 = vadd.s32 %v2724_v9, %v2336_v37  ;;  %vm2048_vm0 = vcmp.eq.s32.totalorder %v5265_v24, %v4942_v16  ;;  %v3040_v3 = vadd.s32 %v3039_v25, %v2621_v44  ;;  %v2526_v6 = vsel %vm2142_vm11, 1, %v7054_v53  ;;  %v7187_v24 = vld [vmem:[#allocation15_spill] sm:$0xff]  ;;  %v7192_v25 = vld [vmem:[#allocation20_spill] sm:$0xff] }
 0x2d0   : > { %v2479_v52 = vsel %vm2095_vm12, 1, %v7054_v53  ;;  %v2384_v10 = vsel %vm2000_vm13, 1, %v7054_v53  ;;  %v2289_v38 = vsel %vm1905_vm14, 1, %v7054_v53  ;;  %v2574_v39 = vsel %vm2190_vm15, 1, %v7054_v53  ;;  %v7191_v9 = vld [vmem:[#allocation19_spill] sm:$0xff] }
 0x2d1   : > { %v5914_v8 = vpop.permute.xlu1 %1213  ;;  %v5916_v33 = vpop.permute.xlu0 %815  ;;  %vm1953_vm1 = vcmp.eq.s32.totalorder %v7186_v1, %v4942_v16  ;;  %vm2238_vm2 = vcmp.eq.s32.totalorder %v7187_v24, %v4942_v16  ;;  %v2432_v2 = vsel %vm2048_vm0, 1, %v7054_v53  ;;  %vm2143_vm3 = vcmp.eq.s32.totalorder %v7188_v19, %v4942_v16  ;;  %v7199_v1 = vld [vmem:[#allocation27_spill] sm:$0xff]  ;;  %v7201_v19 = vld [vmem:[#allocation29_spill] sm:$0xff] }
 0x2d2   : > { %vm2096_vm4 = vcmp.eq.s32.totalorder %v7189_v46, %v4942_v16  ;;  %vm2001_vm5 = vcmp.eq.s32.totalorder %v7190_v12, %v4942_v16  ;;  %v2935_v5 = vadd.s32 %v2934_v7, %v2526_v6  ;;  %v2883_v0 = vadd.s32 %v2882_v61, %v2479_v52  ;;  %v7193_v7 = vld [vmem:[#allocation21_spill] sm:$0xff]  ;;  %v7202_v46 = vld [vmem:[#allocation30_spill] sm:$0xff] }
 0x2d3   : > { %445 = vbcast.lane.b32.xlu1 %v4999_v28, 328  ;;  %1639 = vbcast.lane.b32.xlu0 %v5305_v31, 304  ;;  %v2778_v17 = vadd.s32 %v2777_v18, %v2384_v10  ;;  %v2673_v30 = vadd.s32 %v2672_v14, %v2289_v38  ;;  %v2988_v63 = vadd.s32 %v2987_v26, %v2574_v39  ;;  %v2337_v23 = vsel %vm1953_vm1, 1, %v7054_v53  ;;  %v7195_v18 = vld [vmem:[#allocation23_spill] sm:$0xff]  ;;  %v7196_v14 = vld [vmem:[#allocation24_spill] sm:$0xff]  ;;  %v7197_v38 = vld [vmem:[#allocation25_spill] sm:$0xff] }
 0x2d4   : > { %v2622_v36 = vsel %vm2238_vm2, 1, %v7054_v53  ;;  %v2831_v34 = vadd.s32 %v2830_v29, %v2432_v2  ;;  %v2527_v62 = vsel %vm2143_vm3, 1, %v7054_v53  ;;  %v2480_v50 = vsel %vm2096_vm4, 1, %v7054_v53  ;;  %v7198_v39 = vld [vmem:[#allocation26_spill] sm:$0xff]  ;;  %v7200_v2 = vld [vmem:[#allocation28_spill] sm:$0xff] }
 0x2d5   : > { %v5939_v47 = vpop.permute.xlu1 %417  ;;  %v5941_v22 = vpop.permute.xlu0 %1608  ;;  %v2385_v51 = vsel %vm2001_vm5, 1, %v7054_v53  ;;  %vm1906_vm6 = vcmp.eq.s32.totalorder %v7191_v9, %v4942_v16  ;;  %vm2191_vm7 = vcmp.eq.s32.totalorder %v7192_v25, %v4942_v16  ;;  %vm2049_vm8 = vcmp.eq.s32.totalorder %v7193_v7, %v4942_v16  ;;  %v7203_v7 = vld [vmem:[#allocation31_spill] sm:$0xff] }
 0x2d6   : > { %vm1954_vm9 = vcmp.eq.s32.totalorder %v7194_v41, %v4942_v16  ;;  %v2726_v15 = vadd.s32 %v2725_v55, %v2337_v23  ;;  %v3041_v61 = vadd.s32 %v3040_v3, %v2622_v36  ;;  %vm2239_vm10 = vcmp.eq.s32.totalorder %v7195_v18, %v4942_v16  ;;  %v7204_v41 = vld [vmem:[#allocation32_spill] sm:$0xff] }
 0x2d7   : > { %1044 = vbcast.lane.b32.xlu1 %v5132_v54, 320  ;;  %646 = vbcast.lane.b32.xlu0 %v5022_v32, 328  ;;  %v2936_v13 = vadd.s32 %v2935_v5, %v2527_v62  ;;  %v2884_v37 = vadd.s32 %v2883_v0, %v2480_v50  ;;  %v2779_v44 = vadd.s32 %v2778_v17, %v2385_v51  ;;  %v2290_v26 = vsel %vm1906_vm6, 1, %v7054_v53 }
 0x2d8   : > { %vm2144_vm11 = vcmp.eq.s32.totalorder %v7196_v14, %v4942_v16  ;;  %v2575_v29 = vsel %vm2191_vm7, 1, %v7054_v53  ;;  %v2433_v55 = vsel %vm2049_vm8, 1, %v7054_v53  ;;  %v2338_v3 = vsel %vm1954_vm9, 1, %v7054_v53  ;;  %v7206_v14 = vld [vmem:[#allocation34_spill] sm:$0xff] }
 0x2d9   : > { %v5960_v40 = vpop.permute.xlu1 %1016  ;;  %v5962_v60 = vpop.permute.xlu0 %618  ;;  %v2623_v10 = vsel %vm2239_vm10, 1, %v7054_v53  ;;  %vm2097_vm12 = vcmp.eq.s32.totalorder %v7197_v38, %v4942_v16  ;;  %vm2002_vm13 = vcmp.eq.s32.totalorder %v7198_v39, %v4942_v16  ;;  %vm1907_vm14 = vcmp.eq.s32.totalorder %v7199_v1, %v4942_v16 }
 0x2da   : > { %v2528_v24 = vsel %vm2144_vm11, 1, %v7054_v53  ;;  %vm2192_vm15 = vcmp.eq.s32.totalorder %v7200_v2, %v4942_v16  ;;  %vm2050_vm0 = vcmp.eq.s32.totalorder %v7201_v19, %v4942_v16  ;;  %vm1955_vm1 = vcmp.eq.s32.totalorder %v7202_v46, %v4942_v16  ;;  %v7209_v2 = vld [vmem:[#allocation37_spill] sm:$0xff]  ;;  %v7210_v19 = vld [vmem:[#allocation38_spill] sm:$0xff] }
 0x2db   : > { %1840 = vbcast.lane.b32.xlu1 %v5367_v59, 304  ;;  %1442 = vbcast.lane.b32.xlu0 %v5258_v57, 312  ;;  %v2674_v12 = vadd.s32 %v2673_v30, %v2290_v26  ;;  %v2989_v5 = vadd.s32 %v2988_v63, %v2575_v29  ;;  %v2832_v0 = vadd.s32 %v2831_v34, %v2433_v55  ;;  %v2481_v36 = vsel %vm2097_vm12, 1, %v7054_v53 }
 0x2dc   : > { %v2727_v17 = vadd.s32 %v2726_v15, %v2338_v3  ;;  %v3042_v23 = vadd.s32 %v3041_v61, %v2623_v10  ;;  %v2386_v62 = vsel %vm2002_vm13, 1, %v7054_v53  ;;  %v2291_v50 = vsel %vm1907_vm14, 1, %v7054_v53  ;;  %v7205_v15 = vld [vmem:[#allocation33_spill] sm:$0xff]  ;;  %v7207_v3 = vld [vmem:[#allocation35_spill] sm:$0xff] }
 0x2dd   : > { %v5978_v42 = vpop.permute.xlu1 %1809  ;;  %v5980_v58 = vpop.permute.xlu0 %1414  ;;  %v2937_v25 = vadd.s32 %v2936_v13, %v2528_v24  ;;  %v2576_v30 = vsel %vm2192_vm15, 1, %v7054_v53  ;;  %v2434_v63 = vsel %vm2050_vm0, 1, %v7054_v53  ;;  %v2339_v34 = vsel %vm1955_vm1, 1, %v7054_v53 }
 0x2de   : > { %vm2240_vm2 = vcmp.eq.s32.totalorder %v7203_v7, %v4942_v16  ;;  %vm2145_vm3 = vcmp.eq.s32.totalorder %v7204_v41, %v4942_v16  ;;  %vm2098_vm4 = vcmp.eq.s32.totalorder %v7205_v15, %v4942_v16  ;;  %v2885_v61 = vadd.s32 %v2884_v37, %v2481_v36 }
 0x2df   : > { %1245 = vbcast.lane.b32.xlu1 %v5180_v48, 320  ;;  %847 = vbcast.lane.b32.xlu0 %v5077_v43, 328  ;;  %v2780_v18 = vadd.s32 %v2779_v44, %v2386_v62  ;;  %v2675_v13 = vadd.s32 %v2674_v12, %v2291_v50  ;;  %vm2003_vm5 = vcmp.eq.s32.totalorder %v7206_v14, %v4942_v16  ;;  %v2624_v39 = vsel %vm2240_vm2, 1, %v7054_v53  ;;  %v7208_v44 = vld [vmem:[#allocation36_spill] sm:$0xff]  ;;  %v7211_v12 = vld [vmem:[#allocation39_spill] sm:$0xff] }
 0x2e0   : > { %v2990_v26 = vadd.s32 %v2989_v5, %v2576_v30  ;;  %v2833_v29 = vadd.s32 %v2832_v0, %v2434_v63  ;;  %v2728_v55 = vadd.s32 %v2727_v17, %v2339_v34  ;;  %vm1908_vm6 = vcmp.eq.s32.totalorder %v7207_v3, %v4942_v16  ;;  %v7212_v5 = vld [vmem:[#allocation40_spill] sm:$0xff]  ;;  %v7213_v0 = vld [vmem:[#allocation41_spill] sm:$0xff]  ;;  %v7214_v3 = vld [vmem:[#allocation42_spill] sm:$0xff] }
 0x2e1   : > { %v6000_v6 = vpop.permute.xlu1 %1217  ;;  %v6002_v52 = vpop.permute.xlu0 %819  ;;  %v2529_v1 = vsel %vm2145_vm3, 1, %v7054_v53  ;;  %v2482_v37 = vsel %vm2098_vm4, 1, %v7054_v53  ;;  %vm2193_vm7 = vcmp.eq.s32.totalorder %v7208_v44, %v4942_v16  ;;  %v2387_v24 = vsel %vm2003_vm5, 1, %v7054_v53  ;;  %v7217_v44 = vld [vmem:[#allocation45_spill] sm:$0xff] }
 0x2e2   : > { %vm2051_vm8 = vcmp.eq.s32.totalorder %v7209_v2, %v4942_v16  ;;  %vm1956_vm9 = vcmp.eq.s32.totalorder %v7210_v19, %v4942_v16  ;;  %vm2241_vm10 = vcmp.eq.s32.totalorder %v5591_v45, %v4942_v16  ;;  %v2292_v46 = vsel %vm1908_vm6, 1, %v7054_v53  ;;  %v7216_v45 = vld [vmem:[#allocation44_spill] sm:$0xff] }
 0x2e3   : > { %449 = vbcast.lane.b32.xlu1 %v4999_v28, 336  ;;  %1643 = vbcast.lane.b32.xlu0 %v5305_v31, 312  ;;  %vm2146_vm11 = vcmp.eq.s32.totalorder %v7211_v12, %v4942_v16  ;;  %vm2099_vm12 = vcmp.eq.s32.totalorder %v7212_v5, %v4942_v16  ;;  %vm2004_vm13 = vcmp.eq.s32.totalorder %v7213_v0, %v4942_v16  ;;  %v2577_v50 = vsel %vm2193_vm7, 1, %v7054_v53  ;;  %v7218_v12 = vld [vmem:[#allocation46_spill] sm:$0xff] }
 0x2e4   : > { %v3043_v17 = vadd.s32 %v3042_v23, %v2624_v39  ;;  %v2938_v36 = vadd.s32 %v2937_v25, %v2529_v1  ;;  %v2886_v62 = vadd.s32 %v2885_v61, %v2482_v37  ;;  %v2781_v34 = vadd.s32 %v2780_v18, %v2387_v24  ;;  %v7215_v39 = vld [vmem:[#allocation43_spill] sm:$0xff] }
 0x2e5   : > { %v6023_v51 = vpop.permute.xlu1 %421  ;;  %v6025_v9 = vpop.permute.xlu0 %1615  ;;  %v2435_v7 = vsel %vm2051_vm8, 1, %v7054_v53  ;;  %v2340_v41 = vsel %vm1956_vm9, 1, %v7054_v53  ;;  %v2625_v23 = vsel %vm2241_vm10, 1, %v7054_v53  ;;  %v2676_v25 = vadd.s32 %v2675_v13, %v2292_v46 }
 0x2e6   : > { %v2530_v15 = vsel %vm2146_vm11, 1, %v7054_v53  ;;  %v2483_v61 = vsel %vm2099_vm12, 1, %v7054_v53  ;;  %v2388_v18 = vsel %vm2004_vm13, 1, %v7054_v53  ;;  %v2991_v14 = vadd.s32 %v2990_v26, %v2577_v50  ;;  %v7222_v50 = vld [vmem:[#allocation50_spill] sm:$0xff] }
 0x2e7   : > { %1048 = vbcast.lane.b32.xlu1 %v5132_v54, 328  ;;  %650 = vbcast.lane.b32.xlu0 %v5022_v32, 336  ;;  %vm1909_vm14 = vcmp.eq.s32.totalorder %v7214_v3, %v4942_v16  ;;  %vm2194_vm15 = vcmp.eq.s32.totalorder %v7215_v39, %v4942_v16  ;;  %vm2052_vm0 = vcmp.eq.s32.totalorder %v7216_v45, %v4942_v16 }
 0x2e8   : > { %v2834_v13 = vadd.s32 %v2833_v29, %v2435_v7  ;;  %v2729_v1 = vadd.s32 %v2728_v55, %v2340_v41  ;;  %v3044_v37 = vadd.s32 %v3043_v17, %v2625_v23  ;;  %vm1957_vm1 = vcmp.eq.s32.totalorder %v7217_v44, %v4942_v16  ;;  %v7219_v55 = vld [vmem:[#allocation47_spill] sm:$0xff]  ;;  %v7224_v41 = vld [vmem:[#allocation52_spill] sm:$0xff]  ;;  %v7225_v23 = vld [vmem:[#allocation53_spill] sm:$0xff] }
 0x2e9   : > { %v6051_v10 = vpop.permute.xlu1 %1020  ;;  %v6053_v38 = vpop.permute.xlu0 %622  ;;  %v2939_v26 = vadd.s32 %v2938_v36, %v2530_v15  ;;  %v2887_v19 = vadd.s32 %v2886_v62, %v2483_v61  ;;  %v2782_v46 = vadd.s32 %v2781_v34, %v2388_v18  ;;  %vm2242_vm2 = vcmp.eq.s32.totalorder %v7218_v12, %v4942_v16  ;;  %v7220_v36 = vld [vmem:[#allocation48_spill] sm:$0xff]  ;;  %v7221_v62 = vld [vmem:[#allocation49_spill] sm:$0xff]  ;;  %v7223_v7 = vld [vmem:[#allocation51_spill] sm:$0xff] }
 0x2ea   : > { %v2293_v5 = vsel %vm1909_vm14, 1, %v7054_v53  ;;  %v2578_v0 = vsel %vm2194_vm15, 1, %v7054_v53  ;;  %v2436_v29 = vsel %vm2052_vm0, 1, %v7054_v53  ;;  %vm2147_vm3 = vcmp.eq.s32.totalorder %v7219_v55, %v4942_v16 }
 0x2eb   : > { %1844 = vbcast.lane.b32.xlu1 %v5367_v59, 312  ;;  %1446 = vbcast.lane.b32.xlu0 %v5258_v57, 320  ;;  %v2341_v17 = vsel %vm1957_vm1, 1, %v7054_v53  ;;  %vm2100_vm4 = vcmp.eq.s32.totalorder %v7220_v36, %v4942_v16  ;;  %vm2005_vm5 = vcmp.eq.s32.totalorder %v7221_v62, %v4942_v16  ;;  %vm1910_vm6 = vcmp.eq.s32.totalorder %v7222_v50, %v4942_v16 }
 0x2ec   : > { %v2626_v34 = vsel %vm2242_vm2, 1, %v7054_v53  ;;  %vm2195_vm7 = vcmp.eq.s32.totalorder %v7223_v7, %v4942_v16  ;;  %vm2053_vm8 = vcmp.eq.s32.totalorder %v7224_v41, %v4942_v16  ;;  %vm1958_vm9 = vcmp.eq.s32.totalorder %v7225_v23, %v4942_v16 }
 0x2ed   : > { %v6077_v30 = vpop.permute.xlu1 %1816  ;;  %v6079_v63 = vpop.permute.xlu0 %1418  ;;  %v2677_v18 = vadd.s32 %v2676_v25, %v2293_v5  ;;  %v2992_v3 = vadd.s32 %v2991_v14, %v2578_v0  ;;  %v2835_v39 = vadd.s32 %v2834_v13, %v2436_v29  ;;  %v2531_v45 = vsel %vm2147_vm3, 1, %v7054_v53  ;;  %v7226_v5 = vld [vmem:[#allocation13_spill] sm:$0xff] }
 0x2ee   : > { %v2730_v44 = vadd.s32 %v2729_v1, %v2341_v17  ;;  %v2484_v12 = vsel %vm2100_vm4, 1, %v7054_v53  ;;  %v2389_v36 = vsel %vm2005_vm5, 1, %v7054_v53  ;;  %v2294_v62 = vsel %vm1910_vm6, 1, %v7054_v53 }
 0x2ef   : > { %1249 = vbcast.lane.b32.xlu1 %v5180_v48, 328  ;;  %851 = vbcast.lane.b32.xlu0 %v5077_v43, 336  ;;  %v3045_v50 = vadd.s32 %v3044_v37, %v2626_v34  ;;  %v2579_v25 = vsel %vm2195_vm7, 1, %v7054_v53  ;;  %v2437_v14 = vsel %vm2053_vm8, 1, %v7054_v53  ;;  %v2342_v13 = vsel %vm1958_vm9, 1, %v7054_v53  ;;  %v7227_v37 = vld [vmem:[#allocation54_spill] sm:$0xff] }
 0x2f0   : > { %v2940_v1 = vadd.s32 %v2939_v26, %v2531_v45  ;;  %vm2243_vm10 = vcmp.eq.s32.totalorder %v7226_v5, %v4942_v16  ;;  %vm2148_vm11 = vcmp.eq.s32.totalorder %v7227_v37, %v4942_v16  ;;  %vm2101_vm12 = vcmp.eq.s32.totalorder %v5801_v56, %v4942_v16 }
 0x2f1   : > { %v6106_v24 = vpop.permute.xlu1 %1221  ;;  %v6108_v2 = vpop.permute.xlu0 %823  ;;  %v2888_v55 = vadd.s32 %v2887_v19, %v2484_v12  ;;  %v2783_v17 = vadd.s32 %v2782_v46, %v2389_v36  ;;  %v2678_v34 = vadd.s32 %v2677_v18, %v2294_v62  ;;  %vm2006_vm13 = vcmp.eq.s32.totalorder %v5803_v49, %v4942_v16 }
 0x2f2   : > { %v2993_v26 = vadd.s32 %v2992_v3, %v2579_v25  ;;  %v2836_v7 = vadd.s32 %v2835_v39, %v2437_v14  ;;  %v2731_v41 = vadd.s32 %v2730_v44, %v2342_v13  ;;  %v2627_v23 = vsel %vm2243_vm10, 1, %v7054_v53 }
 0x2f3   : > { %453 = vbcast.lane.b32.xlu1 %v4999_v28, 344  ;;  %1647 = vbcast.lane.b32.xlu0 %v5305_v31, 320  ;;  %v2532_v56 = vsel %vm2148_vm11, 1, %v7054_v53  ;;  %v2485_v45 = vsel %vm2101_vm12, 1, %v7054_v53  ;;  %vm1911_vm14 = vcmp.eq.s32.totalorder %v5830_v21, %v4942_v16  ;;  %v2390_v19 = vsel %vm2006_vm13, 1, %v7054_v53 }
 0x2f4   : > { %vm2196_vm15 = vcmp.eq.s32.totalorder %v5832_v11, %v4942_v16  ;;  %vm2054_vm0 = vcmp.eq.s32.totalorder %v5862_v27, %v4942_v16  ;;  %vm1959_vm1 = vcmp.eq.s32.totalorder %v5864_v20, %v4942_v16  ;;  %vm2244_vm2 = vcmp.eq.s32.totalorder %v5889_v35, %v4942_v16 }
 0x2f5   : > { %v6133_v15 = vpop.permute.xlu1 %425  ;;  %v6135_v61 = vpop.permute.xlu0 %1619  ;;  %vm2149_vm3 = vcmp.eq.s32.totalorder %v5891_v4, %v4942_v16  ;;  %vm2102_vm4 = vcmp.eq.s32.totalorder %v5914_v8, %v4942_v16  ;;  %vm2007_vm5 = vcmp.eq.s32.totalorder %v5916_v33, %v4942_v16  ;;  %v3046_v21 = vadd.s32 %v3045_v50, %v2627_v23 }
 0x2f6   : > { %v2941_v18 = vadd.s32 %v2940_v1, %v2532_v56  ;;  %v2889_v3 = vadd.s32 %v2888_v55, %v2485_v45  ;;  %v2295_v39 = vsel %vm1911_vm14, 1, %v7054_v53  ;;  %v2784_v44 = vadd.s32 %v2783_v17, %v2390_v19 }
 0x2f7   : > { %1052 = vbcast.lane.b32.xlu1 %v5132_v54, 336  ;;  %654 = vbcast.lane.b32.xlu0 %v5022_v32, 344  ;;  %v2580_v35 = vsel %vm2196_vm15, 1, %v7054_v53  ;;  %v2438_v4 = vsel %vm2054_vm0, 1, %v7054_v53  ;;  %v2343_v8 = vsel %vm1959_vm1, 1, %v7054_v53  ;;  %v2628_v33 = vsel %vm2244_vm2, 1, %v7054_v53 }
 0x2f8   : > { %v2533_v12 = vsel %vm2149_vm3, 1, %v7054_v53  ;;  %v2486_v36 = vsel %vm2102_vm4, 1, %v7054_v53  ;;  %v2391_v62 = vsel %vm2007_vm5, 1, %v7054_v53  ;;  %v2679_v25 = vadd.s32 %v2678_v34, %v2295_v39 }
 0x2f9   : > { %v6164_v0 = vpop.permute.xlu1 %1024  ;;  %v6166_v29 = vpop.permute.xlu0 %626  ;;  %vm1912_vm6 = vcmp.eq.s32.totalorder %v5939_v47, %v4942_v16  ;;  %vm2197_vm7 = vcmp.eq.s32.totalorder %v5941_v22, %v4942_v16  ;;  %vm2055_vm8 = vcmp.eq.s32.totalorder %v5960_v40, %v4942_v16  ;;  %v2994_v27 = vadd.s32 %v2993_v26, %v2580_v35 }
 0x2fa   : > { %v2837_v20 = vadd.s32 %v2836_v7, %v2438_v4  ;;  %v2732_v14 = vadd.s32 %v2731_v41, %v2343_v8  ;;  %v3047_v13 = vadd.s32 %v3046_v21, %v2628_v33  ;;  %v2942_v1 = vadd.s32 %v2941_v18, %v2533_v12 }
 0x2fb   : > { %1848 = vbcast.lane.b32.xlu1 %v5367_v59, 320  ;;  %1450 = vbcast.lane.b32.xlu0 %v5258_v57, 328  ;;  %v2890_v5 = vadd.s32 %v2889_v3, %v2486_v36  ;;  %v2785_v37 = vadd.s32 %v2784_v44, %v2391_v62  ;;  %v2296_v55 = vsel %vm1912_vm6, 1, %v7054_v53  ;;  %v2581_v47 = vsel %vm2197_vm7, 1, %v7054_v53 }
 0x2fc   : > { %v2439_v22 = vsel %vm2055_vm8, 1, %v7054_v53  ;;  %vm1960_vm9 = vcmp.eq.s32.totalorder %v5962_v60, %v4942_v16  ;;  %vm2245_vm10 = vcmp.eq.s32.totalorder %v5978_v42, %v4942_v16  ;;  %vm2150_vm11 = vcmp.eq.s32.totalorder %v5980_v58, %v4942_v16 }
 0x2fd   : > { %v6184_v49 = vpop.permute.xlu1 %1820  ;;  %v6186_v46 = vpop.permute.xlu0 %1422  ;;  %vm2103_vm12 = vcmp.eq.s32.totalorder %v6000_v6, %v4942_v16  ;;  %vm2008_vm13 = vcmp.eq.s32.totalorder %v6002_v52, %v4942_v16  ;;  %vm1913_vm14 = vcmp.eq.s32.totalorder %v6023_v51, %v4942_v16  ;;  %vm2198_vm15 = vcmp.eq.s32.totalorder %v6025_v9, %v4942_v16 }
 0x2fe   : > { %vm2056_vm0 = vcmp.eq.s32.totalorder %v6051_v10, %v4942_v16  ;;  %v2680_v60 = vadd.s32 %v2679_v25, %v2296_v55  ;;  %v2995_v42 = vadd.s32 %v2994_v27, %v2581_v47  ;;  %v2838_v58 = vadd.s32 %v2837_v20, %v2439_v22 }
 0x2ff   : > { %1253 = vbcast.lane.b32.xlu1 %v5180_v48, 336  ;;  %855 = vbcast.lane.b32.xlu0 %v5077_v43, 344  ;;  %v2344_v6 = vsel %vm1960_vm9, 1, %v7054_v53  ;;  %v2629_v34 = vsel %vm2245_vm10, 1, %v7054_v53  ;;  %v2534_v26 = vsel %vm2150_vm11, 1, %v7054_v53  ;;  %v2487_v7 = vsel %vm2103_vm12, 1, %v7054_v53 }
 0x300   : > { %vm1961_vm1 = vcmp.eq.s32.totalorder %v6053_v38, %v4942_v16  ;;  %v2392_v56 = vsel %vm2008_vm13, 1, %v7054_v53  ;;  %v2297_v45 = vsel %vm1913_vm14, 1, %v7054_v53  ;;  %v2582_v19 = vsel %vm2198_vm15, 1, %v7054_v53 }
 0x301   : > { %v6215_v11 = vpop.permute.xlu1 %1225  ;;  %v6217_v50 = vpop.permute.xlu0 %827  ;;  %v2440_v38 = vsel %vm2056_vm0, 1, %v7054_v53  ;;  %v2733_v21 = vadd.s32 %v2732_v14, %v2344_v6  ;;  %vm2246_vm2 = vcmp.eq.s32.totalorder %v6077_v30, %v4942_v16  ;;  %vm2151_vm3 = vcmp.eq.s32.totalorder %v6079_v63, %v4942_v16 }
 0x302   : > { %v3048_v52 = vadd.s32 %v3047_v13, %v2629_v34  ;;  %v2943_v51 = vadd.s32 %v2942_v1, %v2534_v26  ;;  %v6284_v9 = vadd.s32 %v2890_v5, %v2487_v7  ;;  %v2345_v18 = vsel %vm1961_vm1, 1, %v7054_v53 }
 0x303   : > { %457 = vbcast.lane.b32.xlu1 %v4999_v28, 352  ;;  %1651 = vbcast.lane.b32.xlu0 %v5305_v31, 328  ;;  %v6287_v3 = vadd.s32 %v2785_v37, %v2392_v56  ;;  %v2681_v10 = vadd.s32 %v2680_v60, %v2297_v45  ;;  %v2996_v39 = vadd.s32 %v2995_v42, %v2582_v19  ;;  %v2630_v63 = vsel %vm2246_vm2, 1, %v7054_v53 }
 0x304   : > { %v2839_v44 = vadd.s32 %v2838_v58, %v2440_v38  ;;  %v2535_v4 = vsel %vm2151_vm3, 1, %v7054_v53  ;;  %vm1914_vm4 = vcmp.eq.s32.totalorder %v6133_v15, %v4942_v16  ;;  %vm2199_vm5 = vcmp.eq.s32.totalorder %v6135_v61, %v4942_v16 }
 0x305   : > { %v6232_v40 = vpop.permute.xlu1 %429  ;;  %v6234_v17 = vpop.permute.xlu0 %1623  ;;  %v2734_v8 = vadd.s32 %v2733_v21, %v2345_v18  ;;  %vm2057_vm6 = vcmp.eq.s32.totalorder %v6164_v0, %v4942_v16  ;;  %vm1962_vm7 = vcmp.eq.s32.totalorder %v6166_v29, %v4942_v16  ;;  %vm2104_vm8 = vcmp.eq.s32.totalorder %v6106_v24, %v4942_v16 }
 0x306   : > { %vm2009_vm9 = vcmp.eq.s32.totalorder %v6108_v2, %v4942_v16  ;;  %vm1915_vm10 = vcmp.eq.s32.totalorder %v6232_v40, %v4942_v16  ;;  %vm2200_vm11 = vcmp.eq.s32.totalorder %v6234_v17, %v4942_v16  ;;  %v3049_v15 = vadd.s32 %v3048_v52, %v2630_v63 }
 0x307   : > { %1056 = vbcast.lane.b32.xlu1 %v5132_v54, 344  ;;  %658 = vbcast.lane.b32.xlu0 %v5022_v32, 352  ;;  %v2944_v61 = vadd.s32 %v2943_v51, %v2535_v4  ;;  %v2298_v0 = vsel %vm1914_vm4, 1, %v7054_v53  ;;  %v2583_v29 = vsel %vm2199_vm5, 1, %v7054_v53  ;;  %v2441_v24 = vsel %vm2057_vm6, 1, %v7054_v53 }
 0x308   : > { %v2346_v2 = vsel %vm1962_vm7, 1, %v7054_v53  ;;  %vm2247_vm12 = vcmp.eq.s32.totalorder %v6184_v49, %v4942_v16  ;;  %vm2152_vm13 = vcmp.eq.s32.totalorder %v6186_v46, %v4942_v16  ;;  %v2488_v36 = vsel %vm2104_vm8, 1, %v7054_v53 }
 0x309   : > { %v6258_v41 = vpop.permute.xlu1 %1028  ;;  %v6260_v23 = vpop.permute.xlu0 %630  ;;  %v2393_v62 = vsel %vm2009_vm9, 1, %v7054_v53  ;;  %v2299_v25 = vsel %vm1915_vm10, 1, %v7054_v53  ;;  %v2584_v27 = vsel %vm2200_vm11, 1, %v7054_v53  ;;  %v2682_v20 = vadd.s32 %v2681_v10, %v2298_v0 }
 0x30a   : > { %v2997_v14 = vadd.s32 %v2996_v39, %v2583_v29  ;;  %vm2058_vm14 = vcmp.eq.s32.totalorder %v6258_v41, %v4942_v16  ;;  %vm1963_vm15 = vcmp.eq.s32.totalorder %v6260_v23, %v4942_v16  ;;  %v2840_v49 = vadd.s32 %v2839_v44, %v2441_v24 }
 0x30b   : > { %1852 = vbcast.lane.b32.xlu1 %v5367_v59, 328  ;;  %1454 = vbcast.lane.b32.xlu0 %v5258_v57, 336  ;;  %v2735_v46 = vadd.s32 %v2734_v8, %v2346_v2  ;;  %v2631_v13 = vsel %vm2247_vm12, 1, %v7054_v53  ;;  %v2536_v1 = vsel %vm2152_vm13, 1, %v7054_v53  ;;  %v2683_v55 = vadd.s32 %v2682_v20, %v2299_v25 }
 0x30c   : > { %v2998_v47 = vadd.s32 %v2997_v14, %v2584_v27  ;;  %v2442_v22 = vsel %vm2058_vm14, 1, %v7054_v53  ;;  %v2347_v40 = vsel %vm1963_vm15, 1, %v7054_v53  ;;  %v3050_v6 = vadd.s32 %v3049_v15, %v2631_v13 }
 0x30d   : > { %v6289_v35 = vpop.permute.xlu1 %1824  ;;  %v6291_v30 = vpop.permute.xlu0 %1426  ;;  %v2945_v34 = vadd.s32 %v2944_v61, %v2536_v1  ;;  %vm2105_vm4 = vcmp.eq.s32.totalorder %v6215_v11, %v4942_v16  ;;  %vm2010_vm5 = vcmp.eq.s32.totalorder %v6217_v50, %v4942_v16  ;;  %v2841_v41 = vadd.s32 %v2840_v49, %v2442_v22 }
 0x30e   : > { %vm2248_vm2 = vcmp.eq.s32.totalorder %v6289_v35, %v4942_v16  ;;  %vm2153_vm3 = vcmp.eq.s32.totalorder %v6291_v30, %v4942_v16  ;;  %v2736_v23 = vadd.s32 %v2735_v46, %v2347_v40  ;;  %v2892_v51 = vadd.s32 %v6284_v9, %v2488_v36 }
 0x30f   : > { %1257 = vbcast.lane.b32.xlu1 %v5180_v48, 344  ;;  %859 = vbcast.lane.b32.xlu0 %v5077_v43, 352  ;;  %v2632_v56 = vsel %vm2248_vm2, 1, %v7054_v53  ;;  %v2537_v45 = vsel %vm2153_vm3, 1, %v7054_v53  ;;  %v2787_v18 = vadd.s32 %v6287_v3, %v2393_v62  ;;  %v2489_v10 = vsel %vm2105_vm4, 1, %v7054_v53 }
 0x310   : > { %v2394_v39 = vsel %vm2010_vm5, 1, %v7054_v53  ;;  %v3051_v30 = vadd.s32 %v3050_v6, %v2632_v56  ;;  %v2946_v63 = vadd.s32 %v2945_v34, %v2537_v45  ;;  %v2893_v50 = vadd.s32 %v2892_v51, %v2489_v10 }
 0x311   : > { %v6315_v33 = vpop.permute.xlu1 %1229  ;;  %v6317_v12 = vpop.permute.xlu0 %831  ;;  %v2788_v8 = vadd.s32 %v2787_v18, %v2394_v39  ;;  %v3107_v39 = vld [vmem:[#allocation6 + $0x78] sm:$0xff] }
 0x312   : > { %vm2106_vm8 = vcmp.eq.s32.totalorder %v6315_v33, %v4942_v16  ;;  %vm2011_vm9 = vcmp.eq.s32.totalorder %v6317_v12, %v4942_v16 }
 0x313   : > { %461 = vbcast.lane.b32.xlu1 %v4999_v28, 360  ;;  %1655 = vbcast.lane.b32.xlu0 %v5305_v31, 336  ;;  %v2490_v9 = vsel %vm2106_vm8, 1, %v7054_v53  ;;  %v2395_v3 = vsel %vm2011_vm9, 1, %v7054_v53 }
 0x314   : > { %v2894_v33 = vadd.s32 %v2893_v50, %v2490_v9  ;;  %v2789_v12 = vadd.s32 %v2788_v8, %v2395_v3  ;;  %v3106_v9 = vld [vmem:[#allocation6 + $0x70] sm:$0xff] }
 0x315   : > { %v434_v5 = vpop.permute.xlu1 %433  ;;  %v1628_v37 = vpop.permute.xlu0 %1627 }
 0x316   : > { %vm1916_vm0 = vcmp.eq.s32.totalorder %v434_v5, %v4942_v16  ;;  %vm2201_vm1 = vcmp.eq.s32.totalorder %v1628_v37, %v4942_v16 }
 0x317   : > { %v2300_v17 = vsel %vm1916_vm0, 1, %v7054_v53  ;;  %v2585_v60 = vsel %vm2201_vm1, 1, %v7054_v53  ;;  %1060 = vbcast.lane.b32.xlu1 %v5132_v54, 352  ;;  %662 = vbcast.lane.b32.xlu0 %v5022_v32, 360 }
 0x318   : > { %v2684_v42 = vadd.s32 %v2683_v55, %v2300_v17  ;;  %v2999_v58 = vadd.s32 %v2998_v47, %v2585_v60 }
 0x319   : > { %v1033_v26 = vpop.permute.xlu1 %1032  ;;  %v635_v7 = vpop.permute.xlu0 %634 }
 0x31a   : > { %vm2059_vm6 = vcmp.eq.s32.totalorder %v1033_v26, %v4942_v16  ;;  %vm1964_vm7 = vcmp.eq.s32.totalorder %v635_v7, %v4942_v16 }
 0x31b   : > { %v2443_v19 = vsel %vm2059_vm6, 1, %v7054_v53  ;;  %v2348_v38 = vsel %vm1964_vm7, 1, %v7054_v53  ;;  %1856 = vbcast.lane.b32.xlu1 %v5367_v59, 336  ;;  %1458 = vbcast.lane.b32.xlu0 %v5258_v57, 344 }
 0x31c   : > { %v2842_v21 = vadd.s32 %v2841_v41, %v2443_v19  ;;  %v2737_v52 = vadd.s32 %v2736_v23, %v2348_v38 }
 0x31d   : > { %v1829_v44 = vpop.permute.xlu1 %1828  ;;  %v1431_v35 = vpop.permute.xlu0 %1430 }
 0x31e   : > { %vm2249_vm10 = vcmp.eq.s32.totalorder %v1829_v44, %v4942_v16  ;;  %vm2154_vm11 = vcmp.eq.s32.totalorder %v1431_v35, %v4942_v16 }
 0x31f   : > { %v2633_v11 = vsel %vm2249_vm10, 1, %v7054_v53  ;;  %v2538_v4 = vsel %vm2154_vm11, 1, %v7054_v53  ;;  %1261 = vbcast.lane.b32.xlu1 %v5180_v48, 352  ;;  %863 = vbcast.lane.b32.xlu0 %v5077_v43, 360 }
 0x320   : > { %v3052_v15 = vadd.s32 %v3051_v30, %v2633_v11  ;;  %v2947_v61 = vadd.s32 %v2946_v63, %v2538_v4  ;;  %v3105_v4 = vld [vmem:[#allocation6 + $0x68] sm:$0xff] }
 0x321   : > { %v1234_v0 = vpop.permute.xlu1 %1233  ;;  %v836_v29 = vpop.permute.xlu0 %835 }
 0x322   : > { %vm2107_vm12 = vcmp.eq.s32.totalorder %v1234_v0, %v4942_v16  ;;  %vm2012_vm13 = vcmp.eq.s32.totalorder %v836_v29, %v4942_v16  ;;  %v3104_v0 = vld [vmem:[#allocation6 + $0x60] sm:$0xff] }
 0x323   : > { %v2491_v24 = vsel %vm2107_vm12, 1, %v7054_v53  ;;  %v2396_v2 = vsel %vm2012_vm13, 1, %v7054_v53  ;;  %465 = vbcast.lane.b32.xlu1 %v4999_v28, 368  ;;  %1659 = vbcast.lane.b32.xlu0 %v5305_v31, 344 }
 0x324   : > { %v2895_v36 = vadd.s32 %v2894_v33, %v2491_v24  ;;  %v2790_v62 = vadd.s32 %v2789_v12, %v2396_v2 }
 0x325   : > { %v438_v25 = vpop.permute.xlu1 %437  ;;  %v1632_v27 = vpop.permute.xlu0 %1631 }
 0x326   : > { %vm1917_vm14 = vcmp.eq.s32.totalorder %v438_v25, %v4942_v16  ;;  %vm2202_vm15 = vcmp.eq.s32.totalorder %v1632_v27, %v4942_v16  ;;  %v3102_v25 = vld [vmem:[#allocation6 + $0x50] sm:$0xff] }
 0x327   : > { %v2301_v20 = vsel %vm1917_vm14, 1, %v7054_v53  ;;  %v2586_v14 = vsel %vm2202_vm15, 1, %v7054_v53  ;;  %1064 = vbcast.lane.b32.xlu1 %v5132_v54, 360  ;;  %666 = vbcast.lane.b32.xlu0 %v5022_v32, 368 }
 0x328   : > { %v2685_v49 = vadd.s32 %v2684_v42, %v2301_v20  ;;  %v3000_v46 = vadd.s32 %v2999_v58, %v2586_v14 }
 0x329   : > { %v1037_v13 = vpop.permute.xlu1 %1036  ;;  %v639_v1 = vpop.permute.xlu0 %638 }
 0x32a   : > { %vm2060_vm0 = vcmp.eq.s32.totalorder %v1037_v13, %v4942_v16  ;;  %vm1965_vm1 = vcmp.eq.s32.totalorder %v639_v1, %v4942_v16 }
 0x32b   : > { %v2444_v5 = vsel %vm2060_vm0, 1, %v7054_v53  ;;  %v2349_v37 = vsel %vm1965_vm1, 1, %v7054_v53  ;;  %1860 = vbcast.lane.b32.xlu1 %v5367_v59, 344  ;;  %1462 = vbcast.lane.b32.xlu0 %v5258_v57, 352 }
 0x32c   : > { %v2843_v55 = vadd.s32 %v2842_v21, %v2444_v5  ;;  %v2738_v47 = vadd.s32 %v2737_v52, %v2349_v37 }
 0x32d   : > { %v1833_v22 = vpop.permute.xlu1 %1832  ;;  %v1435_v40 = vpop.permute.xlu0 %1434 }
 0x32e   : > { %vm2250_vm2 = vcmp.eq.s32.totalorder %v1833_v22, %v4942_v16  ;;  %vm2155_vm3 = vcmp.eq.s32.totalorder %v1435_v40, %v4942_v16  ;;  %v3100_v22 = vld [vmem:[#allocation6 + $0x40] sm:$0xff] }
 0x32f   : > { %v2634_v17 = vsel %vm2250_vm2, 1, %v7054_v53  ;;  %v2539_v60 = vsel %vm2155_vm3, 1, %v7054_v53  ;;  %1265 = vbcast.lane.b32.xlu1 %v5180_v48, 360  ;;  %867 = vbcast.lane.b32.xlu0 %v5077_v43, 368 }
 0x330   : > { %v3053_v42 = vadd.s32 %v3052_v15, %v2634_v17  ;;  %v2948_v58 = vadd.s32 %v2947_v61, %v2539_v60  ;;  %v3099_v17 = vld [vmem:[#allocation6 + $0x38] sm:$0xff] }
 0x331   : > { %v1238_v6 = vpop.permute.xlu1 %1237  ;;  %v840_v34 = vpop.permute.xlu0 %839 }
 0x332   : > { %vm2108_vm4 = vcmp.eq.s32.totalorder %v1238_v6, %v4942_v16  ;;  %vm2013_vm5 = vcmp.eq.s32.totalorder %v840_v34, %v4942_v16  ;;  %v3098_v34 = vld [vmem:[#allocation6 + $0x30] sm:$0xff] }
 0x333   : > { %v2492_v26 = vsel %vm2108_vm4, 1, %v7054_v53  ;;  %v2397_v7 = vsel %vm2013_vm5, 1, %v7054_v53  ;;  %469 = vbcast.lane.b32.xlu1 %v4999_v28, 376  ;;  %1663 = vbcast.lane.b32.xlu0 %v5305_v31, 352 }
 0x334   : > { %v2896_v41 = vadd.s32 %v2895_v36, %v2492_v26  ;;  %v2791_v23 = vadd.s32 %v2790_v62, %v2397_v7  ;;  %v3103_v36 = vld [vmem:[#allocation6 + $0x58] sm:$0xff] }
 0x335   : > { %v442_v56 = vpop.permute.xlu1 %441  ;;  %v1636_v45 = vpop.permute.xlu0 %1635 }
 0x336   : > { %vm1918_vm6 = vcmp.eq.s32.totalorder %v442_v56, %v4942_v16  ;;  %vm2203_vm7 = vcmp.eq.s32.totalorder %v1636_v45, %v4942_v16 }
 0x337   : > { %v2302_v19 = vsel %vm1918_vm6, 1, %v7054_v53  ;;  %v2587_v38 = vsel %vm2203_vm7, 1, %v7054_v53  ;;  %1068 = vbcast.lane.b32.xlu1 %v5132_v54, 368  ;;  %670 = vbcast.lane.b32.xlu0 %v5022_v32, 376  ;;  %v4098_v32 = vmov 0.0   ;;  %vm4099_vm6 = vmmov 0  }
 0x338   : > { %v2686_v21 = vadd.s32 %v2685_v49, %v2302_v19  ;;  %v3001_v28 = vadd.s32 %v3000_v46, %v2587_v38  ;;  %3689 = vmatprep.subr.mxu0 %v4098_v32  ;;  %3724 = vmatprep.subr.mxu1 %v4098_v32  ;;  %v3101_v46 = vld [vmem:[#allocation6 + $0x48] sm:$0xff] }
 0x339   : > { %v1041_v52 = vpop.permute.xlu1 %1040  ;;  %v643_v51 = vpop.permute.xlu0 %642  ;;  %3690 = vmatpush3.msra.mxu0 %v3107_v39  ;;  %3721 = vmatprep.mubr.msk.f32.mxu0 %vm4099_vm6, %v4098_v32  ;;  %v3193_v39 = vld [vmem:[#allocation8 + $0x70] sm:$0xff] }
 0x33a   : > { %vm2061_vm8 = vcmp.eq.s32.totalorder %v1041_v52, %v4942_v16  ;;  %vm1966_vm9 = vcmp.eq.s32.totalorder %v643_v51, %v4942_v16  ;;  %3691 = vmatprep.subr.mxu0 %v4098_v32  ;;  %3756 = vmatprep.mubr.msk.f32.mxu1 %vm4099_vm6, %v4098_v32 }
 0x33b   : > { %v2445_v18 = vsel %vm2061_vm8, 1, %v7054_v53  ;;  %v2350_v10 = vsel %vm1966_vm9, 1, %v7054_v53  ;;  %1864 = vbcast.lane.b32.xlu1 %v5367_v59, 352  ;;  %1466 = vbcast.lane.b32.xlu0 %v5258_v57, 360 }
 0x33c   : > { %v2844_v44 = vadd.s32 %v2843_v55, %v2445_v18  ;;  %v2739_v35 = vadd.s32 %v2738_v47, %v2350_v10  ;;  %3692 = vmatpush3.msra.mxu0 %v3106_v9  ;;  %v3094_v18 = vld [vmem:[#allocation6 + $0x10] sm:$0xff]  ;;  %v3194_v10 = vld [vmem:[#allocation8 + $0x78] sm:$0xff]  ;;  %v3093_v9 = vld [vmem:[#allocation6 + $0x8] sm:$0xff] }
 0x33d   : > { %v1837_v30 = vpop.permute.xlu1 %1836  ;;  %v1439_v63 = vpop.permute.xlu0 %1438  ;;  %3693 = vmatprep.subr.mxu0 %v4098_v32  ;;  %3725 = vmatpush3.msra.mxu1 %v3194_v10 }
 0x33e   : > { %vm2251_vm10 = vcmp.eq.s32.totalorder %v1837_v30, %v4942_v16  ;;  %vm2156_vm11 = vcmp.eq.s32.totalorder %v1439_v63, %v4942_v16  ;;  %3694 = vmatpush3.msra.mxu0 %v3105_v4  ;;  %3726 = vmatprep.subr.mxu1 %v4098_v32 }
 0x33f   : > { %v2635_v3 = vsel %vm2251_vm10, 1, %v7054_v53  ;;  %v2540_v11 = vsel %vm2156_vm11, 1, %v7054_v53  ;;  %1269 = vbcast.lane.b32.xlu1 %v5180_v48, 368  ;;  %871 = vbcast.lane.b32.xlu0 %v5077_v43, 376 }
 0x340   : > { %v3054_v50 = vadd.s32 %v3053_v42, %v2635_v3  ;;  %v2949_v8 = vadd.s32 %v2948_v58, %v2540_v11  ;;  %3695 = vmatprep.subr.mxu0 %v4098_v32  ;;  %v3192_v3 = vld [vmem:[#allocation8 + $0x68] sm:$0xff]  ;;  %3727 = vmatpush3.msra.mxu1 %v3193_v39 }
 0x341   : > { %v1242_v15 = vpop.permute.xlu1 %1241  ;;  %v844_v61 = vpop.permute.xlu0 %843  ;;  %3696 = vmatpush3.msra.mxu0 %v3104_v0  ;;  %3728 = vmatprep.subr.mxu1 %v4098_v32 }
 0x342   : > { %vm2109_vm12 = vcmp.eq.s32.totalorder %v1242_v15, %v4942_v16  ;;  %vm2014_vm13 = vcmp.eq.s32.totalorder %v844_v61, %v4942_v16  ;;  %3697 = vmatprep.subr.mxu0 %v4098_v32  ;;  %3729 = vmatpush3.msra.mxu1 %v3192_v3 }
 0x343   : > { %v2493_v29 = vsel %vm2109_vm12, 1, %v7054_v53  ;;  %v2398_v33 = vsel %vm2014_vm13, 1, %v7054_v53  ;;  %1072 = vbcast.lane.b32.xlu1 %v5132_v54, 376  ;;  %1667 = vbcast.lane.b32.xlu0 %v5305_v31, 360 }
 0x344   : > { %v2897_v43 = vadd.s32 %v2896_v41, %v2493_v29  ;;  %v2792_v12 = vadd.s32 %v2791_v23, %v2398_v33  ;;  %3698 = vmatpush3.msra.mxu0 %v3103_v36  ;;  %v3097_v23 = vld [vmem:[#allocation6 + $0x28] sm:$0xff]  ;;  %3730 = vmatprep.subr.mxu1 %v4098_v32  ;;  %v3190_v33 = vld [vmem:[#allocation8 + $0x58] sm:$0xff] }
 0x345   : > { %v446_v24 = vpop.permute.xlu1 %445  ;;  %v1640_v2 = vpop.permute.xlu0 %1639  ;;  %3699 = vmatprep.subr.mxu0 %v4098_v32 }
 0x346   : > { %vm1919_vm14 = vcmp.eq.s32.totalorder %v446_v24, %v4942_v16  ;;  %vm2204_vm15 = vcmp.eq.s32.totalorder %v1640_v2, %v4942_v16  ;;  %3700 = vmatpush3.msra.mxu0 %v3102_v25  ;;  %v3189_v24 = vld [vmem:[#allocation8 + $0x50] sm:$0xff]  ;;  %v3188_v25 = vld [vmem:[#allocation8 + $0x48] sm:$0xff] }
 0x347   : > { %v2303_v62 = vsel %vm1919_vm14, 1, %v7054_v53  ;;  %v2588_v54 = vsel %vm2204_vm15, 1, %v7054_v53  ;;  %1868 = vbcast.lane.b32.xlu1 %v5367_v59, 360  ;;  %1470 = vbcast.lane.b32.xlu0 %v5258_v57, 368 }
 0x348   : > { %v2687_v27 = vadd.s32 %v2686_v21, %v2303_v62  ;;  %v3002_v20 = vadd.s32 %v3001_v28, %v2588_v54  ;;  %3701 = vmatprep.subr.mxu0 %v4098_v32  ;;  %v3095_v28 = vld [vmem:[#allocation6 + $0x18] sm:$0xff] }
 0x349   : > { %v1045_v14 = vpop.permute.xlu1 %1044  ;;  %v647_v49 = vpop.permute.xlu0 %646  ;;  %3702 = vmatpush3.msra.mxu0 %v3101_v46 }
 0x34a   : > { %vm2062_vm0 = vcmp.eq.s32.totalorder %v1045_v14, %v4942_v16  ;;  %vm1967_vm1 = vcmp.eq.s32.totalorder %v647_v49, %v4942_v16  ;;  %3703 = vmatprep.subr.mxu0 %v4098_v32  ;;  %v3187_v14 = vld [vmem:[#allocation8 + $0x40] sm:$0xff] }
 0x34b   : > { %v2446_v13 = vsel %vm2062_vm0, 1, %v7054_v53  ;;  %v2351_v1 = vsel %vm1967_vm1, 1, %v7054_v53  ;;  %1671 = vbcast.lane.b32.xlu1 %v5305_v31, 368  ;;  %1273 = vbcast.lane.b32.xlu0 %v5180_v48, 376 }
 0x34c   : > { %v6456_v5 = vadd.s32 %v2844_v44, %v2446_v13  ;;  %v6458_v37 = vadd.s32 %v2739_v35, %v2351_v1  ;;  %3704 = vmatpush3.msra.mxu0 %v3100_v22 }
 0x34d   : > { %v1841_v55 = vpop.permute.xlu1 %1840  ;;  %v1443_v47 = vpop.permute.xlu0 %1442  ;;  %3705 = vmatprep.subr.mxu0 %v4098_v32 }
 0x34e   : > { %vm2252_vm2 = vcmp.eq.s32.totalorder %v1841_v55, %v4942_v16  ;;  %vm2157_vm3 = vcmp.eq.s32.totalorder %v1443_v47, %v4942_v16  ;;  %3706 = vmatpush3.msra.mxu0 %v3099_v17  ;;  %v3185_v47 = vld [vmem:[#allocation8 + $0x30] sm:$0xff] }
 0x34f   : > { %v2636_v40 = vsel %vm2252_vm2, 1, %v7054_v53  ;;  %v2541_v48 = vsel %vm2157_vm3, 1, %v7054_v53  ;;  %1872 = vbcast.lane.b32.xlu1 %v5367_v59, 368  ;;  %1474 = vbcast.lane.b32.xlu0 %v5258_v57, 376 }
 0x350   : > { %v6468_v60 = vadd.s32 %v3054_v50, %v2636_v40  ;;  %v6470_v42 = vadd.s32 %v2949_v8, %v2541_v48  ;;  %3707 = vmatprep.subr.mxu0 %v4098_v32  ;;  %v3092_v50 = vld [vmem:[#allocation6] sm:$0xff] }
 0x351   : > { %v1246_v58 = vpop.permute.xlu1 %1245  ;;  %v848_v6 = vpop.permute.xlu0 %847  ;;  %3708 = vmatpush3.msra.mxu0 %v3098_v34  ;;  %v3191_v8 = vld [vmem:[#allocation8 + $0x60] sm:$0xff] }
 0x352   : > { %vm2110_vm4 = vcmp.eq.s32.totalorder %v1246_v58, %v4942_v16  ;;  %vm2015_vm5 = vcmp.eq.s32.totalorder %v848_v6, %v4942_v16  ;;  %3709 = vmatprep.subr.mxu0 %v4098_v32  ;;  %3731 = vmatpush3.msra.mxu1 %v3191_v8  ;;  %v3183_v6 = vld [vmem:[#allocation8 + $0x20] sm:$0xff] }
 0x353   : > { %v2494_v26 = vsel %vm2110_vm4, 1, %v7054_v53  ;;  %v2399_v57 = vsel %vm2015_vm5, 1, %v7054_v53  ;;  %1876 = vbcast.lane.b32.xlu1 %v5367_v59, 376  ;;  %1675 = vbcast.lane.b32.xlu0 %v5305_v31, 376  ;;  %v3096_v31 = vld [vmem:[#allocation6 + $0x20] sm:$0xff] }
 0x354   : > { %v6479_v7 = vadd.s32 %v2897_v43, %v2494_v26  ;;  %v6481_v41 = vadd.s32 %v2792_v12, %v2399_v57  ;;  %3710 = vmatpush3.msra.mxu0 %v3097_v23  ;;  %3732 = vmatprep.subr.mxu1 %v4098_v32 }
 0x355   : > { %v450_v56 = vpop.permute.xlu1 %449  ;;  %v1644_v45 = vpop.permute.xlu0 %1643  ;;  %3711 = vmatprep.subr.mxu0 %v4098_v32  ;;  %3733 = vmatpush3.msra.mxu1 %v3190_v33 }
 0x356   : > { %vm1920_vm7 = vcmp.eq.s32.totalorder %v450_v56, %v4942_v16  ;;  %vm2205_vm8 = vcmp.eq.s32.totalorder %v1644_v45, %v4942_v16  ;;  %3712 = vmatpush3.msra.mxu0 %v3096_v31  ;;  %3734 = vmatprep.subr.mxu1 %v4098_v32  ;;  %v3181_v45 = vld [vmem:[#allocation8 + $0x10] sm:$0xff] }
 0x357   : > { %v2304_v59 = vsel %vm1920_vm7, 1, %v7054_v53  ;;  %v2589_v19 = vsel %vm2205_vm8, 1, %v7054_v53  ;;  %3713 = vmatprep.subr.mxu0 %v4098_v32  ;;  %3735 = vmatpush3.msra.mxu1 %v3189_v24 }
 0x358   : > { %v6493_v38 = vadd.s32 %v2687_v27, %v2304_v59  ;;  %v6495_v21 = vadd.s32 %v3002_v20, %v2589_v19  ;;  %3714 = vmatpush3.msra.mxu0 %v3095_v28  ;;  %3736 = vmatprep.subr.mxu1 %v4098_v32 }
 0x359   : > { %v1049_v52 = vpop.permute.xlu1 %1048  ;;  %v651_v51 = vpop.permute.xlu0 %650  ;;  %3715 = vmatprep.subr.mxu0 %v4098_v32  ;;  %3737 = vmatpush3.msra.mxu1 %v3188_v25 }
 0x35a   : > { %vm2063_vm9 = vcmp.eq.s32.totalorder %v1049_v52, %v4942_v16  ;;  %vm1968_vm10 = vcmp.eq.s32.totalorder %v651_v51, %v4942_v16  ;;  %3716 = vmatpush3.msra.mxu0 %v3094_v18  ;;  %3738 = vmatprep.subr.mxu1 %v4098_v32 }
 0x35b   : > { %v2447_v44 = vsel %vm2063_vm9, 1, %v7054_v53  ;;  %v2352_v35 = vsel %vm1968_vm10, 1, %v7054_v53  ;;  %3717 = vmatprep.subr.mxu0 %v4098_v32  ;;  %3739 = vmatpush3.msra.mxu1 %v3187_v14 }
 0x35c   : > { %v6504_v30 = vadd.s32 %v6456_v5, %v2447_v44  ;;  %v6507_v63 = vadd.s32 %v6458_v37, %v2352_v35  ;;  %3718 = vmatpush3.msra.mxu0 %v3093_v9  ;;  %v3186_v5 = vld [vmem:[#allocation8 + $0x38] sm:$0xff]  ;;  %3740 = vmatprep.subr.mxu1 %v4098_v32 }
 0x35d   : > { %v1845_v11 = vpop.permute.xlu1 %1844  ;;  %v1447_v4 = vpop.permute.xlu0 %1446  ;;  %3719 = vmatprep.subr.mxu0 %v4098_v32  ;;  %3741 = vmatpush3.msra.mxu1 %v3186_v5 }
 0x35e   : > { %vm2253_vm11 = vcmp.eq.s32.totalorder %v1845_v11, %v4942_v16  ;;  %vm2158_vm12 = vcmp.eq.s32.totalorder %v1447_v4, %v4942_v16  ;;  %3720 = vmatpush3.msra.mxu0 %v3092_v50  ;;  %3742 = vmatprep.subr.mxu1 %v4098_v32 }
 0x35f   : > { %v2637_v15 = vsel %vm2253_vm11, 1, %v7054_v53  ;;  %v2542_v61 = vsel %vm2158_vm12, 1, %v7054_v53  ;;  %3759 = vmatprep.subr.mxu0 %v4098_v32  ;;  %3743 = vmatpush3.msra.mxu1 %v3185_v47 }
 0x360   : > { %v3056_v0 = vadd.s32 %v6468_v60, %v2637_v15  ;;  %v2951_v29 = vadd.s32 %v6470_v42, %v2542_v61  ;;  %v3184_v60 = vld [vmem:[#allocation8 + $0x28] sm:$0xff]  ;;  %3744 = vmatprep.subr.mxu1 %v4098_v32 }
 0x361   : > { %v1250_v43 = vpop.permute.xlu1 %1249  ;;  %v852_v12 = vpop.permute.xlu0 %851  ;;  %3745 = vmatpush3.msra.mxu1 %v3184_v60 }
 0x362   : > { %vm2111_vm13 = vcmp.eq.s32.totalorder %v1250_v43, %v4942_v16  ;;  %vm2016_vm14 = vcmp.eq.s32.totalorder %v852_v12, %v4942_v16  ;;  %3746 = vmatprep.subr.mxu1 %v4098_v32 }
 0x363   : > { %v2495_v2 = vsel %vm2111_vm13, 1, %v7054_v53  ;;  %v2400_v36 = vsel %vm2016_vm14, 1, %v7054_v53  ;;  %3747 = vmatpush3.msra.mxu1 %v3183_v6 }
 0x364   : > { %v2899_v62 = vadd.s32 %v6479_v7, %v2495_v2  ;;  %v2794_v54 = vadd.s32 %v6481_v41, %v2400_v36  ;;  %v3182_v41 = vld [vmem:[#allocation8 + $0x18] sm:$0xff]  ;;  %3748 = vmatprep.subr.mxu1 %v4098_v32 }
 0x365   : > { %v454_v27 = vpop.permute.xlu1 %453  ;;  %v1648_v20 = vpop.permute.xlu0 %1647  ;;  %3749 = vmatpush3.msra.mxu1 %v3182_v41 }
 0x366   : > { %vm1921_vm15 = vcmp.eq.s32.totalorder %v454_v27, %v4942_v16  ;;  %vm2206_vm0 = vcmp.eq.s32.totalorder %v1648_v20, %v4942_v16  ;;  %3750 = vmatprep.subr.mxu1 %v4098_v32 }
 0x367   : > { %v2305_v49 = vsel %vm1921_vm15, 1, %v7054_v53  ;;  %v2590_v46 = vsel %vm2206_vm0, 1, %v7054_v53  ;;  %3751 = vmatpush3.msra.mxu1 %v3181_v45 }
 0x368   : > { %v2689_v13 = vadd.s32 %v6493_v38, %v2305_v49  ;;  %v3004_v1 = vadd.s32 %v6495_v21, %v2590_v46  ;;  %3752 = vmatprep.subr.mxu1 %v4098_v32 }
 0x369   : > { %v1053_v37 = vpop.permute.xlu1 %1052  ;;  %v655_v55 = vpop.permute.xlu0 %654 }
 0x36a   : > { %vm2064_vm1 = vcmp.eq.s32.totalorder %v1053_v37, %v4942_v16  ;;  %vm1969_vm2 = vcmp.eq.s32.totalorder %v655_v55, %v4942_v16 }
 0x36b   : > { %v2448_v22 = vsel %vm2064_vm1, 1, %v7054_v53  ;;  %v2353_v40 = vsel %vm1969_vm2, 1, %v7054_v53 }
 0x36c   : > { %v2847_v48 = vadd.s32 %v6504_v30, %v2448_v22  ;;  %v2742_v17 = vadd.s32 %v6507_v63, %v2353_v40 }
 0x36d   : > { %v1849_v42 = vpop.permute.xlu1 %1848  ;;  %v1451_v58 = vpop.permute.xlu0 %1450 }
 0x36e   : > { %vm2254_vm3 = vcmp.eq.s32.totalorder %v1849_v42, %v4942_v16  ;;  %vm2159_vm4 = vcmp.eq.s32.totalorder %v1451_v58, %v4942_v16 }
 0x36f   : > { %v2638_v34 = vsel %vm2254_vm3, 1, %v7054_v53  ;;  %v2543_v26 = vsel %vm2159_vm4, 1, %v7054_v53 }
 0x370   : > { %v6551_v57 = vadd.s32 %v3056_v0, %v2638_v34  ;;  %v6553_v7 = vadd.s32 %v2951_v29, %v2543_v26 }
 0x371   : > { %v1254_v23 = vpop.permute.xlu1 %1253  ;;  %v856_v56 = vpop.permute.xlu0 %855 }
 0x372   : > { %vm2112_vm5 = vcmp.eq.s32.totalorder %v1254_v23, %v4942_v16  ;;  %vm2017_vm7 = vcmp.eq.s32.totalorder %v856_v56, %v4942_v16 }
 0x373   : > { %v2496_v31 = vsel %vm2112_vm5, 1, %v7054_v53  ;;  %v2401_v59 = vsel %vm2017_vm7, 1, %v7054_v53 }
 0x374   : > { %v6561_v19 = vadd.s32 %v2899_v62, %v2496_v31  ;;  %v6563_v38 = vadd.s32 %v2794_v54, %v2401_v59 }
 0x375   : > { %v458_v21 = vpop.permute.xlu1 %457  ;;  %v1652_v28 = vpop.permute.xlu0 %1651 }
 0x376   : > { %vm1922_vm8 = vcmp.eq.s32.totalorder %v458_v21, %v4942_v16  ;;  %vm2207_vm9 = vcmp.eq.s32.totalorder %v1652_v28, %v4942_v16 }
 0x377   : > { %v2306_v52 = vsel %vm1922_vm8, 1, %v7054_v53  ;;  %v2591_v51 = vsel %vm2207_vm9, 1, %v7054_v53 }
 0x378   : > { %v2690_v18 = vadd.s32 %v2689_v13, %v2306_v52  ;;  %v6571_v10 = vadd.s32 %v3004_v1, %v2591_v51 }
 0x379   : > { %v1057_v39 = vpop.permute.xlu1 %1056  ;;  %v659_v44 = vpop.permute.xlu0 %658 }
 0x37a   : > { %vm2065_vm10 = vcmp.eq.s32.totalorder %v1057_v39, %v4942_v16  ;;  %vm1970_vm11 = vcmp.eq.s32.totalorder %v659_v44, %v4942_v16 }
 0x37b   : > { %v2449_v35 = vsel %vm2065_vm10, 1, %v7054_v53  ;;  %v2354_v30 = vsel %vm1970_vm11, 1, %v7054_v53 }
 0x37c   : > { %v6577_v63 = vadd.s32 %v2847_v48, %v2449_v35  ;;  %v2743_v9 = vadd.s32 %v2742_v17, %v2354_v30 }
 0x37d   : > { %v1853_v3 = vpop.permute.xlu1 %1852  ;;  %v1455_v11 = vpop.permute.xlu0 %1454 }
 0x37e   : > { %vm2255_vm14 = vcmp.eq.s32.totalorder %v1853_v3, %v4942_v16  ;;  %vm2160_vm0 = vcmp.eq.s32.totalorder %v1455_v11, %v4942_v16 }
 0x37f   : > { %v2639_v13 = vsel %vm2255_vm14, 1, %v7054_v53  ;;  %v2544_v55 = vsel %vm2160_vm0, 1, %v7054_v53  ;;  %vm3071_vm0 = vcmask 1041409  }
 0x380   : > { %v3058_v42 = vadd.s32 %v6551_v57, %v2639_v13  ;;  %v2953_v58 = vadd.s32 %v6553_v7, %v2544_v55 }
 0x381   : > { %v1258_v4 = vpop.permute.xlu1 %1257  ;;  %v860_v50 = vpop.permute.xlu0 %859 }
 0x382   : > { %vm2113_vm2 = vcmp.eq.s32.totalorder %v1258_v4, %v4942_v16  ;;  %vm2018_vm3 = vcmp.eq.s32.totalorder %v860_v50, %v4942_v16 }
 0x383   : > { %v2497_v48 = vsel %vm2113_vm2, 1, %v7054_v53  ;;  %v2402_v6 = vsel %vm2018_vm3, 1, %v7054_v53 }
 0x384   : > { %v2901_v56 = vadd.s32 %v6561_v19, %v2497_v48  ;;  %v2796_v59 = vadd.s32 %v6563_v38, %v2402_v6 }
 0x385   : > { %v462_v8 = vpop.permute.xlu1 %461  ;;  %v1656_v15 = vpop.permute.xlu0 %1655 }
 0x386   : > { %vm1923_vm12 = vcmp.eq.s32.totalorder %v462_v8, %v4942_v16  ;;  %vm2208_vm5 = vcmp.eq.s32.totalorder %v1656_v15, %v4942_v16 }
 0x387   : > { %v2307_v27 = vsel %vm1923_vm12, 1, %v7054_v53  ;;  %v2592_v45 = vsel %vm2208_vm5, 1, %v7054_v53 }
 0x388   : > { %v2691_v46 = vadd.s32 %v2690_v18, %v2307_v27  ;;  %v3006_v39 = vadd.s32 %v6571_v10, %v2592_v45 }
 0x389   : > { %v1061_v61 = vpop.permute.xlu1 %1060  ;;  %v663_v0 = vpop.permute.xlu0 %662 }
 0x38a   : > { %vm1971_vm15 = vcmp.eq.s32.totalorder %v663_v0, %v4942_v16  ;;  %vm2066_vm7 = vcmp.eq.s32.totalorder %v1061_v61, %v4942_v16 }
 0x38b   : > { %v2355_v1 = vsel %vm1971_vm15, 1, %v7054_v53  ;;  %v2450_v21 = vsel %vm2066_vm7, 1, %v7054_v53 }
 0x38c   : > { %v2744_v17 = vadd.s32 %v2743_v9, %v2355_v1  ;;  %v2849_v4 = vadd.s32 %v6577_v63, %v2450_v21 }
 0x38d   : > { %v1857_v29 = vpop.permute.xlu1 %1856  ;;  %v6579_v33 = vpop.permute.xlu0 %1458 }
 0x38e   : > { %vm2256_vm10 = vcmp.eq.s32.totalorder %v1857_v29, %v4942_v16  ;;  %vm2161_vm11 = vcmp.eq.s32.totalorder %v6579_v33, %v4942_v16 }
 0x38f   : > { %v2640_v51 = vsel %vm2256_vm10, 1, %v7054_v53  ;;  %v2545_v44 = vsel %vm2161_vm11, 1, %v7054_v53  ;;  %vm3073_vm10 = vcmask 1042434  }
 0x390   : > { %v3059_v50 = vadd.s32 %v3058_v42, %v2640_v51  ;;  %v2954_v33 = vadd.s32 %v2953_v58, %v2545_v44 }
 0x391   : > { %v6581_v43 = vpop.permute.xlu1 %1261  ;;  %v864_v12 = vpop.permute.xlu0 %863 }
 0x392   : > { %vm2019_vm8 = vcmp.eq.s32.totalorder %v864_v12, %v4942_v16  ;;  %vm2114_vm14 = vcmp.eq.s32.totalorder %v6581_v43, %v4942_v16 }
 0x393   : > { %v2403_v19 = vsel %vm2019_vm8, 1, %v7054_v53  ;;  %v2498_v8 = vsel %vm2114_vm14, 1, %v7054_v53  ;;  %vm3075_vm14 = vcmask 1043459  }
 0x394   : > { %v2797_v30 = vadd.s32 %v2796_v59, %v2403_v19 }
 0x395   : > { %v466_v24 = vpop.permute.xlu1 %465  ;;  %v6583_v2 = vpop.permute.xlu0 %1659 }
 0x396   : > { %vm1924_vm13 = vcmp.eq.s32.totalorder %v466_v24, %v4942_v16 }
 0x397   : > { %v2308_v49 = vsel %vm1924_vm13, 1, %v7054_v53 }
 0x398   : > { %v2692_v47 = vadd.s32 %v2691_v46, %v2308_v49 }
 0x399   : > { %v6585_v36 = vpop.permute.xlu1 %1064  ;;  %v667_v62 = vpop.permute.xlu0 %666 }
 0x39a   : > { %vm1972_vm1 = vcmp.eq.s32.totalorder %v667_v62, %v4942_v16  ;;  %vm2067_vm13 = vcmp.eq.s32.totalorder %v6585_v36, %v4942_v16  ;;  %v2902_v62 = vadd.s32 %v2901_v56, %v2498_v8 }
 0x39b   : > { %v2356_v22 = vsel %vm1972_vm1, 1, %v7054_v53  ;;  %v2451_v9 = vsel %vm2067_vm13, 1, %v7054_v53  ;;  %vm2209_vm1 = vcmp.eq.s32.totalorder %v6583_v2, %v4942_v16 }
 0x39c   : > { %v2745_v41 = vadd.s32 %v2744_v17, %v2356_v22  ;;  %v2850_v43 = vadd.s32 %v2849_v4, %v2451_v9  ;;  %v2593_v27 = vsel %vm2209_vm1, 1, %v7054_v53 }
 0x39d   : > { %v6587_v54 = vpop.permute.xlu1 %1860  ;;  %v6589_v25 = vpop.permute.xlu0 %1462  ;;  %v3007_v48 = vadd.s32 %v3006_v39, %v2593_v27 }
 0x39e   : > { %vm2257_vm3 = vcmp.eq.s32.totalorder %v6587_v54, %v4942_v16  ;;  %vm2162_vm5 = vcmp.eq.s32.totalorder %v6589_v25, %v4942_v16 }
 0x3a1   : > { %v6594_v20 = vpop.permute.xlu1 %1265  ;;  %v868_v14 = vpop.permute.xlu0 %867 }
 0x3a2   : > { %vm2020_vm12 = vcmp.eq.s32.totalorder %v868_v14, %v4942_v16 }
 0x3a3   : > { %v2404_v35 = vsel %vm2020_vm12, 1, %v7054_v53 }
 0x3a4   : > { %v2798_v61 = vadd.s32 %v2797_v30, %v2404_v35 }
 0x3a5   : > { %v470_v5 = vpop.permute.xlu1 %469  ;;  %v6604_v37 = vpop.permute.xlu0 %1663 }
 0x3a6   : > { %vm1925_vm4 = vcmp.eq.s32.totalorder %v470_v5, %v4942_v16 }
 0x3a7   : > { %v2309_v40 = vsel %vm1925_vm4, 1, %v7054_v53  ;;  %vm2115_vm4 = vcmp.eq.s32.totalorder %v6594_v20, %v4942_v16  ;;  %v2641_v20 = vsel %vm2257_vm3, 1, %v7054_v53 }
 0x3a8   : > { %v2693_v60 = vadd.s32 %v2692_v47, %v2309_v40  ;;  %v2499_v2 = vsel %vm2115_vm4, 1, %v7054_v53 }
 0x3a9   : > { %v1069_v34 = vpop.permute.xlu1 %1068  ;;  %v671_v26 = vpop.permute.xlu0 %670 }
 0x3aa   : > { %v2694_v23 = vrot.slane %v2693_v60, 4  ;;  %vm1973_vm9 = vcmp.eq.s32.totalorder %v671_v26, %v4942_v16  ;;  %vm2068_vm15 = vcmp.eq.s32.totalorder %v1069_v34, %v4942_v16  ;;  %v3060_v34 = vadd.s32 %v3059_v50, %v2641_v20 }
 0x3ab   : > { %v2357_v57 = vsel %vm1973_vm9, 1, %v7054_v53  ;;  %v2452_v0 = vsel %vm2068_vm15, 1, %v7054_v53  ;;  %vm2210_vm9 = vcmp.eq.s32.totalorder %v6604_v37, %v4942_v16  ;;  %v2546_v26 = vsel %vm2162_vm5, 1, %v7054_v53 }
 0x3ac   : > { %v2695_v7 = vadd.s32 %v2694_v23, %v2693_v60  ;;  %v2746_v31 = vadd.s32 %v2745_v41, %v2357_v57  ;;  %v2851_v14 = vadd.s32 %v2850_v43, %v2452_v0  ;;  %v2903_v41 = vadd.s32 %v2902_v62, %v2499_v2 }
 0x3ad   : > { %v6633_v28 = vpop.permute.xlu1 %1864  ;;  %v6635_v52 = vpop.permute.xlu0 %1466  ;;  %v2594_v23 = vsel %vm2210_vm9, 1, %v7054_v53  ;;  %vm3079_vm9 = vcmask 1045509  }
 0x3ae   : > { %v2696_v18 = vrot.slane %v2695_v7, 2  ;;  %v2747_v38 = vrot.slane %v2746_v31, 4  ;;  %vm2258_vm11 = vcmp.eq.s32.totalorder %v6633_v28, %v4942_v16  ;;  %vm2163_vm12 = vcmp.eq.s32.totalorder %v6635_v52, %v4942_v16 }
 0x3af   : > { %v2642_v56 = vsel %vm2258_vm11, 1, %v7054_v53  ;;  %v2955_v28 = vadd.s32 %v2954_v33, %v2546_v26  ;;  %v3008_v51 = vadd.s32 %v3007_v48, %v2594_v23  ;;  %vm3083_vm11 = vcmask 1047559  }
 0x3b0   : > { %v2697_v3 = vadd.s32 %v2696_v18, %v2695_v7  ;;  %v2748_v11 = vadd.s32 %v2747_v38, %v2746_v31  ;;  %v2547_v7 = vsel %vm2163_vm12, 1, %v7054_v53  ;;  %v3061_v30 = vadd.s32 %v3060_v34, %v2642_v56 }
 0x3b1   : > { %v1270_v10 = vpop.permute.xlu1 %1269  ;;  %v872_v15 = vpop.permute.xlu0 %871  ;;  %v2956_v9 = vadd.s32 %v2955_v28, %v2547_v7  ;;  %v3294_v28 = vld [vmem:[#allocation8 + $0xf0] sm:$0xff] }
 0x3b2   : > { %v2749_v29 = vrot.slane %v2748_v11, 2  ;;  %vm2021_vm2 = vcmp.eq.s32.totalorder %v872_v15, %v4942_v16  ;;  %v2698_v12 = vrot.slane %v2697_v3, 1  ;;  %vm2116_vm7 = vcmp.eq.s32.totalorder %v1270_v10, %v4942_v16 }
 0x3b3   : > { %v2405_v63 = vsel %vm2021_vm2, 1, %v7054_v53  ;;  %v2500_v54 = vsel %vm2116_vm7, 1, %v7054_v53 }
 0x3b4   : > { %v2750_v24 = vadd.s32 %v2749_v29, %v2748_v11  ;;  %v2799_v36 = vadd.s32 %v2798_v61, %v2405_v63  ;;  %v2699_v55 = vadd.s32 %v2698_v12, %v2697_v3  ;;  %v2904_v25 = vadd.s32 %v2903_v41, %v2500_v54 }
 0x3b5   : > { %v1073_v49 = vpop.permute.xlu1 %1072  ;;  %v1668_v46 = vpop.permute.xlu0 %1667 }
 0x3b6   : > { %v2751_v13 = vrot.slane %v2750_v24, 1  ;;  %v2800_v1 = vrot.slane %v2799_v36, 4  ;;  %vm2069_vm8 = vcmp.eq.s32.totalorder %v1073_v49, %v4942_v16  ;;  %vm2211_vm13 = vcmp.eq.s32.totalorder %v1668_v46, %v4942_v16 }
 0x3b7   : > { %v2453_v5 = vsel %vm2069_vm8, 1, %v7054_v53  ;;  %v2595_v31 = vsel %vm2211_vm13, 1, %v7054_v53  ;;  %vm3077_vm8 = vcmask 1044484  }
 0x3b8   : > { %v2752_v47 = vadd.s32 %v2751_v13, %v2750_v24  ;;  %v2801_v22 = vadd.s32 %v2800_v1, %v2799_v36  ;;  %v2852_v40 = vadd.s32 %v2851_v14, %v2453_v5  ;;  %v3009_v3 = vadd.s32 %v3008_v51, %v2595_v31  ;;  %v3293_v51 = vld [vmem:[#allocation8 + $0xe8] sm:$0xff] }
 0x3b9   : > { %v1869_v17 = vpop.permute.xlu1 %1868  ;;  %v1471_v60 = vpop.permute.xlu0 %1470 }
 0x3ba   : > { %v3072_v42 = vsel %vm3071_vm0, %v2752_v47, %v2699_v55  ;;  %v2802_v58 = vrot.slane %v2801_v22, 2  ;;  %v2853_v6 = vrot.slane %v2852_v40, 4  ;;  %vm2259_vm15 = vcmp.eq.s32.totalorder %v1869_v17, %v4942_v16 }
 0x3bb   : > { %vm2164_vm0 = vcmp.eq.s32.totalorder %v1471_v60, %v4942_v16  ;;  %v2643_v18 = vsel %vm2259_vm15, 1, %v7054_v53 }
 0x3bc   : > { %v2803_v45 = vadd.s32 %v2802_v58, %v2801_v22  ;;  %v2854_v57 = vadd.s32 %v2853_v6, %v2852_v40  ;;  %v2548_v44 = vsel %vm2164_vm0, 1, %v7054_v53  ;;  %v3062_v61 = vadd.s32 %v3061_v30, %v2643_v18  ;;  %v3289_v30 = vld [vmem:[#allocation8 + $0xc8] sm:$0xff] }
 0x3bd   : > { %v1672_v59 = vpop.permute.xlu1 %1671  ;;  %v1274_v37 = vpop.permute.xlu0 %1273  ;;  %v2957_v0 = vadd.s32 %v2956_v9, %v2548_v44  ;;  %v3291_v44 = vld [vmem:[#allocation8 + $0xd8] sm:$0xff]  ;;  %v3288_v9 = vld [vmem:[#allocation8 + $0xc0] sm:$0xff] }
 0x3be   : > { %v2804_v21 = vrot.slane %v2803_v45, 1  ;;  %v2855_v19 = vrot.slane %v2854_v57, 2  ;;  %vm2212_vm1 = vcmp.eq.s32.totalorder %v1672_v59, %v4942_v16  ;;  %vm2117_vm2 = vcmp.eq.s32.totalorder %v1274_v37, %v4942_v16  ;;  %v3180_v37 = vld [vmem:[#allocation8 + $0x8] sm:$0xff] }
 0x3bf   : > { %v2501_v52 = vsel %vm2117_vm2, 1, %v7054_v53  ;;  %v2596_v11 = vsel %vm2212_vm1, 1, %v7054_v53  ;;  %3753 = vmatpush3.msra.mxu1 %v3180_v37 }
 0x3c0   : > { %v2805_v38 = vadd.s32 %v2804_v21, %v2803_v45  ;;  %v2856_v39 = vadd.s32 %v2855_v19, %v2854_v57  ;;  %v2905_v35 = vadd.s32 %v2904_v25, %v2501_v52  ;;  %v3010_v12 = vadd.s32 %v3009_v3, %v2596_v11  ;;  %3754 = vmatprep.subr.mxu1 %v4098_v32  ;;  %v3179_v21 = vld [vmem:[#allocation8] sm:$0xff]  ;;  %v3295_v19 = vld [vmem:[#allocation8 + $0xf8] sm:$0xff]  ;;  %v3286_v11 = vld [vmem:[#allocation8 + $0xb0] sm:$0xff] }
 0x3c1   : > { %v1873_v4 = vpop.permute.xlu1 %1872  ;;  %v1475_v50 = vpop.permute.xlu0 %1474  ;;  %3755 = vmatpush3.msra.mxu1 %v3179_v21  ;;  %v3287_v3 = vld [vmem:[#allocation8 + $0xb8] sm:$0xff] }
 0x3c2   : > { %v3074_v8 = vsel %vm3073_vm10, %v2805_v38, %v3072_v42  ;;  %v2857_v10 = vrot.slane %v2856_v39, 1  ;;  %v2906_v15 = vrot.slane %v2905_v35, 4  ;;  %vm2260_vm3 = vcmp.eq.s32.totalorder %v1873_v4, %v4942_v16  ;;  %3794 = vmatprep.subr.mxu1 %v4098_v32  ;;  %v3285_v4 = vld [vmem:[#allocation8 + $0xa8] sm:$0xff] }
 0x3c3   : > { %v2644_v29 = vsel %vm2260_vm3, 1, %v7054_v53  ;;  %vm2165_vm4 = vcmp.eq.s32.totalorder %v1475_v50, %v4942_v16  ;;  %vm3081_vm10 = vcmask 1046534   ;;  %v3284_v50 = vld [vmem:[#allocation8 + $0xa0] sm:$0xff] }
 0x3c4   : > { %v2858_v33 = vadd.s32 %v2857_v10, %v2856_v39  ;;  %v2907_v43 = vadd.s32 %v2906_v15, %v2905_v35  ;;  %v2549_v63 = vsel %vm2165_vm4, 1, %v7054_v53  ;;  %v3063_v24 = vadd.s32 %v3062_v61, %v2644_v29  ;;  %v3292_v39 = vld [vmem:[#allocation8 + $0xe0] sm:$0xff]  ;;  %v3290_v35 = vld [vmem:[#allocation8 + $0xd0] sm:$0xff]  ;;  %v3281_v15 = vld [vmem:[#allocation8 + $0x88] sm:$0xff] }
 0x3c5   : > { %v2958_v36 = vadd.s32 %v2957_v0, %v2549_v63  ;;  %v1877_v62 = vpop.permute.xlu1 %1876  ;;  %v1676_v27 = vpop.permute.xlu0 %1675  ;;  %v3282_v10 = vld [vmem:[#allocation8 + $0x90] sm:$0xff]  ;;  %v3280_v61 = vld [vmem:[#allocation8 + $0x80] sm:$0xff]  ;;  %v3397_v0 = vld [vmem:[#allocation8 + $0x178] sm:$0xff] }
 0x3c6   : > { %v3076_v14 = vsel %vm3075_vm14, %v2858_v33, %v3074_v8  ;;  %v2908_v49 = vrot.slane %v2907_v43, 2  ;;  %vm2261_vm5 = vcmp.eq.s32.totalorder %v1877_v62, %v4942_v16  ;;  %vm2213_vm7 = vcmp.eq.s32.totalorder %v1676_v27, %v4942_v16  ;;  %v3283_v8 = vld [vmem:[#allocation8 + $0x98] sm:$0xff]  ;;  %v3396_v29 = vld [vmem:[#allocation8 + $0x170] sm:$0xff]  ;;  %v3395_v33 = vld [vmem:[#allocation8 + $0x168] sm:$0xff] }
 0x3c7   : > { %v2959_v46 = vrot.slane %v2958_v36, 4  ;;  %v2645_v13 = vsel %vm2261_vm5, 1, %v7054_v53  ;;  %v2597_v1 = vsel %vm2213_vm7, 1, %v7054_v53 }
 0x3c8   : > { %v2909_v20 = vadd.s32 %v2908_v49, %v2907_v43  ;;  %v3064_v2 = vadd.s32 %v3063_v24, %v2645_v13  ;;  %v3011_v5 = vadd.s32 %v3010_v12, %v2597_v1  ;;  %v3609_v43 = vld [vmem:[%s6800_s3] ss:$0 sm:$0xff]  ;;  %v3394_v13 = vld [vmem:[#allocation8 + $0x160] sm:$0xff]  ;;  %v3393_v1 = vld [vmem:[#allocation8 + $0x158] sm:$0xff] }
 0x3c9   : > { %v2960_v55 = vadd.s32 %v2959_v46, %v2958_v36 }
 0x3ca   : > { %v2910_v47 = vrot.slane %v2909_v20, 1  ;;  %v3065_v22 = vrot.slane %v3064_v2, 4  ;;  %v3012_v40 = vrot.slane %v3011_v5, 4 }
 0x3cb   : > { %v2961_v48 = vrot.slane %v2960_v55, 2 }
 0x3cc   : > { %v2911_v54 = vadd.s32 %v2910_v47, %v2909_v20  ;;  %v3066_v17 = vadd.s32 %v3065_v22, %v3064_v2  ;;  %v3013_v60 = vadd.s32 %v3012_v40, %v3011_v5  ;;  %v3392_v20 = vld [vmem:[#allocation8 + $0x150] sm:$0xff]  ;;  %v3391_v2 = vld [vmem:[#allocation8 + $0x148] sm:$0xff]  ;;  %v3390_v5 = vld [vmem:[#allocation8 + $0x140] sm:$0xff] }
 0x3cd   : > { %v2962_v42 = vadd.s32 %v2961_v48, %v2960_v55  ;;  %v3389_v55 = vld [vmem:[#allocation8 + $0x138] sm:$0xff]  ;;  %v3388_v47 = vld [vmem:[#allocation8 + $0x130] sm:$0xff]  ;;  %v3387_v22 = vld [vmem:[#allocation8 + $0x128] sm:$0xff] }
 0x3ce   : > { %v3067_v58 = vrot.slane %v3066_v17, 2  ;;  %v3014_v16 = vrot.slane %v3013_v60, 2  ;;  %v3078_v6 = vsel %vm3077_vm8, %v2911_v54, %v3076_v14  ;;  %v3386_v40 = vld [vmem:[#allocation8 + $0x120] sm:$0xff]  ;;  %v3385_v48 = vld [vmem:[#allocation8 + $0x118] sm:$0xff]  ;;  %v3384_v54 = vld [vmem:[#allocation8 + $0x110] sm:$0xff] }
 0x3cf   : > { %v2963_v34 = vrot.slane %v2962_v42, 1 }
 0x3d0   : > { %v3068_v26 = vadd.s32 %v3067_v58, %v3066_v17  ;;  %v3015_v41 = vadd.s32 %v3014_v16, %v3013_v60  ;;  %v3383_v17 = vld [vmem:[#allocation8 + $0x108] sm:$0xff]  ;;  %v3382_v60 = vld [vmem:[#allocation8 + $0x100] sm:$0xff] }
 0x3d1   : > { %v2964_v53 = vadd.s32 %v2963_v34, %v2962_v42  ;;  %v3612_v42 = vld [vmem:[%s6800_s3 + $0x1] ss:$0 sm:$0xff] }
 0x3d2   : > { %v3069_v23 = vrot.slane %v3068_v26, 1  ;;  %v3016_v56 = vrot.slane %v3015_v41, 1 }
 0x3d3   : > { %v3080_v45 = vsel %vm3079_vm9, %v2964_v53, %v3078_v6 }
 0x3d4   : > { %v3070_v57 = vadd.s32 %v3069_v23, %v3068_v26  ;;  %v3017_v7 = vadd.s32 %v3016_v56, %v3015_v41 }
 0x3d6   : > { %v3082_v25 = vsel %vm3081_vm10, %v3017_v7, %v3080_v45 }
 0x3d7   : > { %v3084_v31 = vsel %vm3083_vm11, %v3070_v57, %v3082_v25 }
 0x3d8   : > { %v3091_v59 = vcvt.s32.f32 %v3084_v31 }
 0x3da   : > { %3722 = vmatmul.mubr.f32.vlgmr.msra.gmra.mxu0 %v3091_v59 }
 0x3db   : > { %3791 = vmatprep.mubr.msk.f32.mxu0 %vm4099_vm6, %v4098_v32  ;;  %3760 = vmatpush3.msra.mxu0 %v3295_v19 }
 0x3dc   : > { %3761 = vmatprep.subr.mxu0 %v4098_v32 }
 0x3dd   : > { %3762 = vmatpush3.msra.mxu0 %v3294_v28 }
 0x3de   : > { %3763 = vmatprep.subr.mxu0 %v4098_v32 }
 0x3df   : > { %3764 = vmatpush3.msra.mxu0 %v3293_v51 }
 0x3e0   : > { %3765 = vmatprep.subr.mxu0 %v4098_v32 }
 0x3e1   : > { %3766 = vmatpush3.msra.mxu0 %v3292_v39 }
 0x3e2   : > { %3767 = vmatprep.subr.mxu0 %v4098_v32 }
 0x3e3   : > { %3768 = vmatpush3.msra.mxu0 %v3291_v44 }
 0x3e4   : > { %3769 = vmatprep.subr.mxu0 %v4098_v32 }
 0x3e5   : > { %3770 = vmatpush3.msra.mxu0 %v3290_v35 }
 0x3e6   : > { %3771 = vmatprep.subr.mxu0 %v4098_v32 }
 0x3e7   : > { %3772 = vmatpush3.msra.mxu0 %v3289_v30 }
 0x3e8   : > { %3773 = vmatprep.subr.mxu0 %v4098_v32 }
 0x3e9   : > { %3774 = vmatpush3.msra.mxu0 %v3288_v9 }
 0x3ea   : > { %3775 = vmatprep.subr.mxu0 %v4098_v32 }
 0x3eb   : > { %3776 = vmatpush3.msra.mxu0 %v3287_v3 }
 0x3ec   : > { %3777 = vmatprep.subr.mxu0 %v4098_v32 }
 0x3ed   : > { %3778 = vmatpush3.msra.mxu0 %v3286_v11 }
 0x3ee   : > { %3779 = vmatprep.subr.mxu0 %v4098_v32 }
 0x3ef   : > { %3780 = vmatpush3.msra.mxu0 %v3285_v4 }
 0x3f0   : > { %3781 = vmatprep.subr.mxu0 %v4098_v32 }
 0x3f1   : > { %3782 = vmatpush3.msra.mxu0 %v3284_v50 }
 0x3f2   : > { %3783 = vmatprep.subr.mxu0 %v4098_v32 }
 0x3f3   : > { %3784 = vmatpush3.msra.mxu0 %v3283_v8 }
 0x3f4   : > { %3785 = vmatprep.subr.mxu0 %v4098_v32 }
 0x3f5   : > { %3786 = vmatpush3.msra.mxu0 %v3282_v10 }
 0x3f6   : > { %3787 = vmatprep.subr.mxu0 %v4098_v32 }
 0x3f7   : > { %3788 = vmatpush3.msra.mxu0 %v3281_v15 }
 0x3f8   : > { %3789 = vmatprep.subr.mxu0 %v4098_v32 }
 0x3f9   : > { %3790 = vmatpush3.msra.mxu0 %v3280_v61 }
 0x49a   : > { %v3174_v18 = vpop.f32.mrf.mxu0 }
 0x49b   : > { %v3178_v52 = vmul.f32 0.0026041667, %v3174_v18 }
 0x49c   : > { %v3723_v38 = vpop.f32.mrf.mxu0 }
 0x49d   : > { %3757 = vmatmul.mubr.f32.vlgmr.msra.gmra.mxu1 %v3178_v52 }
 0x49e   : > { %3826 = vmatprep.mubr.msk.f32.mxu1 %vm4099_vm6, %v4098_v32  ;;  %3795 = vmatpush3.msra.mxu1 %v3397_v0 }
 0x49f   : > { %3796 = vmatprep.subr.mxu1 %v4098_v32 }
 0x4a0   : > { %3797 = vmatpush3.msra.mxu1 %v3396_v29 }
 0x4a1   : > { %3798 = vmatprep.subr.mxu1 %v4098_v32 }
 0x4a2   : > { %3799 = vmatpush3.msra.mxu1 %v3395_v33 }
 0x4a3   : > { %3800 = vmatprep.subr.mxu1 %v4098_v32 }
 0x4a4   : > { %3801 = vmatpush3.msra.mxu1 %v3394_v13 }
 0x4a5   : > { %3802 = vmatprep.subr.mxu1 %v4098_v32 }
 0x4a6   : > { %3803 = vmatpush3.msra.mxu1 %v3393_v1 }
 0x4a7   : > { %3804 = vmatprep.subr.mxu1 %v4098_v32 }
 0x4a8   : > { %3805 = vmatpush3.msra.mxu1 %v3392_v20 }
 0x4a9   : > { %3806 = vmatprep.subr.mxu1 %v4098_v32 }
 0x4aa   : > { %3807 = vmatpush3.msra.mxu1 %v3391_v2 }
 0x4ab   : > { %3808 = vmatprep.subr.mxu1 %v4098_v32 }
 0x4ac   : > { %3809 = vmatpush3.msra.mxu1 %v3390_v5 }
 0x4ad   : > { %3810 = vmatprep.subr.mxu1 %v4098_v32 }
 0x4ae   : > { %3811 = vmatpush3.msra.mxu1 %v3389_v55 }
 0x4af   : > { %3812 = vmatprep.subr.mxu1 %v4098_v32 }
 0x4b0   : > { %3813 = vmatpush3.msra.mxu1 %v3388_v47 }
 0x4b1   : > { %3814 = vmatprep.subr.mxu1 %v4098_v32 }
 0x4b2   : > { %3815 = vmatpush3.msra.mxu1 %v3387_v22 }
 0x4b3   : > { %3816 = vmatprep.subr.mxu1 %v4098_v32 }
 0x4b4   : > { %3817 = vmatpush3.msra.mxu1 %v3386_v40 }
 0x4b5   : > { %3818 = vmatprep.subr.mxu1 %v4098_v32 }
 0x4b6   : > { %3819 = vmatpush3.msra.mxu1 %v3385_v48 }
 0x4b7   : > { %3820 = vmatprep.subr.mxu1 %v4098_v32 }
 0x4b8   : > { %3821 = vmatpush3.msra.mxu1 %v3384_v54 }
 0x4b9   : > { %3822 = vmatprep.subr.mxu1 %v4098_v32 }
 0x4ba   : > { %3823 = vmatpush3.msra.mxu1 %v3383_v17 }
 0x4bb   : > { %3824 = vmatprep.subr.mxu1 %v4098_v32  ;;  %v3615_v32 = vld [vmem:[%s6800_s3 + $0x2] ss:$0 sm:$0xff] }
 0x4bc   : > { %3825 = vmatpush3.msra.mxu1 %v3382_v60 }
 0x55d   : > { %v3268_v63 = vpop.f32.mrf.mxu1 }
 0x55e   : > { %v3269_v12 = vadd.f32 %v3609_v43, %v3268_v63 }
 0x55f   : > { %v3758_v24 = vpop.f32.mrf.mxu1 }
 0x560   : > { %v3273_v36 = vmul.f32 1.442695, %v3269_v12  ;;  %vm3272_vm6 = vcmp.gt.f32.partialorder %v3269_v12, 0.0 }
 0x562   : > { %3920 = vpow2.f32 %v3273_v36 }
 0x56f   : > { %v3921_v62 = vpop.eup %3920 }
 0x570   : > { %v3610_v27 = vadd.f32 -1.0, %v3921_v62 }
 0x572   : > { %v3276_v14 = vmul.f32 1.6732632, %v3610_v27 }
 0x574   : > { %v3277_v49 = vsel %vm3272_vm6, %v3269_v12, %v3276_v14 }
 0x575   : > { %v3278_v46 = vmul.f32 1.050701, %v3277_v49 }
 0x577   : > { %3792 = vmatmul.mubr.f32.vlgmr.msra.gmra.mxu0 %v3278_v46 }
 0x637   : > { %v3370_v58 = vpop.f32.mrf.mxu0 }
 0x638   : > { %v3371_v16 = vadd.f32 %v3612_v42, %v3370_v58 }
 0x639   : > { %v3793_v6 = vpop.f32.mrf.mxu0 }
 0x63a   : > { %v3375_v34 = vmul.f32 1.442695, %v3371_v16  ;;  %vm3374_vm12 = vcmp.gt.f32.partialorder %v3371_v16, 0.0 }
 0x63c   : > { %3922 = vpow2.f32 %v3375_v34 }
 0x649   : > { %v3923_v26 = vpop.eup %3922 }
 0x64a   : > { %v3613_v41 = vadd.f32 -1.0, %v3923_v26 }
 0x64c   : > { %v3378_v53 = vmul.f32 1.6732632, %v3613_v41 }
 0x64e   : > { %v3379_v23 = vsel %vm3374_vm12, %v3371_v16, %v3378_v53 }
 0x64f   : > { %v3380_v56 = vmul.f32 1.050701, %v3379_v23 }
 0x651   : > { %3827 = vmatmul.mubr.f32.vlgmr.msra.gmra.mxu1 %v3380_v56 }
 0x711   : > { %v3472_v45 = vpop.f32.mrf.mxu1 }
 0x712   : > { %v3473_v57 = vadd.f32 %v3615_v32, %v3472_v45 }
 0x713   : > { %v3828_v7 = vpop.f32.mrf.mxu1 }
 0x714   : > { %v3477_v25 = vmul.f32 1.442695, %v3473_v57  ;;  %vm3476_vm13 = vcmp.gt.f32.partialorder %v3473_v57, 0.0 }
 0x716   : > { %3924 = vpow2.f32 %v3477_v25 }
 0x723   : > { %v3925_v31 = vpop.eup %3924 }
 0x724   : > { %v3616_v59 = vadd.f32 -1.0, %v3925_v31 }
 0x726   : > { %v3480_v37 = vmul.f32 1.6732632, %v3616_v59 }
 0x728   : > { %v3481_v21 = vsel %vm3476_vm13, %v3473_v57, %v3480_v37 }
 0x729   : > { %v3482_v19 = vmul.f32 1.050701, %v3481_v21 }
 0x72b   : > { %3483 = vst [vmem:[%s258_s12] sm:$0xff] %v3482_v19 }
 0x72c   : > { %4019 = shalt.err (!%p4016_p5)
}
 0x72d   : > { %s4020_s23 = scalar_lea.hbm %s3496_s22, 128  ;;  %s4024_s27 = scalar_lea.hbm %s6801_s4, 256 }
 0x72e   : > { %p4021_p10 = scmp.ne.s32.totalorder %s3496_s22, %s4020_s23  ;;  %p4025_p6 = scmp.lt.s32.totalorder %s3496_s22, %s6801_s4 }
 0x72f   : > { %p4026_p12 = scmp.lt.s32.totalorder %s4024_s27, %s4020_s23 }
 0x730   : > { %p4022_p1 = pnand %p4021_p10, %p4221_p7 }
 0x731   : > { %p4027_p3 = por %p4026_p12, %p4025_p6 }
 0x732   : > { %p4023_p4 = pneg %p4022_p1 }
 0x734   : > { %p4028_p8 = pnand %p4027_p3, %p4023_p4 }
 0x736   : > { %4031 = shalt.err (!%p4028_p8)
}
 0x737   : > { %3842 = dma.vmem_to_hbm [thread:$0]  (%p4221_p7), %s3499_s13, 128, %s3496_s22, %s3485_s5  }
 0x738 PF: > { %s3510_s11 = sand.u32 1, %s4070_s15   ;;  %p7228_p9 = scmp.ne.s32.totalorder %s6846_s26, 0 }
 0x739   : > { %p7229_p11 = scmp.ge.s32.totalorder %s4090_s20, 2  ;;  %s3511_s24 = scalar_lea.sflag [#allocation5], %s3510_s11 }
 0x73b   : > { %p3856_p2 = pnand %p7229_p11, %p7228_p9 }
 0x73d   : > { %p3857_p13 = pneg %p3856_p2 }
 0x73f   : > { %4065 = dma.done.wait (%p3857_p13), %s3511_s24, 128  }
 0x740   : > { %4067 = vsyncadd (%p3857_p13), %s3511_s24, 4294967168  ;;  %s21_s20 = sadd.s32 1, %s4090_s20   ;;  %s7230_s15 = smov %s4074_s16 }
 0x741   : > { %p18_p0 = scmp.ge.s32.totalorder %s21_s20, 4   ;;  %s7231_s16 = smov %s4078_s17 }
 0x742   : > { %s7232_s17 = smov %s4233_s7  ;;  %s7233_s18 = smov %s4086_s19 }
 0x743   : > { %s7234_s19 = smov %s7236_s21  ;;  %20 = sbr.rel (!%p18_p0) target bundleno = 9 (0x9), region = 101 }
 0x748   :  { %3516 = vsyncpa [#allocation4], 1 }
 0x749   :  { %3518 = vsyncpa [#allocation4 + $0x1], 1 }
 0x74a   :  { %3519 = vsyncpa [#allocation7], 1 }
 0x74b   :  { %3520 = vsyncpa [#allocation5], 1 }
 0x74c   :  { %3522 = vsyncpa [#allocation5 + $0x1], 1 }

</bundles_post_ra>
